<compile_context>
chip_gen: v6e
topology: v6e:2x2x1
jax: 0.10.0
libtpu: 0.0.40
codegen_flags: <defaults>
</compile_context>

<pallas_src>
import numpy as np
import jax
import jax.numpy as jnp
from jax.experimental import pallas as pl
from jax.experimental.pallas import tpu as pltpu

NEG_SLOPE = 0.01  # PyTorch nn.LeakyReLU default


def _leaky(x):
    return jnp.where(x >= 0, x, NEG_SLOPE * x)


# ----------------------------------------------------------------------------
# Fused kernel: one grid step == one batch element.
# Layouts (all channel-last 2-D tiles; rows = image row y, cols = x*C + c):
#   x_ref  : (H, W*Cin)            input image
#   m1_ref : (K, W*Cin,  W1*C1)    conv1 Toeplitz weights, one slab per kernel row dy
#   m2_ref : (K, W1p*C1, W2*C2)    conv2 Toeplitz weights
#   r*_ref : (2, H/2, H)           0/1 even/odd row-gather matrices (2x2 max pool)
#   c*_ref : (2, W*C, (W/2)*C)     0/1 even/odd col-gather matrices (2x2 max pool)
#   wl_ref : (H2p, W2p*C2, E)      Linear weight split per pooled row y, with the
#                                  torch (c, y, x) flatten order folded in
#   b*_ref : (1, cols)             biases pre-tiled to the channel-last column layout
# ----------------------------------------------------------------------------
def _fused_kernel(x_ref, m1_ref, b1_ref, r1_ref, c1_ref,
                  m2_ref, b2_ref, r2_ref, c2_ref, wl_ref, bl_ref, o_ref):
    f32 = jnp.float32
    K = m1_ref.shape[0]
    H1 = r1_ref.shape[2]        # conv1 output height
    H2 = r2_ref.shape[2]        # conv2 output height
    H2p = wl_ref.shape[0]       # pool2 output height

    x = x_ref[...]              # (H, W*Cin)

    # conv1 = sum_dy (row band shifted by dy) @ Toeplitz(dy), + bias, LeakyReLU
    acc1 = jnp.dot(x[0:H1, :], m1_ref[0], preferred_element_type=f32)
    for dy in range(1, K):
        acc1 = acc1 + jnp.dot(x[dy:dy + H1, :], m1_ref[dy], preferred_element_type=f32)
    a1 = _leaky(acc1 + b1_ref[...])                                   # (H1, W1*C1)

    # 2x2 max pool: max of even/odd row gathers, then even/odd column gathers
    rp1 = jnp.maximum(jnp.dot(r1_ref[0], a1, preferred_element_type=f32),
                      jnp.dot(r1_ref[1], a1, preferred_element_type=f32))
    p1 = jnp.maximum(jnp.dot(rp1, c1_ref[0], preferred_element_type=f32),
                     jnp.dot(rp1, c1_ref[1], preferred_element_type=f32))  # (H1p, W1p*C1)

    # conv2 + ReLU
    acc2 = jnp.dot(p1[0:H2, :], m2_ref[0], preferred_element_type=f32)
    for dy in range(1, K):
        acc2 = acc2 + jnp.dot(p1[dy:dy + H2, :], m2_ref[dy], preferred_element_type=f32)
    a2 = jnp.maximum(acc2 + b2_ref[...], 0.0)                         # (H2, W2*C2)

    # 2x2 max pool
    rp2 = jnp.maximum(jnp.dot(r2_ref[0], a2, preferred_element_type=f32),
                      jnp.dot(r2_ref[1], a2, preferred_element_type=f32))
    p2 = jnp.maximum(jnp.dot(rp2, c2_ref[0], preferred_element_type=f32),
                     jnp.dot(rp2, c2_ref[1], preferred_element_type=f32))  # (H2p, W2p*C2)

    # flatten + Linear (flatten permutation folded into wl), Dropout = id, LeakyReLU
    emb = jnp.dot(p2[0:1, :], wl_ref[0], preferred_element_type=f32)
    for y in range(1, H2p):
        emb = emb + jnp.dot(p2[y:y + 1, :], wl_ref[y], preferred_element_type=f32)
    o_ref[...] = _leaky(emb + bl_ref[...])                            # (1, E)


# ----------------------------------------------------------------------------
# Host-side (init-time) weight folding: exact re-layouts, no data-dependent work.
# ----------------------------------------------------------------------------
def _build_conv_mats(w, w_in):
    """Torch conv weight (Cout, Cin, K, K) -> (K, w_in*Cin, w_out*Cout) Toeplitz slabs."""
    w = np.asarray(w, np.float32)
    cout, cin, k, _ = w.shape
    w_out = w_in - k + 1
    m = np.zeros((k, w_in * cin, w_out * cout), np.float32)
    for dy in range(k):
        for dx in range(k):
            blk = w[:, :, dy, dx].T                       # (cin, cout)
            for xo in range(w_out):
                xi = xo + dx
                m[dy, xi * cin:(xi + 1) * cin, xo * cout:(xo + 1) * cout] = blk
    return m


def _build_pool_mats(h_in, w_in, c):
    """0/1 gather matrices for a 2x2/stride-2 max pool on (h, w*c) channel-last tiles."""
    h_out, w_out = h_in // 2, w_in // 2
    r = np.zeros((2, h_out, h_in), np.float32)
    r[0, np.arange(h_out), 2 * np.arange(h_out)] = 1.0
    r[1, np.arange(h_out), 2 * np.arange(h_out) + 1] = 1.0
    cm = np.zeros((2, w_in * c, w_out * c), np.float32)
    for j in range(w_out):
        for ch in range(c):
            cm[0, (2 * j) * c + ch, j * c + ch] = 1.0
            cm[1, (2 * j + 1) * c + ch, j * c + ch] = 1.0
    return r, cm


def _build_linear_mats(wl, c, hs, ws):
    """Torch Linear weight (E, c*hs*ws) -> (hs, ws*c, E), folding the torch (c, y, x)
    flatten order into the kernel's per-row (x*C + c) column layout."""
    wl = np.asarray(wl, np.float32)
    e = wl.shape[0]
    out = np.zeros((hs, ws * c, e), np.float32)
    for y in range(hs):
        for x in range(ws):
            for ch in range(c):
                out[y, x * c + ch, :] = wl[:, ch * hs * ws + y * ws + x]
    return out


def prepare_params(w1, b1, w2, b2, wl, bl, h, w, cin):
    """Fold torch-convention weights into MXU-friendly matrices (exact, eval mode)."""
    w1 = np.asarray(w1, np.float32); b1 = np.asarray(b1, np.float32)
    w2 = np.asarray(w2, np.float32); b2 = np.asarray(b2, np.float32)
    wl = np.asarray(wl, np.float32); bl = np.asarray(bl, np.float32)
    k = w1.shape[2]
    cout1, cout2 = w1.shape[0], w2.shape[0]
    h1, w1o = h - k + 1, w - k + 1               # conv1 output
    h1p, w1p = h1 // 2, w1o // 2                 # pool1 output
    h2, w2o = h1p - k + 1, w1p - k + 1           # conv2 output
    h2p, w2p = h2 // 2, w2o // 2                 # pool2 output

    m1 = _build_conv_mats(w1, w)                 # (k, w*cin,     w1o*cout1)
    m2 = _build_conv_mats(w2, w1p)               # (k, w1p*cout1, w2o*cout2)
    b1v = np.tile(b1, w1o)[None, :]
    b2v = np.tile(b2, w2o)[None, :]
    r1, cp1 = _build_pool_mats(h1, w1o, cout1)
    r2, cp2 = _build_pool_mats(h2, w2o, cout2)
    wlm = _build_linear_mats(wl, cout2, h2p, w2p)
    blv = bl[None, :]

    to = lambda a: jnp.asarray(a, jnp.float32)
    raw = dict(m1=m1, b1=b1v, r1=r1, c1=cp1, m2=m2, b2=b2v, r2=r2, c2=cp2,
               wl=wlm, bl=blv)
    return {name: to(v) for name, v in raw.items()}


def _full_spec(arr):
    """Whole-array VMEM block with a constant index map (DMA'd once across the grid)."""
    n = arr.ndim
    return pl.BlockSpec(arr.shape, lambda i, _n=n: (0,) * _n)


def data_transform_forward(X, params):
    """X: (B, Cin, H, W) -> (B, d_embedding), eval-mode DataTransformBlock forward."""
    b, cin, h, w = X.shape
    d_emb = params["bl"].shape[1]
    # channel-last layout plumbing outside the kernel: (B, H, W*Cin)
    x_cl = jnp.transpose(X, (0, 2, 3, 1)).reshape(b, h, w * cin)

    order = ("m1", "b1", "r1", "c1", "m2", "b2", "r2", "c2", "wl", "bl")
    weight_args = tuple(params[name] for name in order)

    in_specs = [pl.BlockSpec((None, h, w * cin), lambda i: (i, 0, 0))]
    in_specs += [_full_spec(a) for a in weight_args]

    out = pl.pallas_call(
        _fused_kernel,
        out_shape=jax.ShapeDtypeStruct((b, 1, d_emb), jnp.float32),
        grid_spec=pltpu.PrefetchScalarGridSpec(
            num_scalar_prefetch=0,
            grid=(b,),
            in_specs=in_specs,
            out_specs=pl.BlockSpec((None, 1, d_emb), lambda i: (i, 0, 0)),
        ),
        compiler_params=pltpu.CompilerParams(dimension_semantics=("parallel",)),
    )(x_cl, *weight_args)
    return out.reshape(b, d_emb)


# ----------------------------------------------------------------------------
# Plain-XLA reference of the same eval-mode forward (for an in-script sanity check).
# ----------------------------------------------------------------------------
def _maxpool2x2_nchw(y):
    return jnp.maximum(jnp.maximum(y[:, :, 0::2, 0::2], y[:, :, 0::2, 1::2]),
                       jnp.maximum(y[:, :, 1::2, 0::2], y[:, :, 1::2, 1::2]))


def reference_forward(X, w1, b1, w2, b2, wl, bl):
    dn = ("NCHW", "OIHW", "NCHW")
    hi = jax.lax.Precision.HIGHEST
    y = jax.lax.conv_general_dilated(X, w1, (1, 1), "VALID",
                                     dimension_numbers=dn, precision=hi)
    y = _leaky(y + b1[None, :, None, None])
    y = _maxpool2x2_nchw(y)
    y = jax.lax.conv_general_dilated(y, w2, (1, 1), "VALID",
                                     dimension_numbers=dn, precision=hi)
    y = jnp.maximum(y + b2[None, :, None, None], 0.0)
    y = _maxpool2x2_nchw(y)
    flat = y.reshape(y.shape[0], -1)
    e = jnp.dot(flat, wl.T, precision=hi) + bl[None, :]
    return _leaky(e)


if __name__ == "__main__":
    # Shapes implied by the module's 'cnn' extractor on a 28x28 single-channel input:
    # conv1->24x24, pool->12x12, conv2->8x8, pool->4x4  =>  d_reshape = 50*4*4 = 800.
    B, Cin, H, W = 2, 1, 28, 28
    d_reshape = 50 * 4 * 4
    d_embedding = 128

    key = jax.random.PRNGKey(0)
    kx, k1, k2, k3, k4, k5, k6 = jax.random.split(key, 7)

    X = jax.random.normal(kx, (B, Cin, H, W), jnp.float32)

    def uinit(k, shape, fan_in):
        bound = 1.0 / float(np.sqrt(fan_in))
        return jax.random.uniform(k, shape, jnp.float32, -bound, bound)

    w1 = uinit(k1, (20, Cin, 5, 5), Cin * 25)        # torch Conv2d conventions
    b1 = uinit(k2, (20,), Cin * 25)
    w2 = uinit(k3, (50, 20, 5, 5), 20 * 25)
    b2 = uinit(k4, (50,), 20 * 25)
    wl = uinit(k5, (d_embedding, d_reshape), d_reshape)   # torch Linear (out, in)
    bl = uinit(k6, (d_embedding,), d_reshape)

    params = prepare_params(w1, b1, w2, b2, wl, bl, H, W, Cin)

    out = data_transform_forward(X, params)
    out = jax.block_until_ready(out)
    assert out.shape == (B, d_embedding)

    # Sanity-check the fused kernel against the plain-XLA forward.
    ref = jax.block_until_ready(reference_forward(X, w1, b1, w2, b2, wl, bl))
    np.testing.assert_allclose(np.asarray(out), np.asarray(ref), rtol=2e-2, atol=2e-2)

    print("KERNEL_OK")
</pallas_src>

<mosaic_0001>
module attributes {stable_mosaic.version = 11 : i64} {
  func.func @_fused_kernel(%arg0: i32, %arg1: memref<1x28x28xf32, #tpu.memory_space<vmem>>, %arg2: memref<5x28x480xf32, #tpu.memory_space<vmem>>, %arg3: memref<1x480xf32, #tpu.memory_space<vmem>>, %arg4: memref<2x12x24xf32, #tpu.memory_space<vmem>>, %arg5: memref<2x480x240xf32, #tpu.memory_space<vmem>>, %arg6: memref<5x240x400xf32, #tpu.memory_space<vmem>>, %arg7: memref<1x400xf32, #tpu.memory_space<vmem>>, %arg8: memref<2x4x8xf32, #tpu.memory_space<vmem>>, %arg9: memref<2x400x200xf32, #tpu.memory_space<vmem>>, %arg10: memref<4x200x128xf32, #tpu.memory_space<vmem>>, %arg11: memref<1x128xf32, #tpu.memory_space<vmem>>, %arg12: memref<1x1x128xf32, #tpu.memory_space<vmem>>) attributes {dimension_semantics = [#tpu.dimension_semantics<parallel>], iteration_bounds = array<i64: 2>, scalar_prefetch = 0 : i64, scratch_operands = 0 : i64, tpu.core_type = #tpu.core_type<tc>, window_params = [{transform_indices = @transform_0, window_bounds = array<i64: 1, 28, 28>}, {pipeline_mode = #tpu.pipeline_mode<synchronous>, transform_indices = @transform_1, window_bounds = array<i64: 5, 28, 480>}, {pipeline_mode = #tpu.pipeline_mode<synchronous>, transform_indices = @transform_2, window_bounds = array<i64: 1, 480>}, {pipeline_mode = #tpu.pipeline_mode<synchronous>, transform_indices = @transform_3, window_bounds = array<i64: 2, 12, 24>}, {pipeline_mode = #tpu.pipeline_mode<synchronous>, transform_indices = @transform_4, window_bounds = array<i64: 2, 480, 240>}, {pipeline_mode = #tpu.pipeline_mode<synchronous>, transform_indices = @transform_5, window_bounds = array<i64: 5, 240, 400>}, {pipeline_mode = #tpu.pipeline_mode<synchronous>, transform_indices = @transform_6, window_bounds = array<i64: 1, 400>}, {pipeline_mode = #tpu.pipeline_mode<synchronous>, transform_indices = @transform_7, window_bounds = array<i64: 2, 4, 8>}, {pipeline_mode = #tpu.pipeline_mode<synchronous>, transform_indices = @transform_8, window_bounds = array<i64: 2, 400, 200>}, {pipeline_mode = #tpu.pipeline_mode<synchronous>, transform_indices = @transform_9, window_bounds = array<i64: 4, 200, 128>}, {pipeline_mode = #tpu.pipeline_mode<synchronous>, transform_indices = @transform_10, window_bounds = array<i64: 1, 128>}, {transform_indices = @transform_11, window_bounds = array<i64: 1, 1, 128>}]} {
    %c0 = arith.constant 0 : index
    %c0_0 = arith.constant 0 : index
    %c0_1 = arith.constant 0 : index
    %0 = vector.load %arg1[%c0, %c0_0, %c0_1] : memref<1x28x28xf32, #tpu.memory_space<vmem>>, vector<1x28x28xf32>
    %1 = vector.shape_cast %0 : vector<1x28x28xf32> to vector<28x28xf32>
    %2 = vector.extract_strided_slice %1 {offsets = [0, 0], sizes = [24, 28], strides = [1, 1]} : vector<28x28xf32> to vector<24x28xf32>
    %c0_2 = arith.constant 0 : index
    %c0_3 = arith.constant 0 : index
    %c0_4 = arith.constant 0 : index
    %3 = vector.load %arg2[%c0_2, %c0_3, %c0_4] : memref<5x28x480xf32, #tpu.memory_space<vmem>>, vector<1x28x480xf32>
    %4 = vector.shape_cast %3 : vector<1x28x480xf32> to vector<28x480xf32>
    %cst = arith.constant dense<0.000000e+00> : vector<24x480xf32>
    %5 = tpu.matmul %2, %4, %cst {dimension_numbers = #tpu.dot_dimension_numbers<[1], [0], [0], [1], [0, 0, 1, 1], [], []>} : vector<24x28xf32>, vector<28x480xf32>, vector<24x480xf32> -> vector<24x480xf32>
    %6 = vector.extract_strided_slice %1 {offsets = [1, 0], sizes = [24, 28], strides = [1, 1]} : vector<28x28xf32> to vector<24x28xf32>
    %c1 = arith.constant 1 : index
    %c0_5 = arith.constant 0 : index
    %c0_6 = arith.constant 0 : index
    %7 = vector.load %arg2[%c1, %c0_5, %c0_6] : memref<5x28x480xf32, #tpu.memory_space<vmem>>, vector<1x28x480xf32>
    %8 = vector.shape_cast %7 : vector<1x28x480xf32> to vector<28x480xf32>
    %cst_7 = arith.constant dense<0.000000e+00> : vector<24x480xf32>
    %9 = tpu.matmul %6, %8, %cst_7 {dimension_numbers = #tpu.dot_dimension_numbers<[1], [0], [0], [1], [0, 0, 1, 1], [], []>} : vector<24x28xf32>, vector<28x480xf32>, vector<24x480xf32> -> vector<24x480xf32>
    %10 = arith.addf %5, %9 : vector<24x480xf32>
    %11 = vector.extract_strided_slice %1 {offsets = [2, 0], sizes = [24, 28], strides = [1, 1]} : vector<28x28xf32> to vector<24x28xf32>
    %c2 = arith.constant 2 : index
    %c0_8 = arith.constant 0 : index
    %c0_9 = arith.constant 0 : index
    %12 = vector.load %arg2[%c2, %c0_8, %c0_9] : memref<5x28x480xf32, #tpu.memory_space<vmem>>, vector<1x28x480xf32>
    %13 = vector.shape_cast %12 : vector<1x28x480xf32> to vector<28x480xf32>
    %cst_10 = arith.constant dense<0.000000e+00> : vector<24x480xf32>
    %14 = tpu.matmul %11, %13, %cst_10 {dimension_numbers = #tpu.dot_dimension_numbers<[1], [0], [0], [1], [0, 0, 1, 1], [], []>} : vector<24x28xf32>, vector<28x480xf32>, vector<24x480xf32> -> vector<24x480xf32>
    %15 = arith.addf %10, %14 : vector<24x480xf32>
    %16 = vector.extract_strided_slice %1 {offsets = [3, 0], sizes = [24, 28], strides = [1, 1]} : vector<28x28xf32> to vector<24x28xf32>
    %c3 = arith.constant 3 : index
    %c0_11 = arith.constant 0 : index
    %c0_12 = arith.constant 0 : index
    %17 = vector.load %arg2[%c3, %c0_11, %c0_12] : memref<5x28x480xf32, #tpu.memory_space<vmem>>, vector<1x28x480xf32>
    %18 = vector.shape_cast %17 : vector<1x28x480xf32> to vector<28x480xf32>
    %cst_13 = arith.constant dense<0.000000e+00> : vector<24x480xf32>
    %19 = tpu.matmul %16, %18, %cst_13 {dimension_numbers = #tpu.dot_dimension_numbers<[1], [0], [0], [1], [0, 0, 1, 1], [], []>} : vector<24x28xf32>, vector<28x480xf32>, vector<24x480xf32> -> vector<24x480xf32>
    %20 = arith.addf %15, %19 : vector<24x480xf32>
    %21 = vector.extract_strided_slice %1 {offsets = [4, 0], sizes = [24, 28], strides = [1, 1]} : vector<28x28xf32> to vector<24x28xf32>
    %c4 = arith.constant 4 : index
    %c0_14 = arith.constant 0 : index
    %c0_15 = arith.constant 0 : index
    %22 = vector.load %arg2[%c4, %c0_14, %c0_15] : memref<5x28x480xf32, #tpu.memory_space<vmem>>, vector<1x28x480xf32>
    %23 = vector.shape_cast %22 : vector<1x28x480xf32> to vector<28x480xf32>
    %cst_16 = arith.constant dense<0.000000e+00> : vector<24x480xf32>
    %24 = tpu.matmul %21, %23, %cst_16 {dimension_numbers = #tpu.dot_dimension_numbers<[1], [0], [0], [1], [0, 0, 1, 1], [], []>} : vector<24x28xf32>, vector<28x480xf32>, vector<24x480xf32> -> vector<24x480xf32>
    %25 = arith.addf %20, %24 : vector<24x480xf32>
    %c0_17 = arith.constant 0 : index
    %c0_18 = arith.constant 0 : index
    %26 = vector.load %arg3[%c0_17, %c0_18] : memref<1x480xf32, #tpu.memory_space<vmem>>, vector<1x480xf32>
    %27 = vector.broadcast %26 : vector<1x480xf32> to vector<24x480xf32>
    %28 = arith.addf %25, %27 : vector<24x480xf32>
    %cst_19 = arith.constant 0.000000e+00 : f32
    %29 = vector.broadcast %cst_19 : f32 to vector<24x480xf32>
    %30 = arith.cmpf oge, %28, %29 : vector<24x480xf32>
    %cst_20 = arith.constant 0.00999999977 : f32
    %31 = vector.broadcast %cst_20 : f32 to vector<24x480xf32>
    %32 = arith.mulf %31, %28 : vector<24x480xf32>
    %33 = arith.select %30, %28, %32 : vector<24x480xi1>, vector<24x480xf32>
    %c0_21 = arith.constant 0 : index
    %c0_22 = arith.constant 0 : index
    %c0_23 = arith.constant 0 : index
    %34 = vector.load %arg4[%c0_21, %c0_22, %c0_23] : memref<2x12x24xf32, #tpu.memory_space<vmem>>, vector<1x12x24xf32>
    %35 = vector.shape_cast %34 : vector<1x12x24xf32> to vector<12x24xf32>
    %cst_24 = arith.constant dense<0.000000e+00> : vector<12x480xf32>
    %36 = tpu.matmul %35, %33, %cst_24 {dimension_numbers = #tpu.dot_dimension_numbers<[1], [0], [0], [1], [0, 0, 1, 1], [], []>} : vector<12x24xf32>, vector<24x480xf32>, vector<12x480xf32> -> vector<12x480xf32>
    %c1_25 = arith.constant 1 : index
    %c0_26 = arith.constant 0 : index
    %c0_27 = arith.constant 0 : index
    %37 = vector.load %arg4[%c1_25, %c0_26, %c0_27] : memref<2x12x24xf32, #tpu.memory_space<vmem>>, vector<1x12x24xf32>
    %38 = vector.shape_cast %37 : vector<1x12x24xf32> to vector<12x24xf32>
    %cst_28 = arith.constant dense<0.000000e+00> : vector<12x480xf32>
    %39 = tpu.matmul %38, %33, %cst_28 {dimension_numbers = #tpu.dot_dimension_numbers<[1], [0], [0], [1], [0, 0, 1, 1], [], []>} : vector<12x24xf32>, vector<24x480xf32>, vector<12x480xf32> -> vector<12x480xf32>
    %40 = arith.maximumf %36, %39 : vector<12x480xf32>
    %c0_29 = arith.constant 0 : index
    %c0_30 = arith.constant 0 : index
    %c0_31 = arith.constant 0 : index
    %41 = vector.load %arg5[%c0_29, %c0_30, %c0_31] : memref<2x480x240xf32, #tpu.memory_space<vmem>>, vector<1x480x240xf32>
    %42 = vector.shape_cast %41 : vector<1x480x240xf32> to vector<480x240xf32>
    %cst_32 = arith.constant dense<0.000000e+00> : vector<12x240xf32>
    %43 = tpu.matmul %40, %42, %cst_32 {dimension_numbers = #tpu.dot_dimension_numbers<[1], [0], [0], [1], [0, 0, 1, 1], [], []>} : vector<12x480xf32>, vector<480x240xf32>, vector<12x240xf32> -> vector<12x240xf32>
    %c1_33 = arith.constant 1 : index
    %c0_34 = arith.constant 0 : index
    %c0_35 = arith.constant 0 : index
    %44 = vector.load %arg5[%c1_33, %c0_34, %c0_35] : memref<2x480x240xf32, #tpu.memory_space<vmem>>, vector<1x480x240xf32>
    %45 = vector.shape_cast %44 : vector<1x480x240xf32> to vector<480x240xf32>
    %cst_36 = arith.constant dense<0.000000e+00> : vector<12x240xf32>
    %46 = tpu.matmul %40, %45, %cst_36 {dimension_numbers = #tpu.dot_dimension_numbers<[1], [0], [0], [1], [0, 0, 1, 1], [], []>} : vector<12x480xf32>, vector<480x240xf32>, vector<12x240xf32> -> vector<12x240xf32>
    %47 = arith.maximumf %43, %46 : vector<12x240xf32>
    %48 = vector.extract_strided_slice %47 {offsets = [0, 0], sizes = [8, 240], strides = [1, 1]} : vector<12x240xf32> to vector<8x240xf32>
    %c0_37 = arith.constant 0 : index
    %c0_38 = arith.constant 0 : index
    %c0_39 = arith.constant 0 : index
    %49 = vector.load %arg6[%c0_37, %c0_38, %c0_39] : memref<5x240x400xf32, #tpu.memory_space<vmem>>, vector<1x240x400xf32>
    %50 = vector.shape_cast %49 : vector<1x240x400xf32> to vector<240x400xf32>
    %cst_40 = arith.constant dense<0.000000e+00> : vector<8x400xf32>
    %51 = tpu.matmul %48, %50, %cst_40 {dimension_numbers = #tpu.dot_dimension_numbers<[1], [0], [0], [1], [0, 0, 1, 1], [], []>} : vector<8x240xf32>, vector<240x400xf32>, vector<8x400xf32> -> vector<8x400xf32>
    %52 = vector.extract_strided_slice %47 {offsets = [1, 0], sizes = [8, 240], strides = [1, 1]} : vector<12x240xf32> to vector<8x240xf32>
    %c1_41 = arith.constant 1 : index
    %c0_42 = arith.constant 0 : index
    %c0_43 = arith.constant 0 : index
    %53 = vector.load %arg6[%c1_41, %c0_42, %c0_43] : memref<5x240x400xf32, #tpu.memory_space<vmem>>, vector<1x240x400xf32>
    %54 = vector.shape_cast %53 : vector<1x240x400xf32> to vector<240x400xf32>
    %cst_44 = arith.constant dense<0.000000e+00> : vector<8x400xf32>
    %55 = tpu.matmul %52, %54, %cst_44 {dimension_numbers = #tpu.dot_dimension_numbers<[1], [0], [0], [1], [0, 0, 1, 1], [], []>} : vector<8x240xf32>, vector<240x400xf32>, vector<8x400xf32> -> vector<8x400xf32>
    %56 = arith.addf %51, %55 : vector<8x400xf32>
    %57 = vector.extract_strided_slice %47 {offsets = [2, 0], sizes = [8, 240], strides = [1, 1]} : vector<12x240xf32> to vector<8x240xf32>
    %c2_45 = arith.constant 2 : index
    %c0_46 = arith.constant 0 : index
    %c0_47 = arith.constant 0 : index
    %58 = vector.load %arg6[%c2_45, %c0_46, %c0_47] : memref<5x240x400xf32, #tpu.memory_space<vmem>>, vector<1x240x400xf32>
    %59 = vector.shape_cast %58 : vector<1x240x400xf32> to vector<240x400xf32>
    %cst_48 = arith.constant dense<0.000000e+00> : vector<8x400xf32>
    %60 = tpu.matmul %57, %59, %cst_48 {dimension_numbers = #tpu.dot_dimension_numbers<[1], [0], [0], [1], [0, 0, 1, 1], [], []>} : vector<8x240xf32>, vector<240x400xf32>, vector<8x400xf32> -> vector<8x400xf32>
    %61 = arith.addf %56, %60 : vector<8x400xf32>
    %62 = vector.extract_strided_slice %47 {offsets = [3, 0], sizes = [8, 240], strides = [1, 1]} : vector<12x240xf32> to vector<8x240xf32>
    %c3_49 = arith.constant 3 : index
    %c0_50 = arith.constant 0 : index
    %c0_51 = arith.constant 0 : index
    %63 = vector.load %arg6[%c3_49, %c0_50, %c0_51] : memref<5x240x400xf32, #tpu.memory_space<vmem>>, vector<1x240x400xf32>
    %64 = vector.shape_cast %63 : vector<1x240x400xf32> to vector<240x400xf32>
    %cst_52 = arith.constant dense<0.000000e+00> : vector<8x400xf32>
    %65 = tpu.matmul %62, %64, %cst_52 {dimension_numbers = #tpu.dot_dimension_numbers<[1], [0], [0], [1], [0, 0, 1, 1], [], []>} : vector<8x240xf32>, vector<240x400xf32>, vector<8x400xf32> -> vector<8x400xf32>
    %66 = arith.addf %61, %65 : vector<8x400xf32>
    %67 = vector.extract_strided_slice %47 {offsets = [4, 0], sizes = [8, 240], strides = [1, 1]} : vector<12x240xf32> to vector<8x240xf32>
    %c4_53 = arith.constant 4 : index
    %c0_54 = arith.constant 0 : index
    %c0_55 = arith.constant 0 : index
    %68 = vector.load %arg6[%c4_53, %c0_54, %c0_55] : memref<5x240x400xf32, #tpu.memory_space<vmem>>, vector<1x240x400xf32>
    %69 = vector.shape_cast %68 : vector<1x240x400xf32> to vector<240x400xf32>
    %cst_56 = arith.constant dense<0.000000e+00> : vector<8x400xf32>
    %70 = tpu.matmul %67, %69, %cst_56 {dimension_numbers = #tpu.dot_dimension_numbers<[1], [0], [0], [1], [0, 0, 1, 1], [], []>} : vector<8x240xf32>, vector<240x400xf32>, vector<8x400xf32> -> vector<8x400xf32>
    %71 = arith.addf %66, %70 : vector<8x400xf32>
    %c0_57 = arith.constant 0 : index
    %c0_58 = arith.constant 0 : index
    %72 = vector.load %arg7[%c0_57, %c0_58] : memref<1x400xf32, #tpu.memory_space<vmem>>, vector<1x400xf32>
    %73 = vector.broadcast %72 : vector<1x400xf32> to vector<8x400xf32>
    %74 = arith.addf %71, %73 : vector<8x400xf32>
    %cst_59 = arith.constant 0.000000e+00 : f32
    %75 = vector.broadcast %cst_59 : f32 to vector<8x400xf32>
    %76 = arith.maximumf %74, %75 : vector<8x400xf32>
    %c0_60 = arith.constant 0 : index
    %c0_61 = arith.constant 0 : index
    %c0_62 = arith.constant 0 : index
    %77 = vector.load %arg8[%c0_60, %c0_61, %c0_62] : memref<2x4x8xf32, #tpu.memory_space<vmem>>, vector<1x4x8xf32>
    %78 = vector.shape_cast %77 : vector<1x4x8xf32> to vector<4x8xf32>
    %cst_63 = arith.constant dense<0.000000e+00> : vector<4x400xf32>
    %79 = tpu.matmul %78, %76, %cst_63 {dimension_numbers = #tpu.dot_dimension_numbers<[1], [0], [0], [1], [0, 0, 1, 1], [], []>} : vector<4x8xf32>, vector<8x400xf32>, vector<4x400xf32> -> vector<4x400xf32>
    %c1_64 = arith.constant 1 : index
    %c0_65 = arith.constant 0 : index
    %c0_66 = arith.constant 0 : index
    %80 = vector.load %arg8[%c1_64, %c0_65, %c0_66] : memref<2x4x8xf32, #tpu.memory_space<vmem>>, vector<1x4x8xf32>
    %81 = vector.shape_cast %80 : vector<1x4x8xf32> to vector<4x8xf32>
    %cst_67 = arith.constant dense<0.000000e+00> : vector<4x400xf32>
    %82 = tpu.matmul %81, %76, %cst_67 {dimension_numbers = #tpu.dot_dimension_numbers<[1], [0], [0], [1], [0, 0, 1, 1], [], []>} : vector<4x8xf32>, vector<8x400xf32>, vector<4x400xf32> -> vector<4x400xf32>
    %83 = arith.maximumf %79, %82 : vector<4x400xf32>
    %c0_68 = arith.constant 0 : index
    %c0_69 = arith.constant 0 : index
    %c0_70 = arith.constant 0 : index
    %84 = vector.load %arg9[%c0_68, %c0_69, %c0_70] : memref<2x400x200xf32, #tpu.memory_space<vmem>>, vector<1x400x200xf32>
    %85 = vector.shape_cast %84 : vector<1x400x200xf32> to vector<400x200xf32>
    %cst_71 = arith.constant dense<0.000000e+00> : vector<4x200xf32>
    %86 = tpu.matmul %83, %85, %cst_71 {dimension_numbers = #tpu.dot_dimension_numbers<[1], [0], [0], [1], [0, 0, 1, 1], [], []>} : vector<4x400xf32>, vector<400x200xf32>, vector<4x200xf32> -> vector<4x200xf32>
    %c1_72 = arith.constant 1 : index
    %c0_73 = arith.constant 0 : index
    %c0_74 = arith.constant 0 : index
    %87 = vector.load %arg9[%c1_72, %c0_73, %c0_74] : memref<2x400x200xf32, #tpu.memory_space<vmem>>, vector<1x400x200xf32>
    %88 = vector.shape_cast %87 : vector<1x400x200xf32> to vector<400x200xf32>
    %cst_75 = arith.constant dense<0.000000e+00> : vector<4x200xf32>
    %89 = tpu.matmul %83, %88, %cst_75 {dimension_numbers = #tpu.dot_dimension_numbers<[1], [0], [0], [1], [0, 0, 1, 1], [], []>} : vector<4x400xf32>, vector<400x200xf32>, vector<4x200xf32> -> vector<4x200xf32>
    %90 = arith.maximumf %86, %89 : vector<4x200xf32>
    %91 = vector.extract_strided_slice %90 {offsets = [0, 0], sizes = [1, 200], strides = [1, 1]} : vector<4x200xf32> to vector<1x200xf32>
    %c0_76 = arith.constant 0 : index
    %c0_77 = arith.constant 0 : index
    %c0_78 = arith.constant 0 : index
    %92 = vector.load %arg10[%c0_76, %c0_77, %c0_78] : memref<4x200x128xf32, #tpu.memory_space<vmem>>, vector<1x200x128xf32>
    %93 = vector.shape_cast %92 : vector<1x200x128xf32> to vector<200x128xf32>
    %cst_79 = arith.constant dense<0.000000e+00> : vector<1x128xf32>
    %94 = tpu.matmul %91, %93, %cst_79 {dimension_numbers = #tpu.dot_dimension_numbers<[1], [0], [0], [1], [0, 0, 1, 1], [], []>} : vector<1x200xf32>, vector<200x128xf32>, vector<1x128xf32> -> vector<1x128xf32>
    %95 = vector.extract_strided_slice %90 {offsets = [1, 0], sizes = [1, 200], strides = [1, 1]} : vector<4x200xf32> to vector<1x200xf32>
    %c1_80 = arith.constant 1 : index
    %c0_81 = arith.constant 0 : index
    %c0_82 = arith.constant 0 : index
    %96 = vector.load %arg10[%c1_80, %c0_81, %c0_82] : memref<4x200x128xf32, #tpu.memory_space<vmem>>, vector<1x200x128xf32>
    %97 = vector.shape_cast %96 : vector<1x200x128xf32> to vector<200x128xf32>
    %cst_83 = arith.constant dense<0.000000e+00> : vector<1x128xf32>
    %98 = tpu.matmul %95, %97, %cst_83 {dimension_numbers = #tpu.dot_dimension_numbers<[1], [0], [0], [1], [0, 0, 1, 1], [], []>} : vector<1x200xf32>, vector<200x128xf32>, vector<1x128xf32> -> vector<1x128xf32>
    %99 = arith.addf %94, %98 : vector<1x128xf32>
    %100 = vector.extract_strided_slice %90 {offsets = [2, 0], sizes = [1, 200], strides = [1, 1]} : vector<4x200xf32> to vector<1x200xf32>
    %c2_84 = arith.constant 2 : index
    %c0_85 = arith.constant 0 : index
    %c0_86 = arith.constant 0 : index
    %101 = vector.load %arg10[%c2_84, %c0_85, %c0_86] : memref<4x200x128xf32, #tpu.memory_space<vmem>>, vector<1x200x128xf32>
    %102 = vector.shape_cast %101 : vector<1x200x128xf32> to vector<200x128xf32>
    %cst_87 = arith.constant dense<0.000000e+00> : vector<1x128xf32>
    %103 = tpu.matmul %100, %102, %cst_87 {dimension_numbers = #tpu.dot_dimension_numbers<[1], [0], [0], [1], [0, 0, 1, 1], [], []>} : vector<1x200xf32>, vector<200x128xf32>, vector<1x128xf32> -> vector<1x128xf32>
    %104 = arith.addf %99, %103 : vector<1x128xf32>
    %105 = vector.extract_strided_slice %90 {offsets = [3, 0], sizes = [1, 200], strides = [1, 1]} : vector<4x200xf32> to vector<1x200xf32>
    %c3_88 = arith.constant 3 : index
    %c0_89 = arith.constant 0 : index
    %c0_90 = arith.constant 0 : index
    %106 = vector.load %arg10[%c3_88, %c0_89, %c0_90] : memref<4x200x128xf32, #tpu.memory_space<vmem>>, vector<1x200x128xf32>
    %107 = vector.shape_cast %106 : vector<1x200x128xf32> to vector<200x128xf32>
    %cst_91 = arith.constant dense<0.000000e+00> : vector<1x128xf32>
    %108 = tpu.matmul %105, %107, %cst_91 {dimension_numbers = #tpu.dot_dimension_numbers<[1], [0], [0], [1], [0, 0, 1, 1], [], []>} : vector<1x200xf32>, vector<200x128xf32>, vector<1x128xf32> -> vector<1x128xf32>
    %109 = arith.addf %104, %108 : vector<1x128xf32>
    %c0_92 = arith.constant 0 : index
    %c0_93 = arith.constant 0 : index
    %110 = vector.load %arg11[%c0_92, %c0_93] : memref<1x128xf32, #tpu.memory_space<vmem>>, vector<1x128xf32>
    %111 = arith.addf %109, %110 : vector<1x128xf32>
    %cst_94 = arith.constant 0.000000e+00 : f32
    %112 = vector.broadcast %cst_94 : f32 to vector<1x128xf32>
    %113 = arith.cmpf oge, %111, %112 : vector<1x128xf32>
    %cst_95 = arith.constant 0.00999999977 : f32
    %114 = vector.broadcast %cst_95 : f32 to vector<1x128xf32>
    %115 = arith.mulf %114, %111 : vector<1x128xf32>
    %116 = arith.select %113, %111, %115 : vector<1x128xi1>, vector<1x128xf32>
    %c0_96 = arith.constant 0 : index
    %c0_97 = arith.constant 0 : index
    %c0_98 = arith.constant 0 : index
    %117 = vector.load %arg12[%c0_96, %c0_97, %c0_98] : memref<1x1x128xf32, #tpu.memory_space<vmem>>, vector<1x1x128xf32>
    %118 = vector.shape_cast %117 : vector<1x1x128xf32> to vector<1x128xf32>
    %119 = vector.shape_cast %116 : vector<1x128xf32> to vector<1x1x128xf32>
    tpu.vector_store %arg12[%c0_96, %c0_97, %c0_98], %119 {strides = array<i32>} : memref<1x1x128xf32, #tpu.memory_space<vmem>>, vector<1x1x128xf32>,
    return
  }
  func.func @transform_0(%arg0: i32) -> (i32, i32, i32) {
    %c0_i32 = arith.constant 0 : i32
    %c0_i32_0 = arith.constant 0 : i32
    %c0_i32_1 = arith.constant 0 : i32
    return %arg0, %c0_i32, %c0_i32_0 : i32, i32, i32
  }
  func.func @transform_1(%arg0: i32) -> (i32, i32, i32) {
    %c0_i32 = arith.constant 0 : i32
    %c0_i32_0 = arith.constant 0 : i32
    %c0_i32_1 = arith.constant 0 : i32
    %c0_i32_2 = arith.constant 0 : i32
    return %c0_i32, %c0_i32_0, %c0_i32_1 : i32, i32, i32
  }
  func.func @transform_2(%arg0: i32) -> (i32, i32) {
    %c0_i32 = arith.constant 0 : i32
    %c0_i32_0 = arith.constant 0 : i32
    %c0_i32_1 = arith.constant 0 : i32
    return %c0_i32, %c0_i32_0 : i32, i32
  }
  func.func @transform_3(%arg0: i32) -> (i32, i32, i32) {
    %c0_i32 = arith.constant 0 : i32
    %c0_i32_0 = arith.constant 0 : i32
    %c0_i32_1 = arith.constant 0 : i32
    %c0_i32_2 = arith.constant 0 : i32
    return %c0_i32, %c0_i32_0, %c0_i32_1 : i32, i32, i32
  }
  func.func @transform_4(%arg0: i32) -> (i32, i32, i32) {
    %c0_i32 = arith.constant 0 : i32
    %c0_i32_0 = arith.constant 0 : i32
    %c0_i32_1 = arith.constant 0 : i32
    %c0_i32_2 = arith.constant 0 : i32
    return %c0_i32, %c0_i32_0, %c0_i32_1 : i32, i32, i32
  }
  func.func @transform_5(%arg0: i32) -> (i32, i32, i32) {
    %c0_i32 = arith.constant 0 : i32
    %c0_i32_0 = arith.constant 0 : i32
    %c0_i32_1 = arith.constant 0 : i32
    %c0_i32_2 = arith.constant 0 : i32
    return %c0_i32, %c0_i32_0, %c0_i32_1 : i32, i32, i32
  }
  func.func @transform_6(%arg0: i32) -> (i32, i32) {
    %c0_i32 = arith.constant 0 : i32
    %c0_i32_0 = arith.constant 0 : i32
    %c0_i32_1 = arith.constant 0 : i32
    return %c0_i32, %c0_i32_0 : i32, i32
  }
  func.func @transform_7(%arg0: i32) -> (i32, i32, i32) {
    %c0_i32 = arith.constant 0 : i32
    %c0_i32_0 = arith.constant 0 : i32
    %c0_i32_1 = arith.constant 0 : i32
    %c0_i32_2 = arith.constant 0 : i32
    return %c0_i32, %c0_i32_0, %c0_i32_1 : i32, i32, i32
  }
  func.func @transform_8(%arg0: i32) -> (i32, i32, i32) {
    %c0_i32 = arith.constant 0 : i32
    %c0_i32_0 = arith.constant 0 : i32
    %c0_i32_1 = arith.constant 0 : i32
    %c0_i32_2 = arith.constant 0 : i32
    return %c0_i32, %c0_i32_0, %c0_i32_1 : i32, i32, i32
  }
  func.func @transform_9(%arg0: i32) -> (i32, i32, i32) {
    %c0_i32 = arith.constant 0 : i32
    %c0_i32_0 = arith.constant 0 : i32
    %c0_i32_1 = arith.constant 0 : i32
    %c0_i32_2 = arith.constant 0 : i32
    return %c0_i32, %c0_i32_0, %c0_i32_1 : i32, i32, i32
  }
  func.func @transform_10(%arg0: i32) -> (i32, i32) {
    %c0_i32 = arith.constant 0 : i32
    %c0_i32_0 = arith.constant 0 : i32
    %c0_i32_1 = arith.constant 0 : i32
    return %c0_i32, %c0_i32_0 : i32, i32
  }
  func.func @transform_11(%arg0: i32) -> (i32, i32, i32) {
    %c0_i32 = arith.constant 0 : i32
    %c0_i32_0 = arith.constant 0 : i32
    %c0_i32_1 = arith.constant 0 : i32
    return %arg0, %c0_i32, %c0_i32_0 : i32, i32, i32
  }
}

</mosaic_0001>

<bundles_post_ra>
// kernel: tpu_custom_call.1
= control target key start
LH: loop header
LB: loop body
LE: loop exit
PB: predicated region body
PF: predicated region fallthrough
CT: control target
= control target key end

     0   :  { %16 = vsyncpa [#allocation3], 0  ;;  %s10378_s0 = inlined_call_operand.vmem [shape: f32[2,28,28], index: 0, kind: input, shape index: {}]   ;;  %s10379_s1 = inlined_call_operand.vmem [shape: f32[5,28,480], index: 1, kind: input, shape index: {}]   ;;  %s10380_s2 = inlined_call_operand.vmem [shape: f32[1,480], index: 2, kind: input, shape index: {}]   ;;  %s10381_s3 = inlined_call_operand.vmem [shape: f32[2,12,24], index: 3, kind: input, shape index: {}]   ;;  %s10382_s4 = inlined_call_operand.vmem [shape: f32[2,480,240], index: 4, kind: input, shape index: {}]   ;;  %s10383_s5 = inlined_call_operand.vmem [shape: f32[5,240,400], index: 5, kind: input, shape index: {}]   ;;  %s10384_s6 = inlined_call_operand.vmem [shape: f32[1,400], index: 6, kind: input, shape index: {}]   ;;  %s10385_s7 = inlined_call_operand.vmem [shape: f32[2,4,8], index: 7, kind: input, shape index: {}]   ;;  %s10386_s8 = inlined_call_operand.vmem [shape: f32[2,400,200], index: 8, kind: input, shape index: {}]   ;;  %s10387_s9 = inlined_call_operand.vmem [shape: f32[4,200,128], index: 9, kind: input, shape index: {}]   ;;  %s10388_s10 = inlined_call_operand.vmem [shape: f32[1,128], index: 10, kind: input, shape index: {}]   ;;  %s10389_s11 = inlined_call_operand.hbm [shape: f32[2,1,128], index: 11, kind: output, shape index: {}]  }
   0x1   :  { %18 = vsyncpa [#allocation3 + $0x1], 0  ;;  %s6194_s17 = smov 0   ;;  %s6196_s18 = smov 0  }
   0x2   :  { %s6198_s19 = smov 0   ;;  %s6200_s20 = smov 0  }
   0x3 LB: > { %10401 = sst [smem:[#allocation5_spill]] %s6126_s19  ;;  %s6215_s21 = sadd.s32 4294967295, %s6130_s20   ;;  %s6130_s20 = sphi %s6200_s20, %s10420_s20   ;;  %s6126_s19 = sphi %s6198_s19, %s10417_s19   ;;  %s6122_s18 = sphi %s6196_s18, %s10419_s18   ;;  %s6118_s17 = sphi %s6194_s17, %s10418_s17  }
   0x4   : > { %s5096_s22 = sadd.s32 4294967294, %s6130_s20   ;;  %s6219_s23 = sadd.s32 1, %s6130_s20  }
   0x5   : > { %s267_s24 = sadd.s32 1, %s6126_s19  ;;  %s264_s25 = ssub.s32 %s6130_s20, %s6219_s23 }
   0x6   : > { %p277_p0 = scmp.ne.s32.totalorder %s6126_s19, %s6122_s18  ;;  %p265_p1 = scmp.eq.s32.totalorder %s264_s25, 0 }
   0x7   : > { %p278_p2 = scmp.eq.s32.totalorder %s6215_s21, 1  ;;  %p283_p3 = scmp.ne.s32.totalorder %s6122_s18, %s6118_s17 }
   0x8   : > { %p284_p4 = scmp.eq.s32.totalorder %s5096_s22, 1  ;;  %p5099_p7 = scmp.ge.s32.totalorder %s6130_s20, 1 }
   0x9   : > { %s6230_s26 = scalar_select %p265_p1, %s6126_s19, %s267_s24  }
   0xa   : > { %p6232_p5 = por %p278_p2, %p277_p0  ;;  %p6236_p6 = por %p284_p4, %p283_p3 }
   0xb   : > { %10402 = sst [smem:[#allocation6_spill]] %s6230_s26  ;;  %p340_p8 = scmp.lt.s32.totalorder %s6130_s20, 3 }
   0xd   : > { %p341_p9 = pnand %p5099_p7, %p340_p8 }
   0xf   : > { %344 = sbr.rel (%p341_p9) target bundleno = 1969 (0x7b1), region = 64 }
  0x14   : > { %v5115_v0 = vld [vmem:[%s10379_s1 + $0xe8] sm:$0xf]  ;;  %vm440_vm0 = vcmask 1043456   ;;  %v5117_v1 = vld [vmem:[%s10379_s1 + $0xf8] sm:$0xf]  ;;  %v5110_v6 = vld [vmem:[%s10379_s1 + $0xc0] sm:$0xff] }
  0x15   : > { %v5111_v2 = vld [vmem:[%s10379_s1 + $0xc8] sm:$0xff]  ;;  %5118 = vmatprep.subr.msk.mxu0 %vm440_vm0, %v5115_v0  ;;  %5123 = vmatprep.subr.msk.mxu1 %vm440_vm0, %v5117_v1  ;;  %v5114_v3 = vld [vmem:[%s10379_s1 + $0xe0] sm:$0xf]  ;;  %v5116_v4 = vld [vmem:[%s10379_s1 + $0xf0] sm:$0xf]  ;;  %p379_p10 = scmp.lt.s32.totalorder %s6215_s21, 1 }
  0x16   : > { %v5113_v5 = vld [vmem:[%s10379_s1 + $0xd8] sm:$0xff]  ;;  %5119 = vmatpush1.msk.msra.mxu0 %vm440_vm0, %v5114_v3  ;;  %5124 = vmatpush1.msk.msra.mxu1 %vm440_vm0, %v5116_v4  ;;  %v5112_v7 = vld [vmem:[%s10379_s1 + $0xd0] sm:$0xff]  ;;  %v5107_v8 = vld [vmem:[%s10379_s1 + $0xa8] sm:$0xff]  ;;  %v10392_v18 = vmov 0.0   ;;  %vm425_vm1 = vcmask 1046528   ;;  %vm433_vm2 = vcmask 228352  }
  0x17   : > { %479 = vmatprep.subr.mxu0 %v5111_v2  ;;  %562 = vmatprep.subr.mxu1 %v5113_v5  ;;  %v5109_v9 = vld [vmem:[%s10379_s1 + $0xb8] sm:$0xff]  ;;  %v5106_v10 = vld [vmem:[%s10379_s1 + $0xa0] sm:$0xff]  ;;  %v5108_v11 = vld [vmem:[%s10379_s1 + $0xb0] sm:$0xff]  ;;  %s380_s24 = scalar_select %p379_p10, %s6215_s21, 1  ;;  %vm820_vm3 = vcmask 1045504   ;;  %vm1041_vm4 = vcmask 1044480  }
  0x18   : > { %480 = vmatpush1.msra.mxu0 %v5110_v6  ;;  %563 = vmatpush1.msra.mxu1 %v5112_v7  ;;  %v5103_v12 = vld [vmem:[%s10379_s1 + $0x88] sm:$0xff]  ;;  %v5105_v13 = vld [vmem:[%s10379_s1 + $0x98] sm:$0xff]  ;;  %v5102_v14 = vld [vmem:[%s10379_s1 + $0x80] sm:$0xff]  ;;  %s377_s15 = sand.u32 1, %s6122_s18   ;;  %s6026_s25 = sshll.u32 %s6215_s21, 4 }
  0x19   : > { %481 = vmatprep.subr.mxu0 %v5107_v8  ;;  %564 = vmatprep.subr.mxu1 %v5109_v9  ;;  %v5104_v15 = vld [vmem:[%s10379_s1 + $0x90] sm:$0xff]  ;;  %s6029_s13 = sshll.u32 %s380_s24, 5  ;;  %v401_v16 = vld [vmem:[%s10379_s1 + $0x68] sm:$0xf]  ;;  %v403_v17 = vld [vmem:[%s10379_s1 + $0x78] sm:$0xf]  ;;  %s10343_s30 = scalar_lea.hbm %s10389_s11, %s6026_s25 }
  0x1a   : > { %482 = vmatpush1.msra.mxu0 %v5106_v10  ;;  %565 = vmatpush1.msra.mxu1 %v5108_v11  ;;  %s383_s16 = scalar_lea.vmem %s10378_s0, %s6029_s13  ;;  %v400_v27 = vld [vmem:[%s10379_s1 + $0x60] sm:$0xf]  ;;  %v402_v28 = vld [vmem:[%s10379_s1 + $0x70] sm:$0xf]  ;;  %v397_v29 = vld [vmem:[%s10379_s1 + $0x48] sm:$0xff]  ;;  %s378_s19 = scalar_lea.vmem [#allocation2], %s377_s15 }
  0x1b   : > { %483 = vmatprep.subr.mxu0 %v5103_v12  ;;  %566 = vmatprep.subr.mxu1 %v5105_v13  ;;  %v6306_v19 = vld [vmem:[%s383_s16] sm:$0xff]  ;;  %v6308_v20 = vld [vmem:[%s383_s16 + $0x8] sm:$0xff]  ;;  %v6310_v21 = vld [vmem:[%s383_s16 + $0x10] sm:$0xff]  ;;  %s5041_s26 = sshll.u32 %s378_s19, 4  ;;  %s5029_s12 = scalar_lea.sflag [#allocation3], %s377_s15  ;;  %s5042_s26 = int_to_ptr.vmem [resolvable:$true] %s5041_s26 }
  0x1c   : > { %484 = vmatpush1.msra.mxu0 %v5102_v14  ;;  %517 = vmatprep.mubr.f32.mxu0 %v10392_v18  ;;  %v426_v22 = vrot.slane %v6306_v19, 1  ;;  %v427_v23 = vrot.slane %v6308_v20, 1  ;;  %v429_v24 = vrot.slane %v6310_v21, 1  ;;  %v6318_v25 = vld [vmem:[%s383_s16 + $0x18] sm:$0xf]  ;;  %v396_v33 = vld [vmem:[%s10379_s1 + $0x40] sm:$0xff] }
  0x1d   : > { %567 = vmatpush1.msra.mxu1 %v5104_v15  ;;  %600 = vmatprep.mubr.f32.mxu1 %v10392_v18  ;;  %v399_v30 = vld [vmem:[%s10379_s1 + $0x58] sm:$0xff]  ;;  %v431_v32 = vrot.slane %v6318_v25, 1  ;;  %v398_v34 = vld [vmem:[%s10379_s1 + $0x50] sm:$0xff]  ;;  %v393_v35 = vld [vmem:[%s10379_s1 + $0x28] sm:$0xff]  ;;  %v821_v56 = vrot.slane %v6306_v19, 2  ;;  %v822_v57 = vrot.slane %v6308_v20, 2 }
  0x1e   : > { %5128 = vmatprep.subr.msk.mxu0 %vm440_vm0, %v401_v16  ;;  %5133 = vmatprep.subr.msk.mxu1 %vm440_vm0, %v403_v17  ;;  %v428_v26 = vsel %vm425_vm1, %v426_v22, %v427_v23  ;;  %v430_v31 = vsel %vm425_vm1, %v427_v23, %v429_v24  ;;  %v395_v36 = vld [vmem:[%s10379_s1 + $0x38] sm:$0xff]  ;;  %v392_v38 = vld [vmem:[%s10379_s1 + $0x20] sm:$0xff]  ;;  %v394_v39 = vld [vmem:[%s10379_s1 + $0x30] sm:$0xff]  ;;  %v824_v63 = vrot.slane %v6310_v21, 2  ;;  %v826_v5 = vrot.slane %v6318_v25, 2  ;;  %s6070_s13 = scalar_lea.vmem %s5042_s26, 16 }
  0x1f   : > { %5120 = vmatmul.mubr.msk.f32.vlgmr.msra.gmra.mxu0 %vm433_vm2, %v428_v26  ;;  %5125 = vmatmul.mubr.msk.f32.vlgmr.msra.gmra.mxu1 %vm433_vm2, %v428_v26  ;;  %v432_v37 = vsel %vm425_vm1, %v429_v24, %v431_v32  ;;  %v389_v40 = vld [vmem:[%s10379_s1 + $0x8] sm:$0xff]  ;;  %v391_v41 = vld [vmem:[%s10379_s1 + $0x18] sm:$0xff]  ;;  %v388_v42 = vld [vmem:[%s10379_s1] sm:$0xff]  ;;  %v823_v62 = vsel %vm820_vm3, %v821_v56, %v822_v57  ;;  %v1042_v15 = vrot.slane %v6306_v19, 3  ;;  %v1043_v16 = vrot.slane %v6308_v20, 3  ;;  %p6071_p11 = scmp.ne.s32.totalorder %s5042_s26, %s6070_s13  ;;  %s6133_s14 = smov [#allocation2]  }
  0x20   : > { %523 = vmatprep.mubr.f32.mxu0 %v10392_v18  ;;  %606 = vmatprep.mubr.f32.mxu1 %v10392_v18  ;;  %v390_v43 = vld [vmem:[%s10379_s1 + $0x10] sm:$0xff]  ;;  %v5151_v44 = vld [vmem:[%s10379_s1 + $0x168] sm:$0xf]  ;;  %v5153_v45 = vld [vmem:[%s10379_s1 + $0x178] sm:$0xf]  ;;  %v825_v4 = vsel %vm820_vm3, %v822_v57, %v824_v63  ;;  %v827_v10 = vsel %vm820_vm3, %v824_v63, %v826_v5  ;;  %s6074_s21 = sshll.u32 %s6133_s14, 4  ;;  %s6075_s21 = int_to_ptr.vmem [resolvable:$false] %s6074_s21 }
  0x21   : > { %5129 = vmatpush1.msk.msra.mxu0 %vm440_vm0, %v400_v27  ;;  %5134 = vmatpush1.msk.msra.mxu1 %vm440_vm0, %v402_v28  ;;  %v5150_v46 = vld [vmem:[%s10379_s1 + $0x160] sm:$0xf]  ;;  %v5152_v47 = vld [vmem:[%s10379_s1 + $0x170] sm:$0xf]  ;;  %v5147_v48 = vld [vmem:[%s10379_s1 + $0x148] sm:$0xff]  ;;  %v1044_v26 = vsel %vm1041_vm4, %v1042_v15, %v1043_v16  ;;  %v1045_v27 = vrot.slane %v6310_v21, 3  ;;  %p6072_p12 = pnand %p6071_p11, %p6232_p5  ;;  %p6077_p0 = scmp.lt.s32.totalorder %s5042_s26, %s6075_s21 }
  0x22   : > { %663 = vmatprep.subr.mxu0 %v397_v29  ;;  %746 = vmatprep.subr.mxu1 %v399_v30  ;;  %v5149_v49 = vld [vmem:[%s10379_s1 + $0x158] sm:$0xff]  ;;  %v5146_v50 = vld [vmem:[%s10379_s1 + $0x140] sm:$0xff]  ;;  %v5148_v51 = vld [vmem:[%s10379_s1 + $0x150] sm:$0xff]  ;;  %s6076_s16 = scalar_lea.vmem %s6075_s21, 32 }
  0x23   : > { %5121 = vmatmul.mubr.msk.f32.gmra.mxu0 %vm433_vm2, %v430_v31  ;;  %5126 = vmatmul.mubr.msk.f32.gmra.mxu1 %vm433_vm2, %v430_v31  ;;  %v5143_v52 = vld [vmem:[%s10379_s1 + $0x128] sm:$0xff]  ;;  %v5145_v53 = vld [vmem:[%s10379_s1 + $0x138] sm:$0xff]  ;;  %v5142_v54 = vld [vmem:[%s10379_s1 + $0x120] sm:$0xff]  ;;  %v1046_v32 = vsel %vm1041_vm4, %v1043_v16, %v1045_v27  ;;  %p6073_p13 = pneg %p6072_p12  ;;  %p6078_p1 = scmp.lt.s32.totalorder %s6076_s16, %s6070_s13 }
  0x24   : > { %529 = vmatprep.mubr.f32.mxu0 %v10392_v18  ;;  %612 = vmatprep.mubr.f32.mxu1 %v10392_v18  ;;  %v5144_v55 = vld [vmem:[%s10379_s1 + $0x130] sm:$0xff]  ;;  %v5139_v58 = vld [vmem:[%s10379_s1 + $0x108] sm:$0xff]  ;;  %v5141_v59 = vld [vmem:[%s10379_s1 + $0x118] sm:$0xff] }
  0x25   : > { %664 = vmatpush1.msra.mxu0 %v396_v33  ;;  %747 = vmatpush1.msra.mxu1 %v398_v34  ;;  %v5138_v60 = vld [vmem:[%s10379_s1 + $0x100] sm:$0xff]  ;;  %v5140_v61 = vld [vmem:[%s10379_s1 + $0x110] sm:$0xff]  ;;  %v5177_v0 = vld [vmem:[%s10379_s1 + $0x1e8] sm:$0xf]  ;;  %v1047_v33 = vrot.slane %v6318_v25, 3  ;;  %p6079_p2 = por %p6078_p1, %p6077_p0 }
  0x26   : > { %665 = vmatprep.subr.mxu0 %v393_v35  ;;  %748 = vmatprep.subr.mxu1 %v395_v36  ;;  %v5179_v1 = vld [vmem:[%s10379_s1 + $0x1f8] sm:$0xf]  ;;  %v5176_v2 = vld [vmem:[%s10379_s1 + $0x1e0] sm:$0xf]  ;;  %v5178_v3 = vld [vmem:[%s10379_s1 + $0x1f0] sm:$0xf] }
  0x27   : > { %5122 = vmatmul.mubr.msk.f32.gmra.mxu0 %vm433_vm2, %v432_v37  ;;  %5127 = vmatmul.mubr.msk.f32.gmra.mxu1 %vm433_vm2, %v432_v37  ;;  %v5173_v6 = vld [vmem:[%s10379_s1 + $0x1c8] sm:$0xff]  ;;  %v5175_v7 = vld [vmem:[%s10379_s1 + $0x1d8] sm:$0xff]  ;;  %v5172_v8 = vld [vmem:[%s10379_s1 + $0x1c0] sm:$0xff]  ;;  %p6080_p3 = pnand %p6079_p2, %p6073_p13 }
  0x28   : > { %666 = vmatpush1.msra.mxu0 %v392_v38  ;;  %749 = vmatpush1.msra.mxu1 %v394_v39  ;;  %v5174_v9 = vld [vmem:[%s10379_s1 + $0x1d0] sm:$0xff]  ;;  %v5169_v11 = vld [vmem:[%s10379_s1 + $0x1a8] sm:$0xff]  ;;  %v5171_v12 = vld [vmem:[%s10379_s1 + $0x1b8] sm:$0xff]  ;;  %v1048_v38 = vsel %vm1041_vm4, %v1045_v27, %v1047_v33  ;;  %v1467_v27 = vlaneseq }
  0x29   : > { %667 = vmatprep.subr.mxu0 %v389_v40  ;;  %750 = vmatprep.subr.mxu1 %v391_v41  ;;  %v5168_v13 = vld [vmem:[%s10379_s1 + $0x1a0] sm:$0xff]  ;;  %v5170_v14 = vld [vmem:[%s10379_s1 + $0x1b0] sm:$0xff]  ;;  %v5165_v17 = vld [vmem:[%s10379_s1 + $0x188] sm:$0xff] }
  0x2a   : > { %668 = vmatpush1.msra.mxu0 %v388_v42  ;;  %701 = vmatprep.mubr.f32.mxu0 %v10392_v18  ;;  %v5167_v22 = vld [vmem:[%s10379_s1 + $0x198] sm:$0xff]  ;;  %v5164_v23 = vld [vmem:[%s10379_s1 + $0x180] sm:$0xff]  ;;  %v5166_v24 = vld [vmem:[%s10379_s1 + $0x190] sm:$0xff] }
  0x2b   : > { %751 = vmatpush1.msra.mxu1 %v390_v43  ;;  %784 = vmatprep.mubr.f32.mxu1 %v10392_v18  ;;  %v5203_v28 = vld [vmem:[%s10379_s1 + $0x268] sm:$0xf]  ;;  %v5205_v29 = vld [vmem:[%s10379_s1 + $0x278] sm:$0xf]  ;;  %v5202_v30 = vld [vmem:[%s10379_s1 + $0x260] sm:$0xf] }
  0x2c   : > { %5130 = vmatmul.mubr.msk.f32.vlgmr.msra.gmra.mxu0 %vm433_vm2, %v6306_v19  ;;  %5135 = vmatmul.mubr.msk.f32.vlgmr.msra.gmra.mxu1 %vm433_vm2, %v6306_v19  ;;  %v5204_v31 = vld [vmem:[%s10379_s1 + $0x270] sm:$0xf]  ;;  %v5199_v34 = vld [vmem:[%s10379_s1 + $0x248] sm:$0xff]  ;;  %v5201_v35 = vld [vmem:[%s10379_s1 + $0x258] sm:$0xff]  ;;  %v1262_v43 = vrot.slane %v6306_v19, 4 }
  0x2d   : > { %707 = vmatprep.mubr.f32.mxu0 %v10392_v18  ;;  %790 = vmatprep.mubr.f32.mxu1 %v10392_v18  ;;  %v5198_v36 = vld [vmem:[%s10379_s1 + $0x240] sm:$0xff]  ;;  %v5200_v37 = vld [vmem:[%s10379_s1 + $0x250] sm:$0xff]  ;;  %v5195_v39 = vld [vmem:[%s10379_s1 + $0x228] sm:$0xff] }
  0x2e   : > { %5154 = vmatprep.subr.msk.mxu0 %vm440_vm0, %v5151_v44  ;;  %5159 = vmatprep.subr.msk.mxu1 %vm440_vm0, %v5153_v45  ;;  %v5197_v40 = vld [vmem:[%s10379_s1 + $0x238] sm:$0xff]  ;;  %v5194_v41 = vld [vmem:[%s10379_s1 + $0x220] sm:$0xff]  ;;  %v5196_v42 = vld [vmem:[%s10379_s1 + $0x230] sm:$0xff]  ;;  %v1263_v44 = vrot.slane %v6308_v20, 4 }
  0x2f   : > { %5155 = vmatpush1.msk.msra.mxu0 %vm440_vm0, %v5150_v46  ;;  %5160 = vmatpush1.msk.msra.mxu1 %vm440_vm0, %v5152_v47  ;;  %v5191_v45 = vld [vmem:[%s10379_s1 + $0x208] sm:$0xff]  ;;  %v5193_v46 = vld [vmem:[%s10379_s1 + $0x218] sm:$0xff]  ;;  %v5190_v19 = vld [vmem:[%s10379_s1 + $0x200] sm:$0xff] }
  0x30   : > { %5131 = vmatmul.mubr.msk.f32.gmra.mxu0 %vm433_vm2, %v6308_v20  ;;  %5136 = vmatmul.mubr.msk.f32.gmra.mxu1 %vm433_vm2, %v6308_v20  ;;  %v5192_v20 = vld [vmem:[%s10379_s1 + $0x210] sm:$0xff]  ;;  %v1264_v47 = vsel %vm440_vm0, %v1262_v43, %v1263_v44 }
  0x31   : > { %872 = vmatprep.subr.mxu0 %v5147_v48  ;;  %955 = vmatprep.subr.mxu1 %v5149_v49  ;;  %v1265_v48 = vrot.slane %v6310_v21, 4 }
  0x32   : > { %713 = vmatprep.mubr.f32.mxu0 %v10392_v18  ;;  %796 = vmatprep.mubr.f32.mxu1 %v10392_v18 }
  0x33   : > { %873 = vmatpush1.msra.mxu0 %v5146_v50  ;;  %956 = vmatpush1.msra.mxu1 %v5148_v51  ;;  %v1266_v49 = vsel %vm440_vm0, %v1263_v44, %v1265_v48  ;;  %v1267_v50 = vrot.slane %v6318_v25, 4 }
  0x34   : > { %5132 = vmatmul.mubr.msk.f32.gmra.mxu0 %vm433_vm2, %v6310_v21  ;;  %5137 = vmatmul.mubr.msk.f32.gmra.mxu1 %vm433_vm2, %v6310_v21 }
  0x35   : > { %874 = vmatprep.subr.mxu0 %v5143_v52  ;;  %957 = vmatprep.subr.mxu1 %v5145_v53  ;;  %v1268_v21 = vsel %vm440_vm0, %v1265_v48, %v1267_v50 }
  0x36   : > { %875 = vmatpush1.msra.mxu0 %v5142_v54  ;;  %958 = vmatpush1.msra.mxu1 %v5144_v55 }
  0x37   : > { %876 = vmatprep.subr.mxu0 %v5139_v58  ;;  %959 = vmatprep.subr.mxu1 %v5141_v59 }
  0x38   : > { %877 = vmatpush1.msra.mxu0 %v5138_v60  ;;  %910 = vmatprep.mubr.f32.mxu0 %v10392_v18 }
  0x39   : > { %960 = vmatpush1.msra.mxu1 %v5140_v61  ;;  %993 = vmatprep.mubr.f32.mxu1 %v10392_v18 }
  0x3a   : > { %5156 = vmatmul.mubr.msk.f32.vlgmr.msra.gmra.mxu0 %vm433_vm2, %v823_v62  ;;  %5161 = vmatmul.mubr.msk.f32.vlgmr.msra.gmra.mxu1 %vm433_vm2, %v823_v62 }
  0x3b   : > { %916 = vmatprep.mubr.f32.mxu0 %v10392_v18  ;;  %999 = vmatprep.mubr.f32.mxu1 %v10392_v18 }
  0x3c   : > { %5180 = vmatprep.subr.msk.mxu0 %vm440_vm0, %v5177_v0  ;;  %5185 = vmatprep.subr.msk.mxu1 %vm440_vm0, %v5179_v1 }
  0x3d   : > { %5181 = vmatpush1.msk.msra.mxu0 %vm440_vm0, %v5176_v2  ;;  %5186 = vmatpush1.msk.msra.mxu1 %vm440_vm0, %v5178_v3 }
  0x3e   : > { %5157 = vmatmul.mubr.msk.f32.gmra.mxu0 %vm433_vm2, %v825_v4  ;;  %5162 = vmatmul.mubr.msk.f32.gmra.mxu1 %vm433_vm2, %v825_v4 }
  0x3f   : > { %1093 = vmatprep.subr.mxu0 %v5173_v6  ;;  %1176 = vmatprep.subr.mxu1 %v5175_v7 }
  0x40   : > { %922 = vmatprep.mubr.f32.mxu0 %v10392_v18  ;;  %1005 = vmatprep.mubr.f32.mxu1 %v10392_v18 }
  0x41   : > { %1094 = vmatpush1.msra.mxu0 %v5172_v8  ;;  %1177 = vmatpush1.msra.mxu1 %v5174_v9 }
  0x42   : > { %5158 = vmatmul.mubr.msk.f32.gmra.mxu0 %vm433_vm2, %v827_v10  ;;  %5163 = vmatmul.mubr.msk.f32.gmra.mxu1 %vm433_vm2, %v827_v10 }
  0x43   : > { %1095 = vmatprep.subr.mxu0 %v5169_v11  ;;  %1178 = vmatprep.subr.mxu1 %v5171_v12 }
  0x44   : > { %1096 = vmatpush1.msra.mxu0 %v5168_v13  ;;  %1179 = vmatpush1.msra.mxu1 %v5170_v14 }
  0x45   : > { %1097 = vmatprep.subr.mxu0 %v5165_v17  ;;  %1180 = vmatprep.subr.mxu1 %v5167_v22 }
  0x46   : > { %1098 = vmatpush1.msra.mxu0 %v5164_v23  ;;  %1131 = vmatprep.mubr.f32.mxu0 %v10392_v18 }
  0x47   : > { %1181 = vmatpush1.msra.mxu1 %v5166_v24  ;;  %1214 = vmatprep.mubr.f32.mxu1 %v10392_v18 }
  0x48   : > { %5182 = vmatmul.mubr.msk.f32.vlgmr.msra.gmra.mxu0 %vm433_vm2, %v1044_v26  ;;  %5187 = vmatmul.mubr.msk.f32.vlgmr.msra.gmra.mxu1 %vm433_vm2, %v1044_v26 }
  0x49   : > { %1137 = vmatprep.mubr.f32.mxu0 %v10392_v18  ;;  %1220 = vmatprep.mubr.f32.mxu1 %v10392_v18 }
  0x4a   : > { %5206 = vmatprep.subr.msk.mxu0 %vm440_vm0, %v5203_v28  ;;  %5211 = vmatprep.subr.msk.mxu1 %vm440_vm0, %v5205_v29 }
  0x4b   : > { %5207 = vmatpush1.msk.msra.mxu0 %vm440_vm0, %v5202_v30  ;;  %5212 = vmatpush1.msk.msra.mxu1 %vm440_vm0, %v5204_v31 }
  0x4c   : > { %5183 = vmatmul.mubr.msk.f32.gmra.mxu0 %vm433_vm2, %v1046_v32  ;;  %5188 = vmatmul.mubr.msk.f32.gmra.mxu1 %vm433_vm2, %v1046_v32  ;;  %v6615_v32 = vshrl.u32 %v1467_v27, 7 }
  0x4d   : > { %1313 = vmatprep.subr.mxu0 %v5199_v34  ;;  %1396 = vmatprep.subr.mxu1 %v5201_v35 }
  0x4e   : > { %1143 = vmatprep.mubr.f32.mxu0 %v10392_v18  ;;  %1226 = vmatprep.mubr.f32.mxu1 %v10392_v18  ;;  %10405 = vst [vmem:[#allocation7_spill] sm:$0xff] %v6615_v32 }
  0x4f   : > { %1314 = vmatpush1.msra.mxu0 %v5198_v36  ;;  %1397 = vmatpush1.msra.mxu1 %v5200_v37  ;;  %v10391_v37 = vsub.s32 0, %v6615_v32 }
  0x50   : > { %5184 = vmatmul.mubr.msk.f32.gmra.mxu0 %vm433_vm2, %v1048_v38  ;;  %5189 = vmatmul.mubr.msk.f32.gmra.mxu1 %vm433_vm2, %v1048_v38  ;;  %v10395_v38 = vsub.s32 2, %v6615_v32 }
  0x51   : > { %1315 = vmatprep.subr.mxu0 %v5195_v39  ;;  %1398 = vmatprep.subr.mxu1 %v5197_v40  ;;  %v1465_v39 = vld [vmem:[%s10380_s2] sm:$0xf]  ;;  %v10397_v40 = vsub.s32 1, %v6615_v32 }
  0x52   : > { %1316 = vmatpush1.msra.mxu0 %v5194_v41  ;;  %1399 = vmatpush1.msra.mxu1 %v5196_v42  ;;  %v10400_v41 = vsub.s32 3, %v6615_v32 }
  0x53   : > { %1317 = vmatprep.subr.mxu0 %v5191_v45  ;;  %1400 = vmatprep.subr.mxu1 %v5193_v46  ;;  %v6634_v50 = vrot.slane %v1465_v39, %v10397_v40 }
  0x54   : > { %1318 = vmatpush1.msra.mxu0 %v5190_v19  ;;  %1351 = vmatprep.mubr.f32.mxu0 %v10392_v18 }
  0x55   : > { %1401 = vmatpush1.msra.mxu1 %v5192_v20  ;;  %1434 = vmatprep.mubr.f32.mxu1 %v10392_v18  ;;  %v6626_v20 = vrot.slane %v1465_v39, %v10391_v37 }
  0x56   : > { %5208 = vmatmul.mubr.msk.f32.vlgmr.msra.gmra.mxu0 %vm433_vm2, %v1264_v47  ;;  %5213 = vmatmul.mubr.msk.f32.vlgmr.msra.gmra.mxu1 %vm433_vm2, %v1264_v47  ;;  %v6630_v47 = vrot.slane %v1465_v39, %v10395_v38 }
  0x57   : > { %1357 = vmatprep.mubr.f32.mxu0 %v10392_v18  ;;  %1440 = vmatprep.mubr.f32.mxu1 %v10392_v18  ;;  %10406 = vst [vmem:[#allocation8_spill] sm:$0xff] %v6626_v20 }
  0x58   : > { %10407 = vst [vmem:[#allocation9_spill] sm:$0xff] %v6630_v47 }
  0x5a   : > { %5209 = vmatmul.mubr.msk.f32.gmra.mxu0 %vm433_vm2, %v1266_v49  ;;  %5214 = vmatmul.mubr.msk.f32.gmra.mxu1 %vm433_vm2, %v1266_v49 }
  0x5b   : > { %1363 = vmatprep.mubr.f32.mxu0 %v10392_v18  ;;  %1446 = vmatprep.mubr.f32.mxu1 %v10392_v18 }
  0x5e   : > { %5210 = vmatmul.mubr.msk.f32.gmra.mxu0 %vm433_vm2, %v1268_v21  ;;  %5215 = vmatmul.mubr.msk.f32.gmra.mxu1 %vm433_vm2, %v1268_v21  ;;  %v6638_v21 = vrot.slane %v1465_v39, %v10400_v41 }
  0x5f   : > { %1608 = vmatprep.mubr.f32.mxu0 %v10392_v18  ;;  %1685 = vmatprep.mubr.f32.mxu1 %v10392_v18 }
  0xdf   : > { %v519_v51 = vpop.f32.mrf.mxu0  ;;  %v602_v25 = vpop.f32.mrf.mxu1 }
  0xe1   : > { %v521_v52 = vpop.f32.mrf.mxu0  ;;  %v604_v53 = vpop.f32.mrf.mxu1 }
  0xe3   : > { %v525_v54 = vpop.f32.mrf.mxu0  ;;  %v608_v55 = vpop.f32.mrf.mxu1 }
  0xe5   : > { %v527_v56 = vpop.f32.mrf.mxu0  ;;  %v610_v57 = vpop.f32.mrf.mxu1 }
  0xe7   : > { %v531_v58 = vpop.f32.mrf.mxu0  ;;  %v614_v59 = vpop.f32.mrf.mxu1 }
  0xe9   : > { %v6611_v60 = vpop.f32.mrf.mxu0  ;;  %v6613_v61 = vpop.f32.mrf.mxu1 }
  0xec   : > { %v703_v62 = vpop.f32.mrf.mxu0  ;;  %v786_v63 = vpop.f32.mrf.mxu1 }
  0xed   : > { %v704_v44 = vadd.f32 %v703_v62, %v519_v51  ;;  %v787_v45 = vadd.f32 %v786_v63, %v602_v25 }
  0xee   : > { %v705_v0 = vpop.f32.mrf.mxu0  ;;  %v788_v1 = vpop.f32.mrf.mxu1 }
  0xef   : > { %v706_v48 = vadd.f32 %v705_v0, %v521_v52  ;;  %v789_v49 = vadd.f32 %v788_v1, %v604_v53 }
  0xf0   : > { %v709_v2 = vpop.f32.mrf.mxu0  ;;  %v792_v3 = vpop.f32.mrf.mxu1 }
  0xf1   : > { %v710_v51 = vadd.f32 %v709_v2, %v525_v54  ;;  %v793_v25 = vadd.f32 %v792_v3, %v608_v55 }
  0xf2   : > { %v711_v4 = vpop.f32.mrf.mxu0  ;;  %v794_v5 = vpop.f32.mrf.mxu1 }
  0xf3   : > { %v712_v27 = vadd.f32 %v711_v4, %v527_v56  ;;  %v795_v37 = vadd.f32 %v794_v5, %v610_v57 }
  0xf4   : > { %v715_v6 = vpop.f32.mrf.mxu0  ;;  %v798_v7 = vpop.f32.mrf.mxu1 }
  0xf5   : > { %v716_v18 = vadd.f32 %v715_v6, %v531_v58  ;;  %v799_v20 = vadd.f32 %v798_v7, %v614_v59 }
  0xf6   : > { %v717_v8 = vpop.f32.mrf.mxu0  ;;  %v800_v9 = vpop.f32.mrf.mxu1 }
  0xf7   : > { %v718_v40 = vadd.f32 %v717_v8, %v6611_v60  ;;  %v801_v32 = vadd.f32 %v800_v9, %v6613_v61 }
  0xfa   : > { %v912_v10 = vpop.f32.mrf.mxu0  ;;  %v995_v11 = vpop.f32.mrf.mxu1 }
  0xfb   : > { %v1012_v62 = vadd.f32 %v912_v10, %v704_v44  ;;  %v1014_v63 = vadd.f32 %v995_v11, %v787_v45 }
  0xfc   : > { %v914_v12 = vpop.f32.mrf.mxu0  ;;  %v997_v13 = vpop.f32.mrf.mxu1 }
  0xfd   : > { %v1013_v38 = vadd.f32 %v914_v12, %v706_v48  ;;  %v1015_v47 = vadd.f32 %v997_v13, %v789_v49 }
  0xfe   : > { %v918_v14 = vpop.f32.mrf.mxu0  ;;  %v1001_v15 = vpop.f32.mrf.mxu1 }
  0xff   : > { %v1016_v39 = vadd.f32 %v918_v14, %v710_v51  ;;  %v1018_v41 = vadd.f32 %v1001_v15, %v793_v25 }
 0x100   : > { %v920_v16 = vpop.f32.mrf.mxu0  ;;  %v1003_v17 = vpop.f32.mrf.mxu1 }
 0x101   : > { %v1017_v58 = vadd.f32 %v920_v16, %v712_v27  ;;  %v1019_v59 = vadd.f32 %v1003_v17, %v795_v37 }
 0x102   : > { %v924_v22 = vpop.f32.mrf.mxu0  ;;  %v1007_v23 = vpop.f32.mrf.mxu1 }
 0x103   : > { %v1020_v4 = vadd.f32 %v924_v22, %v716_v18  ;;  %v1022_v5 = vadd.f32 %v1007_v23, %v799_v20 }
 0x104   : > { %v926_v24 = vpop.f32.mrf.mxu0  ;;  %v1009_v26 = vpop.f32.mrf.mxu1 }
 0x105   : > { %v1021_v6 = vadd.f32 %v926_v24, %v718_v40  ;;  %v1023_v7 = vadd.f32 %v1009_v26, %v801_v32 }
 0x108   : > { %v1133_v28 = vpop.f32.mrf.mxu0  ;;  %v1216_v29 = vpop.f32.mrf.mxu1 }
 0x109   : > { %v1233_v52 = vadd.f32 %v1133_v28, %v1012_v62  ;;  %v1235_v53 = vadd.f32 %v1216_v29, %v1014_v63  ;;  %v10408_v28 = vld [vmem:[#allocation8_spill] sm:$0xff] }
 0x10a   : > { %v1135_v30 = vpop.f32.mrf.mxu0  ;;  %v1218_v31 = vpop.f32.mrf.mxu1 }
 0x10b   : > { %v1234_v54 = vadd.f32 %v1135_v30, %v1013_v38  ;;  %v1236_v55 = vadd.f32 %v1218_v31, %v1015_v47  ;;  %v10409_v30 = vld [vmem:[#allocation9_spill] sm:$0xff] }
 0x10c   : > { %v1139_v33 = vpop.f32.mrf.mxu0  ;;  %v1222_v34 = vpop.f32.mrf.mxu1 }
 0x10d   : > { %v1237_v8 = vadd.f32 %v1139_v33, %v1016_v39  ;;  %v1239_v61 = vadd.f32 %v1222_v34, %v1018_v41 }
 0x10e   : > { %v1141_v35 = vpop.f32.mrf.mxu0  ;;  %v1224_v36 = vpop.f32.mrf.mxu1 }
 0x10f   : > { %v1238_v9 = vadd.f32 %v1141_v35, %v1017_v58  ;;  %v1240_v13 = vadd.f32 %v1224_v36, %v1019_v59 }
 0x110   : > { %v1145_v42 = vpop.f32.mrf.mxu0  ;;  %v1228_v43 = vpop.f32.mrf.mxu1 }
 0x111   : > { %v1241_v14 = vadd.f32 %v1145_v42, %v1020_v4  ;;  %v1243_v15 = vadd.f32 %v1228_v43, %v1022_v5 }
 0x112   : > { %v1147_v46 = vpop.f32.mrf.mxu0  ;;  %v1230_v19 = vpop.f32.mrf.mxu1 }
 0x113   : > { %v1242_v22 = vadd.f32 %v1147_v46, %v1021_v6  ;;  %v1244_v23 = vadd.f32 %v1230_v19, %v1023_v7  ;;  %v1535_v6 = vld [vmem:[%s10381_s3] sm:$0xff] }
 0x116   : > { %v1353_v0 = vpop.f32.mrf.mxu0  ;;  %v1436_v1 = vpop.f32.mrf.mxu1 }
 0x117   : > { %v1453_v2 = vadd.f32 %v1353_v0, %v1233_v52  ;;  %v1455_v3 = vadd.f32 %v1436_v1, %v1235_v53 }
 0x118   : > { %v1355_v56 = vpop.f32.mrf.mxu0  ;;  %v1438_v57 = vpop.f32.mrf.mxu1 }
 0x119   : > { %v1454_v10 = vadd.f32 %v1355_v56, %v1234_v54  ;;  %v1456_v11 = vadd.f32 %v1438_v57, %v1236_v55  ;;  %v6643_v29 = vadd.f32 %v10408_v28, %v1453_v2  ;;  %v6646_v16 = vadd.f32 %v10409_v30, %v1455_v3 }
 0x11a   : > { %v1359_v12 = vpop.f32.mrf.mxu0  ;;  %v1442_v60 = vpop.f32.mrf.mxu1 }
 0x11b   : > { %v1488_v31 = vadd.f32 %v6634_v50, %v1454_v10  ;;  %v1490_v32 = vadd.f32 %v6638_v21, %v1456_v11  ;;  %v1457_v33 = vadd.f32 %v1359_v12, %v1237_v8  ;;  %v1459_v34 = vadd.f32 %v1442_v60, %v1239_v61  ;;  %v1536_v11 = vld [vmem:[%s10381_s3 + $0x8] sm:$0xf]  ;;  %v5220_v60 = vld [vmem:[%s10381_s3 + $0x10] sm:$0xff]  ;;  %v1900_v8 = vld [vmem:[%s10382_s4 + $0xf8] sm:$0xff] }
 0x11c   : > { %v1361_v18 = vpop.f32.mrf.mxu0  ;;  %v1444_v17 = vpop.f32.mrf.mxu1  ;;  %v1511_v42 = vmul.f32 0.01, %v6643_v29  ;;  %v1513_v43 = vmul.f32 0.01, %v6646_v16  ;;  %vm1499_vm15 = vcmp.ge.f32.partialorder %v6643_v29, 0.0  ;;  %vm1501_vm2 = vcmp.ge.f32.partialorder %v6646_v16, 0.0 }
 0x11d   : > { %v1458_v24 = vadd.f32 %v1361_v18, %v1238_v9  ;;  %v1460_v26 = vadd.f32 %v1444_v17, %v1240_v13  ;;  %v1491_v48 = vadd.f32 %v10408_v28, %v1457_v33  ;;  %v1493_v49 = vadd.f32 %v10409_v30, %v1459_v34  ;;  %v1964_v61 = vld [vmem:[%s10382_s4 + $0x2f8] sm:$0xff]  ;;  %v1899_v9 = vld [vmem:[%s10382_s4 + $0xf0] sm:$0xff] }
 0x11e   : > { %v1365_v35 = vpop.f32.mrf.mxu0  ;;  %v1448_v36 = vpop.f32.mrf.mxu1  ;;  %v1512_v51 = vmul.f32 0.01, %v1488_v31  ;;  %v1514_v25 = vmul.f32 0.01, %v1490_v32  ;;  %vm1500_vm13 = vcmp.ge.f32.partialorder %v1488_v31, 0.0  ;;  %vm1502_vm14 = vcmp.ge.f32.partialorder %v1490_v32, 0.0 }
 0x11f   : > { %v1492_v37 = vadd.f32 %v6634_v50, %v1458_v24  ;;  %v1494_v38 = vadd.f32 %v6638_v21, %v1460_v26  ;;  %v1461_v40 = vadd.f32 %v1365_v35, %v1241_v14  ;;  %v1463_v41 = vadd.f32 %v1448_v36, %v1243_v15  ;;  %v1963_v13 = vld [vmem:[%s10382_s4 + $0x2f0] sm:$0xff]  ;;  %v5221_v14 = vld [vmem:[%s10381_s3 + $0x18] sm:$0xf]  ;;  %v1898_v15 = vld [vmem:[%s10382_s4 + $0xe8] sm:$0xff] }
 0x120   : > { %v1367_v44 = vpop.f32.mrf.mxu0  ;;  %v1450_v45 = vpop.f32.mrf.mxu1  ;;  %v1515_v54 = vmul.f32 0.01, %v1491_v48  ;;  %v1517_v55 = vmul.f32 0.01, %v1493_v49  ;;  %vm1503_vm11 = vcmp.ge.f32.partialorder %v1491_v48, 0.0  ;;  %vm1505_vm12 = vcmp.ge.f32.partialorder %v1493_v49, 0.0 }
 0x121   : > { %v1495_v46 = vadd.f32 %v10408_v28, %v1461_v40  ;;  %v1497_v19 = vadd.f32 %v10409_v30, %v1463_v41  ;;  %v1462_v20 = vadd.f32 %v1367_v44, %v1242_v22  ;;  %v1464_v47 = vadd.f32 %v1450_v45, %v1244_v23  ;;  %v1962_v28 = vld [vmem:[%s10382_s4 + $0x2e8] sm:$0xff]  ;;  %v1961_v30 = vld [vmem:[%s10382_s4 + $0x2e0] sm:$0xff]  ;;  %v1960_v18 = vld [vmem:[%s10382_s4 + $0x2d8] sm:$0xff] }
 0x122   : > { %v1516_v27 = vmul.f32 0.01, %v1492_v37  ;;  %v1518_v52 = vmul.f32 0.01, %v1494_v38  ;;  %vm1504_vm9 = vcmp.ge.f32.partialorder %v1492_v37, 0.0  ;;  %vm1506_vm10 = vcmp.ge.f32.partialorder %v1494_v38, 0.0 }
 0x123   : > { %v1496_v62 = vadd.f32 %v6634_v50, %v1462_v20  ;;  %v1498_v63 = vadd.f32 %v6638_v21, %v1464_v47  ;;  %v1519_v53 = vmul.f32 0.01, %v1495_v46  ;;  %v1521_v0 = vmul.f32 0.01, %v1497_v19  ;;  %v1895_v17 = vld [vmem:[%s10382_s4 + $0xd0] sm:$0xff]  ;;  %v1894_v23 = vld [vmem:[%s10382_s4 + $0xc8] sm:$0xff] }
 0x124   : > { %vm1507_vm5 = vcmp.ge.f32.partialorder %v1495_v46, 0.0  ;;  %vm1509_vm6 = vcmp.ge.f32.partialorder %v1497_v19, 0.0  ;;  %v1528_v56 = vsel %vm1504_vm9, %v1492_v37, %v1516_v27  ;;  %v1530_v57 = vsel %vm1506_vm10, %v1494_v38, %v1518_v52  ;;  %v1959_v22 = vld [vmem:[%s10382_s4 + $0x2d0] sm:$0xff]  ;;  %v1958_v24 = vld [vmem:[%s10382_s4 + $0x2c8] sm:$0xff]  ;;  %v1893_v26 = vld [vmem:[%s10382_s4 + $0xc0] sm:$0xff] }
 0x125   : > { %vm1508_vm7 = vcmp.ge.f32.partialorder %v1496_v62, 0.0  ;;  %v1520_v1 = vmul.f32 0.01, %v1496_v62  ;;  %vm1510_vm8 = vcmp.ge.f32.partialorder %v1498_v63, 0.0  ;;  %v1522_v39 = vmul.f32 0.01, %v1498_v63 }
 0x126   : > { %v1531_v50 = vsel %vm1507_vm5, %v1495_v46, %v1519_v53  ;;  %v1533_v21 = vsel %vm1509_vm6, %v1497_v19, %v1521_v0  ;;  %v1527_v58 = vsel %vm1503_vm11, %v1491_v48, %v1515_v54  ;;  %v1529_v59 = vsel %vm1505_vm12, %v1493_v49, %v1517_v55  ;;  %v1956_v33 = vld [vmem:[%s10382_s4 + $0x2b8] sm:$0xff]  ;;  %v1891_v34 = vld [vmem:[%s10382_s4 + $0xb0] sm:$0xff]  ;;  %v1890_v36 = vld [vmem:[%s10382_s4 + $0xa8] sm:$0xff] }
 0x127   : > { %v1532_v2 = vsel %vm1508_vm7, %v1496_v62, %v1520_v1  ;;  %v1534_v3 = vsel %vm1510_vm8, %v1498_v63, %v1522_v39  ;;  %v1524_v4 = vsel %vm1500_vm13, %v1488_v31, %v1512_v51  ;;  %v1526_v5 = vsel %vm1502_vm14, %v1490_v32, %v1514_v25  ;;  %v1957_v31 = vld [vmem:[%s10382_s4 + $0x2c0] sm:$0xff]  ;;  %v1892_v32 = vld [vmem:[%s10382_s4 + $0xb8] sm:$0xff]  ;;  %v1955_v35 = vld [vmem:[%s10382_s4 + $0x2b0] sm:$0xff] }
 0x128   : > { %1570 = vmatprep.subr.mxu0 %v1532_v2  ;;  %1647 = vmatprep.subr.mxu1 %v1534_v3  ;;  %vm1537_vm5 = vcmask 195584   ;;  %v1523_v7 = vsel %vm1499_vm15, %v6643_v29, %v1511_v42  ;;  %v1525_v10 = vsel %vm1501_vm2, %v6646_v16, %v1513_v43  ;;  %v10410_v12 = vmov 0.0   ;;  %v1897_v29 = vld [vmem:[%s10382_s4 + $0xe0] sm:$0xff]  ;;  %v1896_v16 = vld [vmem:[%s10382_s4 + $0xd8] sm:$0xff]  ;;  %v1954_v37 = vld [vmem:[%s10382_s4 + $0x2a8] sm:$0xff] }
 0x129   : > { %1571 = vmatpush1.msra.mxu0 %v1531_v50  ;;  %1648 = vmatpush1.msra.mxu1 %v1533_v21  ;;  %v1889_v38 = vld [vmem:[%s10382_s4 + $0xa0] sm:$0xff]  ;;  %v1888_v41 = vld [vmem:[%s10382_s4 + $0x98] sm:$0xff]  ;;  %v1887_v43 = vld [vmem:[%s10382_s4 + $0x90] sm:$0xff]  ;;  %vm1989_vm6 = vcmask 785408   ;;  %vm2681_vm7 = vcmask 916480  }
 0x12a   : > { %1572 = vmatprep.subr.mxu0 %v1528_v56  ;;  %1649 = vmatprep.subr.mxu1 %v1530_v57  ;;  %v1953_v40 = vld [vmem:[%s10382_s4 + $0x2a0] sm:$0xff]  ;;  %v1952_v42 = vld [vmem:[%s10382_s4 + $0x298] sm:$0xff]  ;;  %v1951_v44 = vld [vmem:[%s10382_s4 + $0x290] sm:$0xff] }
 0x12b   : > { %1573 = vmatpush1.msra.mxu0 %v1527_v58  ;;  %1650 = vmatpush1.msra.mxu1 %v1529_v59  ;;  %v1886_v45 = vld [vmem:[%s10382_s4 + $0x88] sm:$0xff]  ;;  %v1885_v19 = vld [vmem:[%s10382_s4 + $0x80] sm:$0xff]  ;;  %v1884_v47 = vld [vmem:[%s10382_s4 + $0x78] sm:$0xff] }
 0x12c   : > { %1574 = vmatprep.subr.mxu0 %v1524_v4  ;;  %1651 = vmatprep.subr.mxu1 %v1526_v5  ;;  %v1950_v46 = vld [vmem:[%s10382_s4 + $0x288] sm:$0xff]  ;;  %v1949_v20 = vld [vmem:[%s10382_s4 + $0x280] sm:$0xff]  ;;  %v1948_v48 = vld [vmem:[%s10382_s4 + $0x278] sm:$0xff] }
 0x12d   : > { %1575 = vmatpush1.msra.mxu0 %v1523_v7  ;;  %1652 = vmatpush1.msra.mxu1 %v1525_v10  ;;  %v1883_v49 = vld [vmem:[%s10382_s4 + $0x70] sm:$0xff]  ;;  %v1882_v25 = vld [vmem:[%s10382_s4 + $0x68] sm:$0xff]  ;;  %v1881_v63 = vld [vmem:[%s10382_s4 + $0x60] sm:$0xff] }
 0x12e   : > { %5216 = vmatmul.mubr.msk.f32.vlgmr.msra.gmra.mxu0 %vm1537_vm5, %v1535_v6  ;;  %5218 = vmatmul.mubr.msk.f32.vlgmr.msra.gmra.mxu1 %vm1537_vm5, %v1535_v6  ;;  %v1947_v51 = vld [vmem:[%s10382_s4 + $0x270] sm:$0xff]  ;;  %v1946_v62 = vld [vmem:[%s10382_s4 + $0x268] sm:$0xff]  ;;  %v1945_v27 = vld [vmem:[%s10382_s4 + $0x260] sm:$0xff] }
 0x12f   : > { %1733 = vmatprep.subr.mxu0 %v1532_v2  ;;  %1810 = vmatprep.subr.mxu1 %v1534_v3  ;;  %v1880_v52 = vld [vmem:[%s10382_s4 + $0x58] sm:$0xff]  ;;  %v1879_v0 = vld [vmem:[%s10382_s4 + $0x50] sm:$0xff]  ;;  %v1878_v39 = vld [vmem:[%s10382_s4 + $0x48] sm:$0xff] }
 0x130   : > { %1734 = vmatpush1.msra.mxu0 %v1531_v50  ;;  %1811 = vmatpush1.msra.mxu1 %v1533_v21  ;;  %v1944_v53 = vld [vmem:[%s10382_s4 + $0x258] sm:$0xff]  ;;  %v1943_v1 = vld [vmem:[%s10382_s4 + $0x250] sm:$0xff]  ;;  %v1942_v54 = vld [vmem:[%s10382_s4 + $0x248] sm:$0xff] }
 0x131   : > { %1735 = vmatprep.subr.mxu0 %v1528_v56  ;;  %1812 = vmatprep.subr.mxu1 %v1530_v57  ;;  %v1877_v55 = vld [vmem:[%s10382_s4 + $0x40] sm:$0xff]  ;;  %v1876_v3 = vld [vmem:[%s10382_s4 + $0x38] sm:$0xff]  ;;  %v1875_v21 = vld [vmem:[%s10382_s4 + $0x30] sm:$0xff] }
 0x132   : > { %1614 = vmatprep.mubr.f32.mxu0 %v10410_v12  ;;  %1691 = vmatprep.mubr.f32.mxu1 %v10410_v12  ;;  %v1941_v2 = vld [vmem:[%s10382_s4 + $0x240] sm:$0xff]  ;;  %v1940_v50 = vld [vmem:[%s10382_s4 + $0x238] sm:$0xff]  ;;  %v1939_v56 = vld [vmem:[%s10382_s4 + $0x230] sm:$0xff] }
 0x133   : > { %1736 = vmatpush1.msra.mxu0 %v1527_v58  ;;  %1813 = vmatpush1.msra.mxu1 %v1529_v59  ;;  %v1874_v57 = vld [vmem:[%s10382_s4 + $0x28] sm:$0xff]  ;;  %v1873_v59 = vld [vmem:[%s10382_s4 + $0x20] sm:$0xff]  ;;  %v1936_v6 = vld [vmem:[%s10382_s4 + $0x218] sm:$0xff] }
 0x134   : > { %5217 = vmatmul.mubr.msk.f32.gmra.mxu0 %vm1537_vm5, %v1536_v11  ;;  %5219 = vmatmul.mubr.msk.f32.gmra.mxu1 %vm1537_vm5, %v1536_v11  ;;  %v1938_v58 = vld [vmem:[%s10382_s4 + $0x228] sm:$0xff] }
 0x135   : > { %1737 = vmatprep.subr.mxu0 %v1524_v4  ;;  %1814 = vmatprep.subr.mxu1 %v1526_v5  ;;  %v1937_v4 = vld [vmem:[%s10382_s4 + $0x220] sm:$0xff]  ;;  %v1872_v5 = vld [vmem:[%s10382_s4 + $0x18] sm:$0xff]  ;;  %v1870_v11 = vld [vmem:[%s10382_s4 + $0x8] sm:$0xff] }
 0x136   : > { %1738 = vmatpush1.msra.mxu0 %v1523_v7  ;;  %1815 = vmatpush1.msra.mxu1 %v1525_v10  ;;  %v1871_v7 = vld [vmem:[%s10382_s4 + $0x10] sm:$0xff] }
 0x137   : > { %1771 = vmatprep.mubr.f32.mxu0 %v10410_v12  ;;  %1848 = vmatprep.mubr.f32.mxu1 %v10410_v12  ;;  %v1935_v10 = vld [vmem:[%s10382_s4 + $0x210] sm:$0xff] }
 0x138   : > { %5222 = vmatmul.mubr.msk.f32.vlgmr.msra.gmra.mxu0 %vm1537_vm5, %v5220_v60  ;;  %5224 = vmatmul.mubr.msk.f32.vlgmr.msra.gmra.mxu1 %vm1537_vm5, %v5220_v60  ;;  %v1934_v60 = vld [vmem:[%s10382_s4 + $0x208] sm:$0xff] }
 0x139   : > { %1777 = vmatprep.mubr.f32.mxu0 %v10410_v12  ;;  %1854 = vmatprep.mubr.f32.mxu1 %v10410_v12 }
 0x13a   : > { %1996 = vmatprep.subr.mxu0 %v1900_v8  ;;  %2073 = vmatprep.subr.mxu1 %v1964_v61  ;;  %v1869_v8 = vld [vmem:[%s10382_s4] sm:$0xff] }
 0x13b   : > { %1997 = vmatpush1.msra.mxu0 %v1899_v9  ;;  %2074 = vmatpush1.msra.mxu1 %v1963_v13  ;;  %v1933_v61 = vld [vmem:[%s10382_s4 + $0x200] sm:$0xff]  ;;  %v1932_v9 = vld [vmem:[%s10382_s4 + $0x1f8] sm:$0xff] }
 0x13c   : > { %5223 = vmatmul.mubr.msk.f32.gmra.mxu0 %vm1537_vm5, %v5221_v14  ;;  %5225 = vmatmul.mubr.msk.f32.gmra.mxu1 %vm1537_vm5, %v5221_v14  ;;  %v1988_v13 = vld [vmem:[%s10382_s4 + $0x3b8] sm:$0xff]  ;;  %v1931_v14 = vld [vmem:[%s10382_s4 + $0x1f0] sm:$0xff] }
 0x13d   : > { %1998 = vmatprep.subr.mxu0 %v1898_v15  ;;  %2075 = vmatprep.subr.mxu1 %v1962_v28  ;;  %v1987_v15 = vld [vmem:[%s10382_s4 + $0x3b0] sm:$0xff]  ;;  %v1930_v28 = vld [vmem:[%s10382_s4 + $0x1e8] sm:$0xff] }
 0x13e   : > { %1999 = vmatpush1.msra.mxu0 %v1897_v29  ;;  %2076 = vmatpush1.msra.mxu1 %v1961_v30  ;;  %v1986_v29 = vld [vmem:[%s10382_s4 + $0x3a8] sm:$0xff]  ;;  %v1929_v30 = vld [vmem:[%s10382_s4 + $0x1e0] sm:$0xff] }
 0x13f   : > { %2000 = vmatprep.subr.mxu0 %v1896_v16  ;;  %2077 = vmatprep.subr.mxu1 %v1960_v18  ;;  %v1985_v16 = vld [vmem:[%s10382_s4 + $0x3a0] sm:$0xff]  ;;  %v1928_v18 = vld [vmem:[%s10382_s4 + $0x1d8] sm:$0xff] }
 0x140   : > { %2001 = vmatpush1.msra.mxu0 %v1895_v17  ;;  %2078 = vmatpush1.msra.mxu1 %v1959_v22  ;;  %v1984_v17 = vld [vmem:[%s10382_s4 + $0x398] sm:$0xff]  ;;  %v1927_v22 = vld [vmem:[%s10382_s4 + $0x1d0] sm:$0xff] }
 0x141   : > { %2002 = vmatprep.subr.mxu0 %v1894_v23  ;;  %2079 = vmatprep.subr.mxu1 %v1958_v24  ;;  %v1983_v23 = vld [vmem:[%s10382_s4 + $0x390] sm:$0xff]  ;;  %v1926_v24 = vld [vmem:[%s10382_s4 + $0x1c8] sm:$0xff] }
 0x142   : > { %2003 = vmatpush1.msra.mxu0 %v1893_v26  ;;  %2080 = vmatpush1.msra.mxu1 %v1957_v31  ;;  %v1982_v26 = vld [vmem:[%s10382_s4 + $0x388] sm:$0xff]  ;;  %v1925_v31 = vld [vmem:[%s10382_s4 + $0x1c0] sm:$0xff] }
 0x143   : > { %2004 = vmatprep.subr.mxu0 %v1892_v32  ;;  %2081 = vmatprep.subr.mxu1 %v1956_v33  ;;  %v1981_v32 = vld [vmem:[%s10382_s4 + $0x380] sm:$0xff]  ;;  %v1924_v33 = vld [vmem:[%s10382_s4 + $0x1b8] sm:$0xff] }
 0x144   : > { %2005 = vmatpush1.msra.mxu0 %v1891_v34  ;;  %2082 = vmatpush1.msra.mxu1 %v1955_v35  ;;  %v1980_v34 = vld [vmem:[%s10382_s4 + $0x378] sm:$0xff]  ;;  %v1923_v35 = vld [vmem:[%s10382_s4 + $0x1b0] sm:$0xff] }
 0x145   : > { %2006 = vmatprep.subr.mxu0 %v1890_v36  ;;  %2083 = vmatprep.subr.mxu1 %v1954_v37  ;;  %v1979_v36 = vld [vmem:[%s10382_s4 + $0x370] sm:$0xff]  ;;  %v1922_v37 = vld [vmem:[%s10382_s4 + $0x1a8] sm:$0xff] }
 0x146   : > { %2007 = vmatpush1.msra.mxu0 %v1889_v38  ;;  %2084 = vmatpush1.msra.mxu1 %v1953_v40  ;;  %v1978_v38 = vld [vmem:[%s10382_s4 + $0x368] sm:$0xff]  ;;  %v1921_v40 = vld [vmem:[%s10382_s4 + $0x1a0] sm:$0xff] }
 0x147   : > { %2008 = vmatprep.subr.mxu0 %v1888_v41  ;;  %2085 = vmatprep.subr.mxu1 %v1952_v42  ;;  %v1920_v41 = vld [vmem:[%s10382_s4 + $0x198] sm:$0xff]  ;;  %v1919_v42 = vld [vmem:[%s10382_s4 + $0x190] sm:$0xff] }
 0x148   : > { %2009 = vmatpush1.msra.mxu0 %v1887_v43  ;;  %2086 = vmatpush1.msra.mxu1 %v1951_v44  ;;  %v1918_v43 = vld [vmem:[%s10382_s4 + $0x188] sm:$0xff]  ;;  %v1917_v44 = vld [vmem:[%s10382_s4 + $0x180] sm:$0xff] }
 0x149   : > { %2010 = vmatprep.subr.mxu0 %v1886_v45  ;;  %2087 = vmatprep.subr.mxu1 %v1950_v46  ;;  %v1916_v45 = vld [vmem:[%s10382_s4 + $0x178] sm:$0xff]  ;;  %v1915_v46 = vld [vmem:[%s10382_s4 + $0x170] sm:$0xff] }
 0x14a   : > { %2011 = vmatpush1.msra.mxu0 %v1885_v19  ;;  %2088 = vmatpush1.msra.mxu1 %v1949_v20  ;;  %v1914_v19 = vld [vmem:[%s10382_s4 + $0x168] sm:$0xff]  ;;  %v1913_v20 = vld [vmem:[%s10382_s4 + $0x160] sm:$0xff] }
 0x14b   : > { %2012 = vmatprep.subr.mxu0 %v1884_v47  ;;  %2089 = vmatprep.subr.mxu1 %v1948_v48  ;;  %v1977_v47 = vld [vmem:[%s10382_s4 + $0x360] sm:$0xff]  ;;  %v1912_v48 = vld [vmem:[%s10382_s4 + $0x158] sm:$0xff] }
 0x14c   : > { %2013 = vmatpush1.msra.mxu0 %v1883_v49  ;;  %2090 = vmatpush1.msra.mxu1 %v1947_v51  ;;  %v1976_v49 = vld [vmem:[%s10382_s4 + $0x358] sm:$0xff]  ;;  %v1911_v51 = vld [vmem:[%s10382_s4 + $0x150] sm:$0xff] }
 0x14d   : > { %2014 = vmatprep.subr.mxu0 %v1882_v25  ;;  %2091 = vmatprep.subr.mxu1 %v1946_v62  ;;  %v1975_v25 = vld [vmem:[%s10382_s4 + $0x350] sm:$0xff]  ;;  %v1910_v62 = vld [vmem:[%s10382_s4 + $0x148] sm:$0xff] }
 0x14e   : > { %2015 = vmatpush1.msra.mxu0 %v1881_v63  ;;  %2092 = vmatpush1.msra.mxu1 %v1945_v27  ;;  %v1974_v63 = vld [vmem:[%s10382_s4 + $0x348] sm:$0xff]  ;;  %v1909_v27 = vld [vmem:[%s10382_s4 + $0x140] sm:$0xff] }
 0x14f   : > { %2016 = vmatprep.subr.mxu0 %v1880_v52  ;;  %2093 = vmatprep.subr.mxu1 %v1944_v53  ;;  %v1973_v52 = vld [vmem:[%s10382_s4 + $0x340] sm:$0xff]  ;;  %v1908_v53 = vld [vmem:[%s10382_s4 + $0x138] sm:$0xff] }
 0x150   : > { %2017 = vmatpush1.msra.mxu0 %v1879_v0  ;;  %2094 = vmatpush1.msra.mxu1 %v1943_v1  ;;  %v1972_v0 = vld [vmem:[%s10382_s4 + $0x338] sm:$0xff]  ;;  %v1907_v1 = vld [vmem:[%s10382_s4 + $0x130] sm:$0xff] }
 0x151   : > { %2018 = vmatprep.subr.mxu0 %v1878_v39  ;;  %2095 = vmatprep.subr.mxu1 %v1942_v54  ;;  %v1971_v39 = vld [vmem:[%s10382_s4 + $0x330] sm:$0xff]  ;;  %v1906_v54 = vld [vmem:[%s10382_s4 + $0x128] sm:$0xff] }
 0x152   : > { %2019 = vmatpush1.msra.mxu0 %v1877_v55  ;;  %2096 = vmatpush1.msra.mxu1 %v1941_v2  ;;  %v1970_v55 = vld [vmem:[%s10382_s4 + $0x328] sm:$0xff]  ;;  %v1905_v2 = vld [vmem:[%s10382_s4 + $0x120] sm:$0xff] }
 0x153   : > { %2020 = vmatprep.subr.mxu0 %v1876_v3  ;;  %2097 = vmatprep.subr.mxu1 %v1940_v50  ;;  %v1969_v3 = vld [vmem:[%s10382_s4 + $0x320] sm:$0xff]  ;;  %v1904_v50 = vld [vmem:[%s10382_s4 + $0x118] sm:$0xff] }
 0x154   : > { %2021 = vmatpush1.msra.mxu0 %v1875_v21  ;;  %2098 = vmatpush1.msra.mxu1 %v1939_v56  ;;  %v1968_v21 = vld [vmem:[%s10382_s4 + $0x318] sm:$0xff]  ;;  %v1903_v56 = vld [vmem:[%s10382_s4 + $0x110] sm:$0xff] }
 0x155   : > { %2022 = vmatprep.subr.mxu0 %v1874_v57  ;;  %2099 = vmatprep.subr.mxu1 %v1938_v58  ;;  %v1967_v57 = vld [vmem:[%s10382_s4 + $0x310] sm:$0xff]  ;;  %v1902_v58 = vld [vmem:[%s10382_s4 + $0x108] sm:$0xff] }
 0x156   : > { %2023 = vmatpush1.msra.mxu0 %v1873_v59  ;;  %2100 = vmatpush1.msra.mxu1 %v1937_v4  ;;  %v1966_v59 = vld [vmem:[%s10382_s4 + $0x308] sm:$0xff]  ;;  %v1901_v4 = vld [vmem:[%s10382_s4 + $0x100] sm:$0xff] }
 0x157   : > { %2024 = vmatprep.subr.mxu0 %v1872_v5  ;;  %2101 = vmatprep.subr.mxu1 %v1936_v6  ;;  %v1965_v5 = vld [vmem:[%s10382_s4 + $0x300] sm:$0xff]  ;;  %v5259_v6 = vld [vmem:[%s10382_s4 + $0x4b8] sm:$0xff] }
 0x158   : > { %2025 = vmatpush1.msra.mxu0 %v1871_v7  ;;  %2102 = vmatpush1.msra.mxu1 %v1935_v10  ;;  %v5323_v7 = vld [vmem:[%s10382_s4 + $0x6b8] sm:$0xff] }
 0x159   : > { %2026 = vmatprep.subr.mxu0 %v1870_v11  ;;  %2103 = vmatprep.subr.mxu1 %v1934_v60 }
 0x15a   : > { %2027 = vmatpush1.msra.mxu0 %v1869_v8  ;;  %2104 = vmatpush1.msra.mxu1 %v1933_v61 }
 0x15b   : > { %2028 = vmatprep.subr.mxu0 %v1932_v9  ;;  %2113 = vmatprep.subr.mxu1 %v1988_v13 }
 0x15c   : > { %2029 = vmatpush2.msra.mxu0 %v1931_v14  ;;  %2114 = vmatpush2.msra.mxu1 %v1987_v15 }
 0x15d   : > { %2030 = vmatprep.subr.mxu0 %v1930_v28  ;;  %2115 = vmatprep.subr.mxu1 %v1986_v29 }
 0x15e   : > { %2031 = vmatpush2.msra.mxu0 %v1929_v30  ;;  %2116 = vmatpush2.msra.mxu1 %v1985_v16 }
 0x15f   : > { %2032 = vmatprep.subr.mxu0 %v1928_v18  ;;  %2117 = vmatprep.subr.mxu1 %v1984_v17 }
 0x160   : > { %2033 = vmatpush2.msra.mxu0 %v1927_v22  ;;  %2118 = vmatpush2.msra.mxu1 %v1983_v23 }
 0x161   : > { %2034 = vmatprep.subr.mxu0 %v1926_v24  ;;  %2119 = vmatprep.subr.mxu1 %v1982_v26  ;;  %v5258_v26 = vld [vmem:[%s10382_s4 + $0x4b0] sm:$0xff] }
 0x162   : > { %2035 = vmatpush2.msra.mxu0 %v1925_v31  ;;  %2120 = vmatpush2.msra.mxu1 %v1981_v32  ;;  %v5322_v31 = vld [vmem:[%s10382_s4 + $0x6b0] sm:$0xff]  ;;  %v5257_v32 = vld [vmem:[%s10382_s4 + $0x4a8] sm:$0xff] }
 0x163   : > { %2036 = vmatprep.subr.mxu0 %v1924_v33  ;;  %2121 = vmatprep.subr.mxu1 %v1980_v34  ;;  %v5321_v33 = vld [vmem:[%s10382_s4 + $0x6a8] sm:$0xff] }
 0x164   : > { %2037 = vmatpush2.msra.mxu0 %v1923_v35  ;;  %2122 = vmatpush2.msra.mxu1 %v1979_v36  ;;  %v5256_v36 = vld [vmem:[%s10382_s4 + $0x4a0] sm:$0xff] }
 0x165   : > { %2038 = vmatprep.subr.mxu0 %v1922_v37  ;;  %2123 = vmatprep.subr.mxu1 %v1978_v38  ;;  %v5320_v37 = vld [vmem:[%s10382_s4 + $0x6a0] sm:$0xff] }
 0x166   : > { %2039 = vmatpush2.msra.mxu0 %v1921_v40  ;;  %2124 = vmatpush2.msra.mxu1 %v1977_v47  ;;  %v5252_v47 = vld [vmem:[%s10382_s4 + $0x480] sm:$0xff] }
 0x167   : > { %2040 = vmatprep.subr.mxu0 %v1920_v41  ;;  %2125 = vmatprep.subr.mxu1 %v1976_v49  ;;  %v5255_v41 = vld [vmem:[%s10382_s4 + $0x498] sm:$0xff] }
 0x168   : > { %2041 = vmatpush2.msra.mxu0 %v1919_v42  ;;  %2126 = vmatpush2.msra.mxu1 %v1975_v25  ;;  %v5319_v42 = vld [vmem:[%s10382_s4 + $0x698] sm:$0xff]  ;;  %v5250_v25 = vld [vmem:[%s10382_s4 + $0x470] sm:$0xff] }
 0x169   : > { %2042 = vmatprep.subr.mxu0 %v1918_v43  ;;  %2127 = vmatprep.subr.mxu1 %v1974_v63  ;;  %v5251_v49 = vld [vmem:[%s10382_s4 + $0x478] sm:$0xff]  ;;  %v5249_v63 = vld [vmem:[%s10382_s4 + $0x468] sm:$0xff] }
 0x16a   : > { %2043 = vmatpush2.msra.mxu0 %v1917_v44  ;;  %2128 = vmatpush2.msra.mxu1 %v1973_v52  ;;  %v5248_v52 = vld [vmem:[%s10382_s4 + $0x460] sm:$0xff] }
 0x16b   : > { %2044 = vmatprep.subr.mxu0 %v1916_v45  ;;  %2129 = vmatprep.subr.mxu1 %v1972_v0  ;;  %v5254_v45 = vld [vmem:[%s10382_s4 + $0x490] sm:$0xff]  ;;  %v5247_v0 = vld [vmem:[%s10382_s4 + $0x458] sm:$0xff] }
 0x16c   : > { %2045 = vmatpush2.msra.mxu0 %v1915_v46  ;;  %2130 = vmatpush2.msra.mxu1 %v1971_v39  ;;  %v5318_v46 = vld [vmem:[%s10382_s4 + $0x690] sm:$0xff] }
 0x16d   : > { %2046 = vmatprep.subr.mxu0 %v1914_v19  ;;  %2131 = vmatprep.subr.mxu1 %v1970_v55  ;;  %v5253_v19 = vld [vmem:[%s10382_s4 + $0x488] sm:$0xff]  ;;  %v5246_v39 = vld [vmem:[%s10382_s4 + $0x450] sm:$0xff] }
 0x16e   : > { %2047 = vmatpush2.msra.mxu0 %v1913_v20  ;;  %2132 = vmatpush2.msra.mxu1 %v1969_v3  ;;  %v5317_v20 = vld [vmem:[%s10382_s4 + $0x688] sm:$0xff]  ;;  %v5244_v3 = vld [vmem:[%s10382_s4 + $0x440] sm:$0xff] }
 0x16f   : > { %2048 = vmatprep.subr.mxu0 %v1912_v48  ;;  %2133 = vmatprep.subr.mxu1 %v1968_v21  ;;  %v5316_v48 = vld [vmem:[%s10382_s4 + $0x680] sm:$0xff]  ;;  %v5245_v55 = vld [vmem:[%s10382_s4 + $0x448] sm:$0xff]  ;;  %v5243_v21 = vld [vmem:[%s10382_s4 + $0x438] sm:$0xff] }
 0x170   : > { %2049 = vmatpush2.msra.mxu0 %v1911_v51  ;;  %2134 = vmatpush2.msra.mxu1 %v1967_v57  ;;  %v5315_v51 = vld [vmem:[%s10382_s4 + $0x678] sm:$0xff]  ;;  %v5242_v57 = vld [vmem:[%s10382_s4 + $0x430] sm:$0xff] }
 0x171   : > { %2050 = vmatprep.subr.mxu0 %v1910_v62  ;;  %2135 = vmatprep.subr.mxu1 %v1966_v59  ;;  %v5314_v62 = vld [vmem:[%s10382_s4 + $0x670] sm:$0xff]  ;;  %v5241_v59 = vld [vmem:[%s10382_s4 + $0x428] sm:$0xff] }
 0x172   : > { %2051 = vmatpush2.msra.mxu0 %v1909_v27  ;;  %2136 = vmatpush2.msra.mxu1 %v1965_v5  ;;  %v5313_v27 = vld [vmem:[%s10382_s4 + $0x668] sm:$0xff]  ;;  %v5240_v5 = vld [vmem:[%s10382_s4 + $0x420] sm:$0xff] }
 0x173   : > { %2052 = vmatprep.subr.mxu0 %v1908_v53  ;;  %2271 = vmatprep.subr.mxu1 %v5259_v6  ;;  %v5312_v53 = vld [vmem:[%s10382_s4 + $0x660] sm:$0xff] }
 0x174   : > { %2053 = vmatpush2.msra.mxu0 %v1907_v1  ;;  %v5311_v1 = vld [vmem:[%s10382_s4 + $0x658] sm:$0xff]  ;;  %v5304_v6 = vld [vmem:[%s10382_s4 + $0x620] sm:$0xff] }
 0x175   : > { %2054 = vmatprep.subr.mxu0 %v1906_v54  ;;  %v5310_v54 = vld [vmem:[%s10382_s4 + $0x650] sm:$0xff] }
 0x176   : > { %2055 = vmatpush2.msra.mxu0 %v1905_v2  ;;  %v5309_v2 = vld [vmem:[%s10382_s4 + $0x648] sm:$0xff] }
 0x177   : > { %2056 = vmatprep.subr.mxu0 %v1904_v50  ;;  %v5308_v50 = vld [vmem:[%s10382_s4 + $0x640] sm:$0xff] }
 0x178   : > { %2057 = vmatpush2.msra.mxu0 %v1903_v56  ;;  %v5307_v56 = vld [vmem:[%s10382_s4 + $0x638] sm:$0xff] }
 0x179   : > { %2058 = vmatprep.subr.mxu0 %v1902_v58  ;;  %v5306_v58 = vld [vmem:[%s10382_s4 + $0x630] sm:$0xff] }
 0x17a   : > { %2059 = vmatpush2.msra.mxu0 %v1901_v4  ;;  %v5305_v4 = vld [vmem:[%s10382_s4 + $0x628] sm:$0xff] }
 0x17b   : > { %2348 = vmatprep.subr.mxu0 %v5323_v7  ;;  %v5239_v7 = vld [vmem:[%s10382_s4 + $0x418] sm:$0xff] }
 0x1ee   : > { %v1610_v10 = vpop.f32.mrf.mxu0  ;;  %v1687_v11 = vpop.f32.mrf.mxu1 }
 0x1f0   : > { %v1612_v60 = vpop.f32.mrf.mxu0  ;;  %v1689_v8 = vpop.f32.mrf.mxu1 }
 0x1f4   : > { %v1616_v61 = vpop.f32.mrf.mxu0  ;;  %v1693_v9 = vpop.f32.mrf.mxu1 }
 0x1f6   : > { %v1618_v13 = vpop.f32.mrf.mxu0  ;;  %v1695_v14 = vpop.f32.mrf.mxu1 }
 0x1f8   : > { %v1773_v15 = vpop.f32.mrf.mxu0  ;;  %v1850_v28 = vpop.f32.mrf.mxu1 }
 0x1f9   : > { %v7060_v17 = vmax.f32 %v1610_v10, %v1773_v15  ;;  %v7062_v22 = vmax.f32 %v1687_v11, %v1850_v28  ;;  %v5303_v10 = vld [vmem:[%s10382_s4 + $0x618] sm:$0xff]  ;;  %v5238_v11 = vld [vmem:[%s10382_s4 + $0x410] sm:$0xff] }
 0x1fa   : > { %v1775_v29 = vpop.f32.mrf.mxu0  ;;  %v1852_v30 = vpop.f32.mrf.mxu1  ;;  %v5299_v15 = vld [vmem:[%s10382_s4 + $0x5f8] sm:$0xff]  ;;  %v5234_v28 = vld [vmem:[%s10382_s4 + $0x3f0] sm:$0xff] }
 0x1fb   : > { %v1862_v16 = vmax.f32 %v1612_v60, %v1775_v29  ;;  %v1864_v18 = vmax.f32 %v1689_v8, %v1852_v30  ;;  %v5302_v60 = vld [vmem:[%s10382_s4 + $0x610] sm:$0xff]  ;;  %v5237_v8 = vld [vmem:[%s10382_s4 + $0x408] sm:$0xff] }
 0x1fc   : > { %v1779_v23 = vpop.f32.mrf.mxu0  ;;  %v1856_v24 = vpop.f32.mrf.mxu1  ;;  %v5298_v29 = vld [vmem:[%s10382_s4 + $0x5f0] sm:$0xff]  ;;  %v5233_v30 = vld [vmem:[%s10382_s4 + $0x3e8] sm:$0xff] }
 0x1fd   : > { %2060 = vmatprep.mubr.f32.mxu0 %v1862_v16  ;;  %5226 = vmatprep.mubr.msk.f32.mxu1 %vm1989_vm6, %v1864_v18  ;;  %v7095_v43 = vmax.f32 %v1616_v61, %v1779_v23  ;;  %v7097_v44 = vmax.f32 %v1693_v9, %v1856_v24  ;;  %v5301_v61 = vld [vmem:[%s10382_s4 + $0x608] sm:$0xff]  ;;  %v5236_v9 = vld [vmem:[%s10382_s4 + $0x400] sm:$0xff]  ;;  %v5231_v24 = vld [vmem:[%s10382_s4 + $0x3d8] sm:$0xff] }
 0x1fe   : > { %v1781_v34 = vpop.f32.mrf.mxu0  ;;  %v1858_v35 = vpop.f32.mrf.mxu1  ;;  %2061 = vmatmul.mubr.f32.vlgmr.msra.gmra.mxu0 %v7060_v17  ;;  %2138 = vmatmul.mubr.f32.vlgmr.msra.gmra.mxu1 %v7062_v22  ;;  %v5296_v23 = vld [vmem:[%s10382_s4 + $0x5e0] sm:$0xff] }
 0x1ff   : > { %v7085_v38 = vmax.f32 %v1618_v13, %v1781_v34  ;;  %v7087_v40 = vmax.f32 %v1695_v14, %v1858_v35  ;;  %2272 = vmatpush1.msra.mxu1 %v5258_v26  ;;  %2349 = vmatpush1.msra.mxu0 %v5322_v31  ;;  %v5300_v13 = vld [vmem:[%s10382_s4 + $0x600] sm:$0xff]  ;;  %v5235_v14 = vld [vmem:[%s10382_s4 + $0x3f8] sm:$0xff]  ;;  %v5230_v31 = vld [vmem:[%s10382_s4 + $0x3d0] sm:$0xff] }
 0x200   : > { %2273 = vmatprep.subr.mxu1 %v5257_v32  ;;  %2350 = vmatprep.subr.mxu0 %v5321_v33  ;;  %v5295_v26 = vld [vmem:[%s10382_s4 + $0x5d8] sm:$0xff]  ;;  %v5294_v32 = vld [vmem:[%s10382_s4 + $0x5d0] sm:$0xff]  ;;  %v5229_v33 = vld [vmem:[%s10382_s4 + $0x3c8] sm:$0xff] }
 0x201   : > { %2274 = vmatpush1.msra.mxu1 %v5256_v36  ;;  %2351 = vmatpush1.msra.mxu0 %v5320_v37  ;;  %v5293_v34 = vld [vmem:[%s10382_s4 + $0x5c8] sm:$0xff]  ;;  %v5228_v35 = vld [vmem:[%s10382_s4 + $0x3c0] sm:$0xff]  ;;  %v5291_v37 = vld [vmem:[%s10382_s4 + $0x5b8] sm:$0xff] }
 0x202   : > { %2066 = vmatprep.mubr.f32.mxu0 %v7085_v38  ;;  %5227 = vmatprep.mubr.msk.f32.mxu1 %vm1989_vm6, %v7087_v40  ;;  %v5292_v36 = vld [vmem:[%s10382_s4 + $0x5c0] sm:$0xff] }
 0x203   : > { %2275 = vmatprep.subr.mxu1 %v5255_v41  ;;  %2352 = vmatprep.subr.mxu0 %v5319_v42  ;;  %v5347_v41 = vld [vmem:[%s10382_s4 + $0x778] sm:$0xff]  ;;  %v5290_v42 = vld [vmem:[%s10382_s4 + $0x5b0] sm:$0xff] }
 0x204   : > { %2067 = vmatmul.mubr.f32.gmra.mxu0 %v7095_v43  ;;  %2144 = vmatmul.mubr.f32.gmra.mxu1 %v7097_v44 }
 0x205   : > { %2276 = vmatpush1.msra.mxu1 %v5254_v45  ;;  %2353 = vmatpush1.msra.mxu0 %v5318_v46  ;;  %v5346_v45 = vld [vmem:[%s10382_s4 + $0x770] sm:$0xff]  ;;  %v5289_v46 = vld [vmem:[%s10382_s4 + $0x5a8] sm:$0xff] }
 0x206   : > { %2277 = vmatprep.subr.mxu1 %v5253_v19  ;;  %2335 = vmatprep.mubr.f32.mxu1 %v1862_v16  ;;  %v5297_v16 = vld [vmem:[%s10382_s4 + $0x5e8] sm:$0xff] }
 0x207   : > { %2354 = vmatprep.subr.mxu0 %v5317_v20  ;;  %5348 = vmatprep.mubr.msk.f32.mxu0 %vm1989_vm6, %v1864_v18  ;;  %v5232_v18 = vld [vmem:[%s10382_s4 + $0x3e0] sm:$0xff]  ;;  %v5345_v19 = vld [vmem:[%s10382_s4 + $0x768] sm:$0xff] }
 0x208   : > { %2278 = vmatpush1.msra.mxu1 %v5252_v47  ;;  %2355 = vmatpush1.msra.mxu0 %v5316_v48  ;;  %v5288_v20 = vld [vmem:[%s10382_s4 + $0x5a0] sm:$0xff]  ;;  %v5287_v48 = vld [vmem:[%s10382_s4 + $0x598] sm:$0xff] }
 0x209   : > { %2279 = vmatprep.subr.mxu1 %v5251_v49  ;;  %2356 = vmatprep.subr.mxu0 %v5315_v51  ;;  %v5344_v47 = vld [vmem:[%s10382_s4 + $0x760] sm:$0xff]  ;;  %v5343_v49 = vld [vmem:[%s10382_s4 + $0x758] sm:$0xff]  ;;  %v5286_v51 = vld [vmem:[%s10382_s4 + $0x590] sm:$0xff] }
 0x20a   : > { %2280 = vmatpush1.msra.mxu1 %v5250_v25  ;;  %2357 = vmatpush1.msra.mxu0 %v5314_v62  ;;  %v5342_v25 = vld [vmem:[%s10382_s4 + $0x750] sm:$0xff]  ;;  %v5285_v62 = vld [vmem:[%s10382_s4 + $0x588] sm:$0xff] }
 0x20b   : > { %2281 = vmatprep.subr.mxu1 %v5249_v63  ;;  %2358 = vmatprep.subr.mxu0 %v5313_v27  ;;  %v5341_v63 = vld [vmem:[%s10382_s4 + $0x748] sm:$0xff]  ;;  %v5284_v27 = vld [vmem:[%s10382_s4 + $0x580] sm:$0xff] }
 0x20c   : > { %2282 = vmatpush1.msra.mxu1 %v5248_v52  ;;  %2359 = vmatpush1.msra.mxu0 %v5312_v53  ;;  %v5340_v52 = vld [vmem:[%s10382_s4 + $0x740] sm:$0xff]  ;;  %v5283_v53 = vld [vmem:[%s10382_s4 + $0x578] sm:$0xff] }
 0x20d   : > { %2283 = vmatprep.subr.mxu1 %v5247_v0  ;;  %2360 = vmatprep.subr.mxu0 %v5311_v1  ;;  %v5339_v0 = vld [vmem:[%s10382_s4 + $0x738] sm:$0xff]  ;;  %v5282_v1 = vld [vmem:[%s10382_s4 + $0x570] sm:$0xff] }
 0x20e   : > { %2284 = vmatpush1.msra.mxu1 %v5246_v39  ;;  %2361 = vmatpush1.msra.mxu0 %v5310_v54  ;;  %v5338_v39 = vld [vmem:[%s10382_s4 + $0x730] sm:$0xff]  ;;  %v5281_v54 = vld [vmem:[%s10382_s4 + $0x568] sm:$0xff] }
 0x20f   : > { %2285 = vmatprep.subr.mxu1 %v5245_v55  ;;  %2362 = vmatprep.subr.mxu0 %v5309_v2  ;;  %v5337_v55 = vld [vmem:[%s10382_s4 + $0x728] sm:$0xff]  ;;  %v5280_v2 = vld [vmem:[%s10382_s4 + $0x560] sm:$0xff] }
 0x210   : > { %2286 = vmatpush1.msra.mxu1 %v5244_v3  ;;  %2363 = vmatpush1.msra.mxu0 %v5308_v50  ;;  %v5336_v3 = vld [vmem:[%s10382_s4 + $0x720] sm:$0xff]  ;;  %v5279_v50 = vld [vmem:[%s10382_s4 + $0x558] sm:$0xff] }
 0x211   : > { %2287 = vmatprep.subr.mxu1 %v5243_v21  ;;  %2364 = vmatprep.subr.mxu0 %v5307_v56  ;;  %v5335_v21 = vld [vmem:[%s10382_s4 + $0x718] sm:$0xff]  ;;  %v5278_v56 = vld [vmem:[%s10382_s4 + $0x550] sm:$0xff] }
 0x212   : > { %2288 = vmatpush1.msra.mxu1 %v5242_v57  ;;  %2365 = vmatpush1.msra.mxu0 %v5306_v58  ;;  %v5334_v57 = vld [vmem:[%s10382_s4 + $0x710] sm:$0xff]  ;;  %v5277_v58 = vld [vmem:[%s10382_s4 + $0x548] sm:$0xff] }
 0x213   : > { %2289 = vmatprep.subr.mxu1 %v5241_v59  ;;  %2366 = vmatprep.subr.mxu0 %v5305_v4  ;;  %v5333_v59 = vld [vmem:[%s10382_s4 + $0x708] sm:$0xff]  ;;  %v5276_v4 = vld [vmem:[%s10382_s4 + $0x540] sm:$0xff] }
 0x214   : > { %2290 = vmatpush1.msra.mxu1 %v5240_v5  ;;  %2367 = vmatpush1.msra.mxu0 %v5304_v6  ;;  %v5332_v5 = vld [vmem:[%s10382_s4 + $0x700] sm:$0xff]  ;;  %v5275_v6 = vld [vmem:[%s10382_s4 + $0x538] sm:$0xff] }
 0x215   : > { %2291 = vmatprep.subr.mxu1 %v5239_v7  ;;  %2368 = vmatprep.subr.mxu0 %v5303_v10  ;;  %v5331_v7 = vld [vmem:[%s10382_s4 + $0x6f8] sm:$0xff]  ;;  %v5274_v10 = vld [vmem:[%s10382_s4 + $0x530] sm:$0xff] }
 0x216   : > { %2292 = vmatpush1.msra.mxu1 %v5238_v11  ;;  %2369 = vmatpush1.msra.mxu0 %v5302_v60  ;;  %v5330_v11 = vld [vmem:[%s10382_s4 + $0x6f0] sm:$0xff]  ;;  %v5273_v60 = vld [vmem:[%s10382_s4 + $0x528] sm:$0xff] }
 0x217   : > { %2293 = vmatprep.subr.mxu1 %v5237_v8  ;;  %2370 = vmatprep.subr.mxu0 %v5301_v61  ;;  %v5329_v8 = vld [vmem:[%s10382_s4 + $0x6e8] sm:$0xff]  ;;  %v5272_v61 = vld [vmem:[%s10382_s4 + $0x520] sm:$0xff] }
 0x218   : > { %2294 = vmatpush1.msra.mxu1 %v5236_v9  ;;  %2371 = vmatpush1.msra.mxu0 %v5300_v13  ;;  %v5328_v9 = vld [vmem:[%s10382_s4 + $0x6e0] sm:$0xff]  ;;  %v5271_v13 = vld [vmem:[%s10382_s4 + $0x518] sm:$0xff] }
 0x219   : > { %2295 = vmatprep.subr.mxu1 %v5235_v14  ;;  %2372 = vmatprep.subr.mxu0 %v5299_v15  ;;  %v5327_v14 = vld [vmem:[%s10382_s4 + $0x6d8] sm:$0xff]  ;;  %v5270_v15 = vld [vmem:[%s10382_s4 + $0x510] sm:$0xff] }
 0x21a   : > { %2296 = vmatpush1.msra.mxu1 %v5234_v28  ;;  %2373 = vmatpush1.msra.mxu0 %v5298_v29  ;;  %v5326_v28 = vld [vmem:[%s10382_s4 + $0x6d0] sm:$0xff]  ;;  %v5269_v29 = vld [vmem:[%s10382_s4 + $0x508] sm:$0xff] }
 0x21b   : > { %2297 = vmatprep.subr.mxu1 %v5233_v30  ;;  %2374 = vmatprep.subr.mxu0 %v5297_v16  ;;  %v5325_v30 = vld [vmem:[%s10382_s4 + $0x6c8] sm:$0xff]  ;;  %v5268_v16 = vld [vmem:[%s10382_s4 + $0x500] sm:$0xff] }
 0x21c   : > { %2298 = vmatpush1.msra.mxu1 %v5232_v18  ;;  %2375 = vmatpush1.msra.mxu0 %v5296_v23  ;;  %v5324_v18 = vld [vmem:[%s10382_s4 + $0x6c0] sm:$0xff]  ;;  %v5267_v23 = vld [vmem:[%s10382_s4 + $0x4f8] sm:$0xff] }
 0x21d   : > { %2299 = vmatprep.subr.mxu1 %v5231_v24  ;;  %2376 = vmatprep.subr.mxu0 %v5295_v26  ;;  %v5266_v24 = vld [vmem:[%s10382_s4 + $0x4f0] sm:$0xff]  ;;  %v5265_v26 = vld [vmem:[%s10382_s4 + $0x4e8] sm:$0xff] }
 0x21e   : > { %2300 = vmatpush1.msra.mxu1 %v5230_v31  ;;  %2377 = vmatpush1.msra.mxu0 %v5294_v32  ;;  %v5264_v31 = vld [vmem:[%s10382_s4 + $0x4e0] sm:$0xff]  ;;  %v5263_v32 = vld [vmem:[%s10382_s4 + $0x4d8] sm:$0xff] }
 0x21f   : > { %2301 = vmatprep.subr.mxu1 %v5229_v33  ;;  %2378 = vmatprep.subr.mxu0 %v5293_v34  ;;  %v5262_v33 = vld [vmem:[%s10382_s4 + $0x4d0] sm:$0xff]  ;;  %v5411_v34 = vld [vmem:[%s10383_s5 + $0x5a8] sm:$0xff] }
 0x220   : > { %2302 = vmatpush1.msra.mxu1 %v5228_v35  ;;  %2379 = vmatpush1.msra.mxu0 %v5292_v36  ;;  %v5410_v35 = vld [vmem:[%s10383_s5 + $0x5a0] sm:$0xff] }
 0x221   : > { %2303 = vmatprep.subr.mxu1 %v5291_v37  ;;  %2388 = vmatprep.subr.mxu0 %v5347_v41  ;;  %v5406_v36 = vld [vmem:[%s10383_s5 + $0x580] sm:$0xff]  ;;  %v5408_v37 = vld [vmem:[%s10383_s5 + $0x590] sm:$0xff]  ;;  %v5403_v41 = vld [vmem:[%s10383_s5 + $0x568] sm:$0xff] }
 0x222   : > { %2304 = vmatpush2.msra.mxu1 %v5290_v42  ;;  %2389 = vmatpush2.msra.mxu0 %v5346_v45  ;;  %v5405_v42 = vld [vmem:[%s10383_s5 + $0x578] sm:$0xff]  ;;  %v5402_v45 = vld [vmem:[%s10383_s5 + $0x560] sm:$0xff] }
 0x223   : > { %2305 = vmatprep.subr.mxu1 %v5289_v46  ;;  %2390 = vmatprep.subr.mxu0 %v5345_v19  ;;  %v5404_v46 = vld [vmem:[%s10383_s5 + $0x570] sm:$0xff]  ;;  %v5399_v19 = vld [vmem:[%s10383_s5 + $0x548] sm:$0xff] }
 0x224   : > { %2306 = vmatpush2.msra.mxu1 %v5288_v20  ;;  %2391 = vmatpush2.msra.mxu0 %v5344_v47  ;;  %v5401_v20 = vld [vmem:[%s10383_s5 + $0x558] sm:$0xff]  ;;  %v5398_v47 = vld [vmem:[%s10383_s5 + $0x540] sm:$0xff] }
 0x225   : > { %2307 = vmatprep.subr.mxu1 %v5287_v48  ;;  %2392 = vmatprep.subr.mxu0 %v5343_v49  ;;  %v5400_v48 = vld [vmem:[%s10383_s5 + $0x550] sm:$0xff]  ;;  %v5395_v49 = vld [vmem:[%s10383_s5 + $0x528] sm:$0xff] }
 0x226   : > { %2308 = vmatpush2.msra.mxu1 %v5286_v51  ;;  %2393 = vmatpush2.msra.mxu0 %v5342_v25  ;;  %v5397_v51 = vld [vmem:[%s10383_s5 + $0x538] sm:$0xff]  ;;  %v5394_v25 = vld [vmem:[%s10383_s5 + $0x520] sm:$0xff] }
 0x227   : > { %2309 = vmatprep.subr.mxu1 %v5285_v62  ;;  %2394 = vmatprep.subr.mxu0 %v5341_v63  ;;  %v5396_v62 = vld [vmem:[%s10383_s5 + $0x530] sm:$0xff]  ;;  %v5391_v63 = vld [vmem:[%s10383_s5 + $0x508] sm:$0xff] }
 0x228   : > { %2310 = vmatpush2.msra.mxu1 %v5284_v27  ;;  %2395 = vmatpush2.msra.mxu0 %v5340_v52  ;;  %v5393_v27 = vld [vmem:[%s10383_s5 + $0x518] sm:$0xff]  ;;  %v5390_v52 = vld [vmem:[%s10383_s5 + $0x500] sm:$0xff] }
 0x229   : > { %2311 = vmatprep.subr.mxu1 %v5283_v53  ;;  %2396 = vmatprep.subr.mxu0 %v5339_v0  ;;  %v5392_v53 = vld [vmem:[%s10383_s5 + $0x510] sm:$0xff]  ;;  %v5387_v0 = vld [vmem:[%s10383_s5 + $0x4e8] sm:$0xff] }
 0x22a   : > { %2312 = vmatpush2.msra.mxu1 %v5282_v1  ;;  %2397 = vmatpush2.msra.mxu0 %v5338_v39  ;;  %v5389_v1 = vld [vmem:[%s10383_s5 + $0x4f8] sm:$0xff]  ;;  %v5386_v39 = vld [vmem:[%s10383_s5 + $0x4e0] sm:$0xff] }
 0x22b   : > { %2313 = vmatprep.subr.mxu1 %v5281_v54  ;;  %2398 = vmatprep.subr.mxu0 %v5337_v55  ;;  %v5388_v54 = vld [vmem:[%s10383_s5 + $0x4f0] sm:$0xff]  ;;  %v5383_v55 = vld [vmem:[%s10383_s5 + $0x4c8] sm:$0xff] }
 0x22c   : > { %2314 = vmatpush2.msra.mxu1 %v5280_v2  ;;  %2399 = vmatpush2.msra.mxu0 %v5336_v3  ;;  %v5385_v2 = vld [vmem:[%s10383_s5 + $0x4d8] sm:$0xff]  ;;  %v5382_v3 = vld [vmem:[%s10383_s5 + $0x4c0] sm:$0xff] }
 0x22d   : > { %2315 = vmatprep.subr.mxu1 %v5279_v50  ;;  %2400 = vmatprep.subr.mxu0 %v5335_v21  ;;  %v5384_v50 = vld [vmem:[%s10383_s5 + $0x4d0] sm:$0xff]  ;;  %v5379_v21 = vld [vmem:[%s10383_s5 + $0x4a8] sm:$0xff] }
 0x22e   : > { %2316 = vmatpush2.msra.mxu1 %v5278_v56  ;;  %2401 = vmatpush2.msra.mxu0 %v5334_v57  ;;  %v5381_v56 = vld [vmem:[%s10383_s5 + $0x4b8] sm:$0xff]  ;;  %v5378_v57 = vld [vmem:[%s10383_s5 + $0x4a0] sm:$0xff] }
 0x22f   : > { %2317 = vmatprep.subr.mxu1 %v5277_v58  ;;  %2402 = vmatprep.subr.mxu0 %v5333_v59  ;;  %v5380_v58 = vld [vmem:[%s10383_s5 + $0x4b0] sm:$0xff]  ;;  %v5375_v59 = vld [vmem:[%s10383_s5 + $0x488] sm:$0xff] }
 0x230   : > { %2318 = vmatpush2.msra.mxu1 %v5276_v4  ;;  %2403 = vmatpush2.msra.mxu0 %v5332_v5  ;;  %v5377_v4 = vld [vmem:[%s10383_s5 + $0x498] sm:$0xff]  ;;  %v5374_v5 = vld [vmem:[%s10383_s5 + $0x480] sm:$0xff] }
 0x231   : > { %2319 = vmatprep.subr.mxu1 %v5275_v6  ;;  %2404 = vmatprep.subr.mxu0 %v5331_v7  ;;  %v5376_v6 = vld [vmem:[%s10383_s5 + $0x490] sm:$0xff]  ;;  %v5371_v7 = vld [vmem:[%s10383_s5 + $0x468] sm:$0xff] }
 0x232   : > { %2320 = vmatpush2.msra.mxu1 %v5274_v10  ;;  %2405 = vmatpush2.msra.mxu0 %v5330_v11  ;;  %v5373_v10 = vld [vmem:[%s10383_s5 + $0x478] sm:$0xff]  ;;  %v5370_v11 = vld [vmem:[%s10383_s5 + $0x460] sm:$0xff] }
 0x233   : > { %2321 = vmatprep.subr.mxu1 %v5273_v60  ;;  %2406 = vmatprep.subr.mxu0 %v5329_v8  ;;  %v5372_v60 = vld [vmem:[%s10383_s5 + $0x470] sm:$0xff]  ;;  %v5367_v8 = vld [vmem:[%s10383_s5 + $0x448] sm:$0xff] }
 0x234   : > { %2322 = vmatpush2.msra.mxu1 %v5272_v61  ;;  %2407 = vmatpush2.msra.mxu0 %v5328_v9  ;;  %v5369_v61 = vld [vmem:[%s10383_s5 + $0x458] sm:$0xff]  ;;  %v5366_v9 = vld [vmem:[%s10383_s5 + $0x440] sm:$0xff] }
 0x235   : > { %2323 = vmatprep.subr.mxu1 %v5271_v13  ;;  %2408 = vmatprep.subr.mxu0 %v5327_v14  ;;  %v5368_v13 = vld [vmem:[%s10383_s5 + $0x450] sm:$0xff]  ;;  %v5363_v14 = vld [vmem:[%s10383_s5 + $0x428] sm:$0xff] }
 0x236   : > { %2324 = vmatpush2.msra.mxu1 %v5270_v15  ;;  %2409 = vmatpush2.msra.mxu0 %v5326_v28  ;;  %v5365_v15 = vld [vmem:[%s10383_s5 + $0x438] sm:$0xff]  ;;  %v5362_v28 = vld [vmem:[%s10383_s5 + $0x420] sm:$0xff] }
 0x237   : > { %2325 = vmatprep.subr.mxu1 %v5269_v29  ;;  %2410 = vmatprep.subr.mxu0 %v5325_v30  ;;  %v5364_v29 = vld [vmem:[%s10383_s5 + $0x430] sm:$0xff]  ;;  %v5359_v30 = vld [vmem:[%s10383_s5 + $0x408] sm:$0xff] }
 0x238   : > { %2326 = vmatpush2.msra.mxu1 %v5268_v16  ;;  %2411 = vmatpush2.msra.mxu0 %v5324_v18  ;;  %v5361_v16 = vld [vmem:[%s10383_s5 + $0x418] sm:$0xff]  ;;  %v5358_v18 = vld [vmem:[%s10383_s5 + $0x400] sm:$0xff] }
 0x239   : > { %2327 = vmatprep.subr.mxu1 %v5267_v23  ;;  %2413 = vmatmul.mubr.f32.vlgmr.msra.gmra.mxu0 %v7062_v22  ;;  %v5261_v22 = vld [vmem:[%s10382_s4 + $0x4c8] sm:$0xff]  ;;  %v5360_v23 = vld [vmem:[%s10383_s5 + $0x410] sm:$0xff] }
 0x23a   : > { %2328 = vmatpush2.msra.mxu1 %v5266_v24  ;;  %5349 = vmatprep.mubr.msk.f32.mxu0 %vm1989_vm6, %v7087_v40  ;;  %v5260_v40 = vld [vmem:[%s10382_s4 + $0x4c0] sm:$0xff]  ;;  %v5355_v24 = vld [vmem:[%s10383_s5 + $0x3e8] sm:$0xff] }
 0x23b   : > { %2329 = vmatprep.subr.mxu1 %v5265_v26  ;;  %2684 = vmatprep.subr.mxu0 %v5411_v34  ;;  %v5357_v26 = vld [vmem:[%s10383_s5 + $0x3f8] sm:$0xff]  ;;  %v5352_v34 = vld [vmem:[%s10383_s5 + $0x3d0] sm:$0xff] }
 0x23c   : > { %2330 = vmatpush2.msra.mxu1 %v5264_v31  ;;  %2685 = vmatpush1.msra.mxu0 %v5410_v35  ;;  %v5354_v31 = vld [vmem:[%s10383_s5 + $0x3e0] sm:$0xff]  ;;  %v5469_v35 = vld [vmem:[%s10383_s5 + $0x778] sm:$0xff] }
 0x23d   : > { %2331 = vmatprep.subr.mxu1 %v5263_v32  ;;  %2419 = vmatmul.mubr.f32.gmra.mxu0 %v7097_v44  ;;  %v5413_v44 = vld [vmem:[%s10383_s5 + $0x5b8] sm:$0xff]  ;;  %v5356_v32 = vld [vmem:[%s10383_s5 + $0x3f0] sm:$0xff] }
 0x23e   : > { %2332 = vmatpush2.msra.mxu1 %v5262_v33  ;;  %v5351_v33 = vld [vmem:[%s10383_s5 + $0x3c8] sm:$0xff] }
 0x23f   : > { %2333 = vmatprep.subr.mxu1 %v5261_v22  ;;  %v5353_v22 = vld [vmem:[%s10383_s5 + $0x3d8] sm:$0xff] }
 0x240   : > { %2334 = vmatpush2.msra.mxu1 %v5260_v40  ;;  %v5350_v40 = vld [vmem:[%s10383_s5 + $0x3c0] sm:$0xff] }
 0x241   : > { %2336 = vmatmul.mubr.f32.vlgmr.msra.gmra.mxu1 %v7060_v17  ;;  %2755 = vmatprep.subr.mxu1 %v5413_v44  ;;  %v5412_v17 = vld [vmem:[%s10383_s5 + $0x5b0] sm:$0xff]  ;;  %v5467_v44 = vld [vmem:[%s10383_s5 + $0x768] sm:$0xff] }
 0x242   : > { %2341 = vmatprep.mubr.f32.mxu1 %v7085_v38  ;;  %v5407_v38 = vld [vmem:[%s10383_s5 + $0x588] sm:$0xff]  ;;  %2756 = vmatpush1.msra.mxu1 %v5412_v17  ;;  %v5466_v17 = vld [vmem:[%s10383_s5 + $0x760] sm:$0xff] }
 0x243   : > { %2686 = vmatprep.subr.mxu0 %v5407_v38  ;;  %v5468_v38 = vld [vmem:[%s10383_s5 + $0x770] sm:$0xff] }
 0x244   : > { %2687 = vmatpush1.msra.mxu0 %v5406_v36  ;;  %v5465_v36 = vld [vmem:[%s10383_s5 + $0x758] sm:$0xff] }
 0x245   : > { %2342 = vmatmul.mubr.f32.gmra.mxu1 %v7095_v43  ;;  %v5409_v43 = vld [vmem:[%s10383_s5 + $0x598] sm:$0xff]  ;;  %2688 = vmatprep.subr.mxu0 %v5403_v41  ;;  %v5464_v41 = vld [vmem:[%s10383_s5 + $0x750] sm:$0xff] }
 0x246   : > { %2757 = vmatprep.subr.mxu1 %v5409_v43  ;;  %2689 = vmatpush1.msra.mxu0 %v5402_v45  ;;  %v5463_v43 = vld [vmem:[%s10383_s5 + $0x748] sm:$0xff]  ;;  %v5461_v45 = vld [vmem:[%s10383_s5 + $0x738] sm:$0xff] }
 0x247   : > { %2758 = vmatpush1.msra.mxu1 %v5408_v37  ;;  %2690 = vmatprep.subr.mxu0 %v5399_v19  ;;  %v5462_v37 = vld [vmem:[%s10383_s5 + $0x740] sm:$0xff]  ;;  %v5460_v19 = vld [vmem:[%s10383_s5 + $0x730] sm:$0xff] }
 0x248   : > { %2759 = vmatprep.subr.mxu1 %v5405_v42  ;;  %2691 = vmatpush1.msra.mxu0 %v5398_v47  ;;  %v5459_v42 = vld [vmem:[%s10383_s5 + $0x728] sm:$0xff]  ;;  %v5457_v47 = vld [vmem:[%s10383_s5 + $0x718] sm:$0xff] }
 0x249   : > { %2760 = vmatpush1.msra.mxu1 %v5404_v46  ;;  %2692 = vmatprep.subr.mxu0 %v5395_v49  ;;  %v5458_v46 = vld [vmem:[%s10383_s5 + $0x720] sm:$0xff]  ;;  %v5456_v49 = vld [vmem:[%s10383_s5 + $0x710] sm:$0xff] }
 0x24a   : > { %2761 = vmatprep.subr.mxu1 %v5401_v20  ;;  %2693 = vmatpush1.msra.mxu0 %v5394_v25  ;;  %v5455_v20 = vld [vmem:[%s10383_s5 + $0x708] sm:$0xff]  ;;  %v5453_v25 = vld [vmem:[%s10383_s5 + $0x6f8] sm:$0xff] }
 0x24b   : > { %2762 = vmatpush1.msra.mxu1 %v5400_v48  ;;  %2694 = vmatprep.subr.mxu0 %v5391_v63  ;;  %v5454_v48 = vld [vmem:[%s10383_s5 + $0x700] sm:$0xff]  ;;  %v5452_v63 = vld [vmem:[%s10383_s5 + $0x6f0] sm:$0xff] }
 0x24c   : > { %2763 = vmatprep.subr.mxu1 %v5397_v51  ;;  %2695 = vmatpush1.msra.mxu0 %v5390_v52  ;;  %v5451_v51 = vld [vmem:[%s10383_s5 + $0x6e8] sm:$0xff]  ;;  %v5449_v52 = vld [vmem:[%s10383_s5 + $0x6d8] sm:$0xff] }
 0x24d   : > { %2764 = vmatpush1.msra.mxu1 %v5396_v62  ;;  %2696 = vmatprep.subr.mxu0 %v5387_v0  ;;  %v5450_v62 = vld [vmem:[%s10383_s5 + $0x6e0] sm:$0xff]  ;;  %v5448_v0 = vld [vmem:[%s10383_s5 + $0x6d0] sm:$0xff] }
 0x24e   : > { %2765 = vmatprep.subr.mxu1 %v5393_v27  ;;  %2697 = vmatpush1.msra.mxu0 %v5386_v39  ;;  %v5447_v27 = vld [vmem:[%s10383_s5 + $0x6c8] sm:$0xff]  ;;  %v5445_v39 = vld [vmem:[%s10383_s5 + $0x6b8] sm:$0xff] }
 0x24f   : > { %2766 = vmatpush1.msra.mxu1 %v5392_v53  ;;  %2698 = vmatprep.subr.mxu0 %v5383_v55  ;;  %v5446_v53 = vld [vmem:[%s10383_s5 + $0x6c0] sm:$0xff]  ;;  %v5444_v55 = vld [vmem:[%s10383_s5 + $0x6b0] sm:$0xff] }
 0x250   : > { %2767 = vmatprep.subr.mxu1 %v5389_v1  ;;  %2699 = vmatpush1.msra.mxu0 %v5382_v3  ;;  %v5443_v1 = vld [vmem:[%s10383_s5 + $0x6a8] sm:$0xff]  ;;  %v5441_v3 = vld [vmem:[%s10383_s5 + $0x698] sm:$0xff] }
 0x251   : > { %2768 = vmatpush1.msra.mxu1 %v5388_v54  ;;  %2700 = vmatprep.subr.mxu0 %v5379_v21  ;;  %v5442_v54 = vld [vmem:[%s10383_s5 + $0x6a0] sm:$0xff]  ;;  %v5440_v21 = vld [vmem:[%s10383_s5 + $0x690] sm:$0xff] }
 0x252   : > { %2769 = vmatprep.subr.mxu1 %v5385_v2  ;;  %2701 = vmatpush1.msra.mxu0 %v5378_v57  ;;  %v5439_v2 = vld [vmem:[%s10383_s5 + $0x688] sm:$0xff]  ;;  %v5437_v57 = vld [vmem:[%s10383_s5 + $0x678] sm:$0xff] }
 0x253   : > { %2770 = vmatpush1.msra.mxu1 %v5384_v50  ;;  %2702 = vmatprep.subr.mxu0 %v5375_v59  ;;  %v5438_v50 = vld [vmem:[%s10383_s5 + $0x680] sm:$0xff]  ;;  %v5436_v59 = vld [vmem:[%s10383_s5 + $0x670] sm:$0xff] }
 0x254   : > { %2771 = vmatprep.subr.mxu1 %v5381_v56  ;;  %2703 = vmatpush1.msra.mxu0 %v5374_v5  ;;  %v5435_v56 = vld [vmem:[%s10383_s5 + $0x668] sm:$0xff]  ;;  %v5433_v5 = vld [vmem:[%s10383_s5 + $0x658] sm:$0xff] }
 0x255   : > { %2772 = vmatpush1.msra.mxu1 %v5380_v58  ;;  %2704 = vmatprep.subr.mxu0 %v5371_v7  ;;  %v5434_v58 = vld [vmem:[%s10383_s5 + $0x660] sm:$0xff]  ;;  %v5432_v7 = vld [vmem:[%s10383_s5 + $0x650] sm:$0xff] }
 0x256   : > { %2773 = vmatprep.subr.mxu1 %v5377_v4  ;;  %2705 = vmatpush1.msra.mxu0 %v5370_v11  ;;  %v5431_v4 = vld [vmem:[%s10383_s5 + $0x648] sm:$0xff]  ;;  %v5429_v11 = vld [vmem:[%s10383_s5 + $0x638] sm:$0xff] }
 0x257   : > { %2774 = vmatpush1.msra.mxu1 %v5376_v6  ;;  %2706 = vmatprep.subr.mxu0 %v5367_v8  ;;  %v5430_v6 = vld [vmem:[%s10383_s5 + $0x640] sm:$0xff]  ;;  %v5428_v8 = vld [vmem:[%s10383_s5 + $0x630] sm:$0xff] }
 0x258   : > { %2775 = vmatprep.subr.mxu1 %v5373_v10  ;;  %2707 = vmatpush1.msra.mxu0 %v5366_v9  ;;  %v5427_v10 = vld [vmem:[%s10383_s5 + $0x628] sm:$0xff]  ;;  %v5425_v9 = vld [vmem:[%s10383_s5 + $0x618] sm:$0xff] }
 0x259   : > { %2776 = vmatpush1.msra.mxu1 %v5372_v60  ;;  %2708 = vmatprep.subr.mxu0 %v5363_v14  ;;  %v5426_v60 = vld [vmem:[%s10383_s5 + $0x620] sm:$0xff]  ;;  %v5424_v14 = vld [vmem:[%s10383_s5 + $0x610] sm:$0xff] }
 0x25a   : > { %2777 = vmatprep.subr.mxu1 %v5369_v61  ;;  %2709 = vmatpush1.msra.mxu0 %v5362_v28  ;;  %v5423_v61 = vld [vmem:[%s10383_s5 + $0x608] sm:$0xff]  ;;  %v5421_v28 = vld [vmem:[%s10383_s5 + $0x5f8] sm:$0xff] }
 0x25b   : > { %2778 = vmatpush1.msra.mxu1 %v5368_v13  ;;  %2710 = vmatprep.subr.mxu0 %v5359_v30  ;;  %v5422_v13 = vld [vmem:[%s10383_s5 + $0x600] sm:$0xff]  ;;  %v5420_v30 = vld [vmem:[%s10383_s5 + $0x5f0] sm:$0xff] }
 0x25c   : > { %2779 = vmatprep.subr.mxu1 %v5365_v15  ;;  %2711 = vmatpush1.msra.mxu0 %v5358_v18  ;;  %v5419_v15 = vld [vmem:[%s10383_s5 + $0x5e8] sm:$0xff]  ;;  %v5417_v18 = vld [vmem:[%s10383_s5 + $0x5d8] sm:$0xff] }
 0x25d   : > { %2780 = vmatpush1.msra.mxu1 %v5364_v29  ;;  %2712 = vmatprep.subr.mxu0 %v5355_v24  ;;  %v5418_v29 = vld [vmem:[%s10383_s5 + $0x5e0] sm:$0xff]  ;;  %v5416_v24 = vld [vmem:[%s10383_s5 + $0x5d0] sm:$0xff] }
 0x25e   : > { %2781 = vmatprep.subr.mxu1 %v5361_v16  ;;  %2713 = vmatpush1.msra.mxu0 %v5354_v31  ;;  %v5415_v16 = vld [vmem:[%s10383_s5 + $0x5c8] sm:$0xff]  ;;  %v2492_v31 = vld [vmem:[%s10383_s5 + $0x1f8] sm:$0xff] }
 0x25f   : > { %2782 = vmatpush1.msra.mxu1 %v5360_v23  ;;  %2714 = vmatprep.subr.mxu0 %v5351_v33  ;;  %v5414_v23 = vld [vmem:[%s10383_s5 + $0x5c0] sm:$0xff] }
 0x260   : > { %2783 = vmatprep.subr.mxu1 %v5357_v26  ;;  %2715 = vmatpush1.msra.mxu0 %v5350_v40  ;;  %v2490_v26 = vld [vmem:[%s10383_s5 + $0x1e8] sm:$0xff] }
 0x261   : > { %2784 = vmatpush1.msra.mxu1 %v5356_v32  ;;  %2720 = vmatprep.subr.mxu0 %v5467_v44 }
 0x262   : > { %2785 = vmatprep.subr.mxu1 %v5353_v22  ;;  %2721 = vmatpush2.msra.mxu0 %v5466_v17 }
 0x263   : > { %2786 = vmatpush1.msra.mxu1 %v5352_v34  ;;  %2722 = vmatprep.subr.mxu0 %v5463_v43 }
 0x264   : > { %2791 = vmatprep.subr.mxu1 %v5469_v35  ;;  %2723 = vmatpush2.msra.mxu0 %v5462_v37 }
 0x265   : > { %2792 = vmatpush2.msra.mxu1 %v5468_v38  ;;  %2724 = vmatprep.subr.mxu0 %v5459_v42 }
 0x266   : > { %2793 = vmatprep.subr.mxu1 %v5465_v36  ;;  %2725 = vmatpush2.msra.mxu0 %v5458_v46 }
 0x267   : > { %2794 = vmatpush2.msra.mxu1 %v5464_v41  ;;  %2726 = vmatprep.subr.mxu0 %v5455_v20 }
 0x268   : > { %2795 = vmatprep.subr.mxu1 %v5461_v45  ;;  %2727 = vmatpush2.msra.mxu0 %v5454_v48 }
 0x269   : > { %2796 = vmatpush2.msra.mxu1 %v5460_v19  ;;  %2728 = vmatprep.subr.mxu0 %v5451_v51 }
 0x26a   : > { %2797 = vmatprep.subr.mxu1 %v5457_v47  ;;  %2729 = vmatpush2.msra.mxu0 %v5450_v62 }
 0x26b   : > { %2798 = vmatpush2.msra.mxu1 %v5456_v49  ;;  %2730 = vmatprep.subr.mxu0 %v5447_v27 }
 0x26c   : > { %2799 = vmatprep.subr.mxu1 %v5453_v25  ;;  %2731 = vmatpush2.msra.mxu0 %v5446_v53 }
 0x26d   : > { %2800 = vmatpush2.msra.mxu1 %v5452_v63  ;;  %2732 = vmatprep.subr.mxu0 %v5443_v1 }
 0x26e   : > { %2801 = vmatprep.subr.mxu1 %v5449_v52  ;;  %2733 = vmatpush2.msra.mxu0 %v5442_v54 }
 0x26f   : > { %2802 = vmatpush2.msra.mxu1 %v5448_v0  ;;  %2734 = vmatprep.subr.mxu0 %v5439_v2 }
 0x270   : > { %2803 = vmatprep.subr.mxu1 %v5445_v39  ;;  %2735 = vmatpush2.msra.mxu0 %v5438_v50 }
 0x271   : > { %2804 = vmatpush2.msra.mxu1 %v5444_v55  ;;  %2736 = vmatprep.subr.mxu0 %v5435_v56 }
 0x272   : > { %2805 = vmatprep.subr.mxu1 %v5441_v3  ;;  %2737 = vmatpush2.msra.mxu0 %v5434_v58  ;;  %v2489_v58 = vld [vmem:[%s10383_s5 + $0x1e0] sm:$0xff] }
 0x273   : > { %2806 = vmatpush2.msra.mxu1 %v5440_v21  ;;  %2738 = vmatprep.subr.mxu0 %v5431_v4 }
 0x274   : > { %2807 = vmatprep.subr.mxu1 %v5437_v57  ;;  %2739 = vmatpush2.msra.mxu0 %v5430_v6  ;;  %v2486_v6 = vld [vmem:[%s10383_s5 + $0x1c8] sm:$0xff] }
 0x275   : > { %2808 = vmatpush2.msra.mxu1 %v5436_v59  ;;  %2740 = vmatprep.subr.mxu0 %v5427_v10  ;;  %v2491_v59 = vld [vmem:[%s10383_s5 + $0x1f0] sm:$0xff] }
 0x276   : > { %2809 = vmatprep.subr.mxu1 %v5433_v5  ;;  %2741 = vmatpush2.msra.mxu0 %v5426_v60  ;;  %v2485_v60 = vld [vmem:[%s10383_s5 + $0x1c0] sm:$0xff] }
 0x277   : > { %2810 = vmatpush2.msra.mxu1 %v5432_v7  ;;  %2742 = vmatprep.subr.mxu0 %v5423_v61  ;;  %v2482_v61 = vld [vmem:[%s10383_s5 + $0x1a8] sm:$0xff] }
 0x278   : > { %2811 = vmatprep.subr.mxu1 %v5429_v11  ;;  %2743 = vmatpush2.msra.mxu0 %v5422_v13  ;;  %v2488_v11 = vld [vmem:[%s10383_s5 + $0x1d8] sm:$0xff]  ;;  %v2481_v13 = vld [vmem:[%s10383_s5 + $0x1a0] sm:$0xff] }
 0x279   : > { %2812 = vmatpush2.msra.mxu1 %v5428_v8  ;;  %2744 = vmatprep.subr.mxu0 %v5419_v15  ;;  %v2487_v8 = vld [vmem:[%s10383_s5 + $0x1d0] sm:$0xff]  ;;  %v2478_v15 = vld [vmem:[%s10383_s5 + $0x188] sm:$0xff] }
 0x27a   : > { %2813 = vmatprep.subr.mxu1 %v5425_v9  ;;  %2745 = vmatpush2.msra.mxu0 %v5418_v29  ;;  %v2484_v9 = vld [vmem:[%s10383_s5 + $0x1b8] sm:$0xff]  ;;  %v2477_v29 = vld [vmem:[%s10383_s5 + $0x180] sm:$0xff] }
 0x27b   : > { %2814 = vmatpush2.msra.mxu1 %v5424_v14  ;;  %2746 = vmatprep.subr.mxu0 %v5415_v16  ;;  %v2483_v14 = vld [vmem:[%s10383_s5 + $0x1b0] sm:$0xff]  ;;  %v2474_v16 = vld [vmem:[%s10383_s5 + $0x168] sm:$0xff] }
 0x27c   : > { %2815 = vmatprep.subr.mxu1 %v5421_v28  ;;  %2747 = vmatpush2.msra.mxu0 %v5414_v23  ;;  %v2480_v28 = vld [vmem:[%s10383_s5 + $0x198] sm:$0xff]  ;;  %v2473_v23 = vld [vmem:[%s10383_s5 + $0x160] sm:$0xff] }
 0x27d   : > { %2816 = vmatpush2.msra.mxu1 %v5420_v30  ;;  %2828 = vmatprep.subr.mxu0 %v2490_v26  ;;  %v2479_v30 = vld [vmem:[%s10383_s5 + $0x190] sm:$0xff]  ;;  %v2470_v26 = vld [vmem:[%s10383_s5 + $0x148] sm:$0xff] }
 0x27e   : > { %2817 = vmatprep.subr.mxu1 %v5417_v18  ;;  %v2476_v18 = vld [vmem:[%s10383_s5 + $0x178] sm:$0xff] }
 0x27f   : > { %2818 = vmatpush2.msra.mxu1 %v5416_v24  ;;  %v2475_v24 = vld [vmem:[%s10383_s5 + $0x170] sm:$0xff] }
 0x280   : > { %2899 = vmatprep.subr.mxu1 %v2492_v31  ;;  %v2472_v31 = vld [vmem:[%s10383_s5 + $0x158] sm:$0xff] }
 0x2be   : > { %v2062_v32 = vpop.f32.mrf.mxu0  ;;  %v2139_v22 = vpop.f32.mrf.mxu1 }
 0x2bf   : > { %v2140_v46 = vadd.f32 %v2139_v22, %v2062_v32  ;;  %v2469_v32 = vld [vmem:[%s10383_s5 + $0x140] sm:$0xff]  ;;  %v2466_v22 = vld [vmem:[%s10383_s5 + $0x128] sm:$0xff] }
 0x2c0   : > { %v2064_v33 = vpop.f32.mrf.mxu0  ;;  %v2141_v34 = vpop.f32.mrf.mxu1 }
 0x2c1   : > { %v2142_v20 = vadd.f32 %v2141_v34, %v2064_v33  ;;  %v2471_v33 = vld [vmem:[%s10383_s5 + $0x150] sm:$0xff]  ;;  %v2465_v34 = vld [vmem:[%s10383_s5 + $0x120] sm:$0xff] }
 0x2c4   : > { %v2068_v40 = vpop.f32.mrf.mxu0  ;;  %v2145_v35 = vpop.f32.mrf.mxu1 }
 0x2c5   : > { %v2146_v47 = vadd.f32 %v2145_v35, %v2068_v40  ;;  %v2468_v40 = vld [vmem:[%s10383_s5 + $0x138] sm:$0xff]  ;;  %v2462_v35 = vld [vmem:[%s10383_s5 + $0x108] sm:$0xff] }
 0x2c6   : > { %v2070_v44 = vpop.f32.mrf.mxu0  ;;  %v2147_v38 = vpop.f32.mrf.mxu1 }
 0x2c7   : > { %v2148_v62 = vadd.f32 %v2147_v38, %v2070_v44  ;;  %v2467_v44 = vld [vmem:[%s10383_s5 + $0x130] sm:$0xff]  ;;  %v2461_v38 = vld [vmem:[%s10383_s5 + $0x100] sm:$0xff] }
 0x2f9   : > { %v2414_v17 = vpop.f32.mrf.mxu0 }
 0x2fb   : > { %v2416_v43 = vpop.f32.mrf.mxu0 }
 0x2fd   : > { %v2420_v37 = vpop.f32.mrf.mxu0 }
 0x2ff   : > { %v2422_v49 = vpop.f32.mrf.mxu0 }
 0x301   : > { %v2337_v36 = vpop.f32.mrf.mxu1 }
 0x302   : > { %v2415_v41 = vadd.f32 %v2414_v17, %v2337_v36  ;;  %v2464_v17 = vld [vmem:[%s10383_s5 + $0x118] sm:$0xff]  ;;  %v2458_v36 = vld [vmem:[%s10383_s5 + $0xe8] sm:$0xff] }
 0x303   : > { %v2339_v42 = vpop.f32.mrf.mxu1 }
 0x304   : > { %v2417_v45 = vadd.f32 %v2416_v43, %v2339_v42  ;;  %v7808_v51 = vmax.f32 %v2140_v46, %v2415_v41  ;;  %v2463_v43 = vld [vmem:[%s10383_s5 + $0x110] sm:$0xff]  ;;  %v2457_v41 = vld [vmem:[%s10383_s5 + $0xe0] sm:$0xff]  ;;  %v2456_v46 = vld [vmem:[%s10383_s5 + $0xd8] sm:$0xff] }
 0x305   : > { %v2343_v19 = vpop.f32.mrf.mxu1  ;;  %v2459_v42 = vld [vmem:[%s10383_s5 + $0xf0] sm:$0xff] }
 0x306   : > { %v2421_v48 = vadd.f32 %v2420_v37, %v2343_v19  ;;  %v2426_v63 = vmax.f32 %v2142_v20, %v2417_v45  ;;  %v2674_v0 = vrot.slane %v7808_v51, 1  ;;  %v2460_v37 = vld [vmem:[%s10383_s5 + $0xf8] sm:$0xff]  ;;  %v2454_v45 = vld [vmem:[%s10383_s5 + $0xc8] sm:$0xff]  ;;  %v2453_v19 = vld [vmem:[%s10383_s5 + $0xc0] sm:$0xff] }
 0x307   : > { %v2345_v25 = vpop.f32.mrf.mxu1  ;;  %v2455_v20 = vld [vmem:[%s10383_s5 + $0xd0] sm:$0xff] }
 0x308   : > { %v7810_v27 = vmax.f32 %v2146_v47, %v2421_v48  ;;  %v2423_v52 = vadd.f32 %v2422_v49, %v2345_v25  ;;  %v2677_v39 = vrot.slane %v2426_v63, 1  ;;  %v3094_v55 = vrot.slane %v2426_v63, 2  ;;  %v2450_v47 = vld [vmem:[%s10383_s5 + $0xa8] sm:$0xff]  ;;  %v2452_v48 = vld [vmem:[%s10383_s5 + $0xb8] sm:$0xff]  ;;  %v2449_v49 = vld [vmem:[%s10383_s5 + $0xa0] sm:$0xff] }
 0x309   : > { %v3370_v3 = vrot.slane %v2426_v63, 3  ;;  %v3646_v21 = vrot.slane %v2426_v63, 4  ;;  %v2451_v25 = vld [vmem:[%s10383_s5 + $0xb0] sm:$0xff] }
 0x30a   : > { %v2428_v53 = vmax.f32 %v2148_v62, %v2423_v52  ;;  %v2675_v1 = vrot.slane %v7810_v27, 1  ;;  %v2446_v62 = vld [vmem:[%s10383_s5 + $0x88] sm:$0xff]  ;;  %v2445_v52 = vld [vmem:[%s10383_s5 + $0x80] sm:$0xff] }
 0x30c   : > { %v2678_v54 = vrot.slane %v2428_v53, 1  ;;  %v3095_v2 = vrot.slane %v2428_v53, 2  ;;  %v3371_v50 = vrot.slane %v2428_v53, 3  ;;  %v3647_v56 = vrot.slane %v2428_v53, 4  ;;  %v2447_v53 = vld [vmem:[%s10383_s5 + $0x90] sm:$0xff] }
 0x30d   : > { %v2676_v5 = vsel %vm425_vm1, %v2674_v0, %v2675_v1  ;;  %v2442_v0 = vld [vmem:[%s10383_s5 + $0x68] sm:$0xff]  ;;  %v2444_v1 = vld [vmem:[%s10383_s5 + $0x78] sm:$0xff] }
 0x30e   : > { %v2679_v57 = vsel %vm425_vm1, %v2677_v39, %v2678_v54  ;;  %v7822_v4 = vsel %vm820_vm3, %v3094_v55, %v3095_v2  ;;  %v7831_v7 = vsel %vm1041_vm4, %v3370_v3, %v3371_v50  ;;  %v7834_v10 = vsel %vm440_vm0, %v3646_v21, %v3647_v56  ;;  %v2441_v39 = vld [vmem:[%s10383_s5 + $0x60] sm:$0xff]  ;;  %v2443_v54 = vld [vmem:[%s10383_s5 + $0x70] sm:$0xff]  ;;  %v2438_v55 = vld [vmem:[%s10383_s5 + $0x48] sm:$0xff] }
 0x30f   : > { %5470 = vmatprep.mubr.msk.f32.mxu0 %vm2681_vm7, %v2679_v57  ;;  %5471 = vmatprep.mubr.msk.f32.mxu1 %vm2681_vm7, %v2679_v57  ;;  %v2440_v2 = vld [vmem:[%s10383_s5 + $0x58] sm:$0xff]  ;;  %v2437_v3 = vld [vmem:[%s10383_s5 + $0x40] sm:$0xff]  ;;  %v2439_v50 = vld [vmem:[%s10383_s5 + $0x50] sm:$0xff]  ;;  %vm4226_vm1 = vcmask 130048  }
 0x310   : > { %2749 = vmatmul.mubr.f32.vlgmr.msra.gmra.mxu0 %v2676_v5  ;;  %2820 = vmatmul.mubr.f32.vlgmr.msra.gmra.mxu1 %v2676_v5  ;;  %v2434_v21 = vld [vmem:[%s10383_s5 + $0x28] sm:$0xff]  ;;  %v2436_v56 = vld [vmem:[%s10383_s5 + $0x38] sm:$0xff]  ;;  %v2433_v57 = vld [vmem:[%s10383_s5 + $0x20] sm:$0xff] }
 0x311   : > { %2829 = vmatpush1.msra.mxu0 %v2489_v58  ;;  %2900 = vmatpush1.msra.mxu1 %v2491_v59  ;;  %v2435_v58 = vld [vmem:[%s10383_s5 + $0x30] sm:$0xff]  ;;  %v2430_v59 = vld [vmem:[%s10383_s5 + $0x8] sm:$0xff]  ;;  %v2432_v5 = vld [vmem:[%s10383_s5 + $0x18] sm:$0xff] }
 0x312   : > { %2830 = vmatprep.subr.mxu0 %v2486_v6  ;;  %5472 = vmatprep.mubr.msk.f32.mxu0 %vm2681_vm7, %v2426_v63  ;;  %v2429_v6 = vld [vmem:[%s10383_s5] sm:$0xff] }
 0x313   : > { %2901 = vmatprep.subr.mxu1 %v2488_v11  ;;  %5473 = vmatprep.mubr.msk.f32.mxu1 %vm2681_vm7, %v2426_v63  ;;  %v2448_v63 = vld [vmem:[%s10383_s5 + $0x98] sm:$0xff]  ;;  %v2431_v11 = vld [vmem:[%s10383_s5 + $0x10] sm:$0xff] }
 0x314   : > { %2831 = vmatpush1.msra.mxu0 %v2485_v60  ;;  %2902 = vmatpush1.msra.mxu1 %v2487_v8  ;;  %v2546_v60 = vld [vmem:[%s10383_s5 + $0x3a8] sm:$0xff]  ;;  %v2548_v8 = vld [vmem:[%s10383_s5 + $0x3b8] sm:$0xff] }
 0x315   : > { %2832 = vmatprep.subr.mxu0 %v2482_v61  ;;  %2903 = vmatprep.subr.mxu1 %v2484_v9  ;;  %v2545_v61 = vld [vmem:[%s10383_s5 + $0x3a0] sm:$0xff]  ;;  %v2547_v9 = vld [vmem:[%s10383_s5 + $0x3b0] sm:$0xff] }
 0x316   : > { %2833 = vmatpush1.msra.mxu0 %v2481_v13  ;;  %2904 = vmatpush1.msra.mxu1 %v2483_v14  ;;  %v2542_v13 = vld [vmem:[%s10383_s5 + $0x388] sm:$0xff]  ;;  %v2544_v14 = vld [vmem:[%s10383_s5 + $0x398] sm:$0xff] }
 0x317   : > { %2834 = vmatprep.subr.mxu0 %v2478_v15  ;;  %2905 = vmatprep.subr.mxu1 %v2480_v28  ;;  %v2541_v15 = vld [vmem:[%s10383_s5 + $0x380] sm:$0xff]  ;;  %v2543_v28 = vld [vmem:[%s10383_s5 + $0x390] sm:$0xff] }
 0x318   : > { %2835 = vmatpush1.msra.mxu0 %v2477_v29  ;;  %2906 = vmatpush1.msra.mxu1 %v2479_v30  ;;  %v2538_v29 = vld [vmem:[%s10383_s5 + $0x368] sm:$0xff]  ;;  %v2540_v30 = vld [vmem:[%s10383_s5 + $0x378] sm:$0xff] }
 0x319   : > { %2836 = vmatprep.subr.mxu0 %v2474_v16  ;;  %2907 = vmatprep.subr.mxu1 %v2476_v18  ;;  %v2537_v16 = vld [vmem:[%s10383_s5 + $0x360] sm:$0xff]  ;;  %v2539_v18 = vld [vmem:[%s10383_s5 + $0x370] sm:$0xff] }
 0x31a   : > { %2837 = vmatpush1.msra.mxu0 %v2473_v23  ;;  %2908 = vmatpush1.msra.mxu1 %v2475_v24  ;;  %v2534_v23 = vld [vmem:[%s10383_s5 + $0x348] sm:$0xff]  ;;  %v2536_v24 = vld [vmem:[%s10383_s5 + $0x358] sm:$0xff] }
 0x31b   : > { %2838 = vmatprep.subr.mxu0 %v2470_v26  ;;  %2909 = vmatprep.subr.mxu1 %v2472_v31  ;;  %v2533_v26 = vld [vmem:[%s10383_s5 + $0x340] sm:$0xff]  ;;  %v2535_v31 = vld [vmem:[%s10383_s5 + $0x350] sm:$0xff] }
 0x31c   : > { %2839 = vmatpush1.msra.mxu0 %v2469_v32  ;;  %2910 = vmatpush1.msra.mxu1 %v2471_v33  ;;  %v2530_v32 = vld [vmem:[%s10383_s5 + $0x328] sm:$0xff]  ;;  %v2532_v33 = vld [vmem:[%s10383_s5 + $0x338] sm:$0xff] }
 0x31d   : > { %2840 = vmatprep.subr.mxu0 %v2466_v22  ;;  %2911 = vmatprep.subr.mxu1 %v2468_v40  ;;  %v2529_v22 = vld [vmem:[%s10383_s5 + $0x320] sm:$0xff]  ;;  %v2531_v40 = vld [vmem:[%s10383_s5 + $0x330] sm:$0xff] }
 0x31e   : > { %2841 = vmatpush1.msra.mxu0 %v2465_v34  ;;  %2912 = vmatpush1.msra.mxu1 %v2467_v44  ;;  %v2526_v34 = vld [vmem:[%s10383_s5 + $0x308] sm:$0xff]  ;;  %v2528_v44 = vld [vmem:[%s10383_s5 + $0x318] sm:$0xff] }
 0x31f   : > { %2842 = vmatprep.subr.mxu0 %v2462_v35  ;;  %2913 = vmatprep.subr.mxu1 %v2464_v17  ;;  %v2525_v35 = vld [vmem:[%s10383_s5 + $0x300] sm:$0xff]  ;;  %v2527_v17 = vld [vmem:[%s10383_s5 + $0x310] sm:$0xff] }
 0x320   : > { %2843 = vmatpush1.msra.mxu0 %v2461_v38  ;;  %2914 = vmatpush1.msra.mxu1 %v2463_v43  ;;  %v2522_v38 = vld [vmem:[%s10383_s5 + $0x2e8] sm:$0xff]  ;;  %v2524_v43 = vld [vmem:[%s10383_s5 + $0x2f8] sm:$0xff] }
 0x321   : > { %2844 = vmatprep.subr.mxu0 %v2458_v36  ;;  %2915 = vmatprep.subr.mxu1 %v2460_v37  ;;  %v2521_v36 = vld [vmem:[%s10383_s5 + $0x2e0] sm:$0xff]  ;;  %v2523_v37 = vld [vmem:[%s10383_s5 + $0x2f0] sm:$0xff] }
 0x322   : > { %2845 = vmatpush1.msra.mxu0 %v2457_v41  ;;  %2916 = vmatpush1.msra.mxu1 %v2459_v42  ;;  %v2518_v41 = vld [vmem:[%s10383_s5 + $0x2c8] sm:$0xff]  ;;  %v2520_v42 = vld [vmem:[%s10383_s5 + $0x2d8] sm:$0xff] }
 0x323   : > { %2846 = vmatprep.subr.mxu0 %v2454_v45  ;;  %2917 = vmatprep.subr.mxu1 %v2456_v46  ;;  %v2517_v45 = vld [vmem:[%s10383_s5 + $0x2c0] sm:$0xff]  ;;  %v2519_v46 = vld [vmem:[%s10383_s5 + $0x2d0] sm:$0xff] }
 0x324   : > { %2847 = vmatpush1.msra.mxu0 %v2453_v19  ;;  %2918 = vmatpush1.msra.mxu1 %v2455_v20  ;;  %v2514_v19 = vld [vmem:[%s10383_s5 + $0x2a8] sm:$0xff]  ;;  %v2516_v20 = vld [vmem:[%s10383_s5 + $0x2b8] sm:$0xff] }
 0x325   : > { %2848 = vmatprep.subr.mxu0 %v2450_v47  ;;  %2919 = vmatprep.subr.mxu1 %v2452_v48  ;;  %v2513_v47 = vld [vmem:[%s10383_s5 + $0x2a0] sm:$0xff]  ;;  %v2515_v48 = vld [vmem:[%s10383_s5 + $0x2b0] sm:$0xff] }
 0x326   : > { %2849 = vmatpush1.msra.mxu0 %v2449_v49  ;;  %2920 = vmatpush1.msra.mxu1 %v2451_v25  ;;  %v2510_v49 = vld [vmem:[%s10383_s5 + $0x288] sm:$0xff]  ;;  %v2512_v25 = vld [vmem:[%s10383_s5 + $0x298] sm:$0xff] }
 0x327   : > { %2850 = vmatprep.subr.mxu0 %v2446_v62  ;;  %2921 = vmatprep.subr.mxu1 %v2448_v63  ;;  %v2509_v62 = vld [vmem:[%s10383_s5 + $0x280] sm:$0xff]  ;;  %v2511_v63 = vld [vmem:[%s10383_s5 + $0x290] sm:$0xff] }
 0x328   : > { %2851 = vmatpush1.msra.mxu0 %v2445_v52  ;;  %2922 = vmatpush1.msra.mxu1 %v2447_v53  ;;  %v2506_v52 = vld [vmem:[%s10383_s5 + $0x268] sm:$0xff]  ;;  %v2508_v53 = vld [vmem:[%s10383_s5 + $0x278] sm:$0xff] }
 0x329   : > { %2852 = vmatprep.subr.mxu0 %v2442_v0  ;;  %2923 = vmatprep.subr.mxu1 %v2444_v1  ;;  %v2505_v0 = vld [vmem:[%s10383_s5 + $0x260] sm:$0xff]  ;;  %v2507_v1 = vld [vmem:[%s10383_s5 + $0x270] sm:$0xff] }
 0x32a   : > { %2853 = vmatpush1.msra.mxu0 %v2441_v39  ;;  %2924 = vmatpush1.msra.mxu1 %v2443_v54  ;;  %v2502_v39 = vld [vmem:[%s10383_s5 + $0x248] sm:$0xff]  ;;  %v2504_v54 = vld [vmem:[%s10383_s5 + $0x258] sm:$0xff] }
 0x32b   : > { %2854 = vmatprep.subr.mxu0 %v2438_v55  ;;  %2925 = vmatprep.subr.mxu1 %v2440_v2  ;;  %v2501_v55 = vld [vmem:[%s10383_s5 + $0x240] sm:$0xff]  ;;  %v2503_v2 = vld [vmem:[%s10383_s5 + $0x250] sm:$0xff] }
 0x32c   : > { %2855 = vmatpush1.msra.mxu0 %v2437_v3  ;;  %2926 = vmatpush1.msra.mxu1 %v2439_v50  ;;  %v2498_v3 = vld [vmem:[%s10383_s5 + $0x228] sm:$0xff]  ;;  %v2500_v50 = vld [vmem:[%s10383_s5 + $0x238] sm:$0xff] }
 0x32d   : > { %2856 = vmatprep.subr.mxu0 %v2434_v21  ;;  %2927 = vmatprep.subr.mxu1 %v2436_v56  ;;  %v2497_v21 = vld [vmem:[%s10383_s5 + $0x220] sm:$0xff]  ;;  %v2499_v56 = vld [vmem:[%s10383_s5 + $0x230] sm:$0xff] }
 0x32e   : > { %2857 = vmatpush1.msra.mxu0 %v2433_v57  ;;  %2928 = vmatpush1.msra.mxu1 %v2435_v58  ;;  %v2494_v57 = vld [vmem:[%s10383_s5 + $0x208] sm:$0xff]  ;;  %v2496_v58 = vld [vmem:[%s10383_s5 + $0x218] sm:$0xff] }
 0x32f   : > { %2858 = vmatprep.subr.mxu0 %v2430_v59  ;;  %2929 = vmatprep.subr.mxu1 %v2432_v5  ;;  %v2493_v59 = vld [vmem:[%s10383_s5 + $0x200] sm:$0xff]  ;;  %v2495_v5 = vld [vmem:[%s10383_s5 + $0x210] sm:$0xff] }
 0x330   : > { %2859 = vmatpush1.msra.mxu0 %v2429_v6  ;;  %2930 = vmatpush1.msra.mxu1 %v2431_v11  ;;  %v5535_v6 = vld [vmem:[%s10383_s5 + $0x968] sm:$0xff]  ;;  %v5537_v11 = vld [vmem:[%s10383_s5 + $0x978] sm:$0xff] }
 0x331   : > { %2864 = vmatprep.subr.mxu0 %v2546_v60  ;;  %2935 = vmatprep.subr.mxu1 %v2548_v8  ;;  %v5534_v60 = vld [vmem:[%s10383_s5 + $0x960] sm:$0xff]  ;;  %v5536_v8 = vld [vmem:[%s10383_s5 + $0x970] sm:$0xff] }
 0x332   : > { %2865 = vmatpush2.msra.mxu0 %v2545_v61  ;;  %2936 = vmatpush2.msra.mxu1 %v2547_v9  ;;  %v5531_v61 = vld [vmem:[%s10383_s5 + $0x948] sm:$0xff]  ;;  %v5533_v9 = vld [vmem:[%s10383_s5 + $0x958] sm:$0xff] }
 0x333   : > { %2866 = vmatprep.subr.mxu0 %v2542_v13  ;;  %2937 = vmatprep.subr.mxu1 %v2544_v14  ;;  %v5530_v13 = vld [vmem:[%s10383_s5 + $0x940] sm:$0xff]  ;;  %v5532_v14 = vld [vmem:[%s10383_s5 + $0x950] sm:$0xff] }
 0x334   : > { %2867 = vmatpush2.msra.mxu0 %v2541_v15  ;;  %2938 = vmatpush2.msra.mxu1 %v2543_v28  ;;  %v5527_v15 = vld [vmem:[%s10383_s5 + $0x928] sm:$0xff]  ;;  %v5529_v28 = vld [vmem:[%s10383_s5 + $0x938] sm:$0xff] }
 0x335   : > { %2868 = vmatprep.subr.mxu0 %v2538_v29  ;;  %2939 = vmatprep.subr.mxu1 %v2540_v30  ;;  %v5526_v29 = vld [vmem:[%s10383_s5 + $0x920] sm:$0xff]  ;;  %v5528_v30 = vld [vmem:[%s10383_s5 + $0x930] sm:$0xff] }
 0x336   : > { %2869 = vmatpush2.msra.mxu0 %v2537_v16  ;;  %2940 = vmatpush2.msra.mxu1 %v2539_v18  ;;  %v5525_v16 = vld [vmem:[%s10383_s5 + $0x918] sm:$0xff]  ;;  %v5522_v18 = vld [vmem:[%s10383_s5 + $0x900] sm:$0xff] }
 0x337   : > { %2870 = vmatprep.subr.mxu0 %v2534_v23  ;;  %2941 = vmatprep.subr.mxu1 %v2536_v24  ;;  %v5524_v23 = vld [vmem:[%s10383_s5 + $0x910] sm:$0xff]  ;;  %v5519_v24 = vld [vmem:[%s10383_s5 + $0x8e8] sm:$0xff] }
 0x338   : > { %2871 = vmatpush2.msra.mxu0 %v2533_v26  ;;  %2942 = vmatpush2.msra.mxu1 %v2535_v31  ;;  %v5521_v26 = vld [vmem:[%s10383_s5 + $0x8f8] sm:$0xff]  ;;  %v5518_v31 = vld [vmem:[%s10383_s5 + $0x8e0] sm:$0xff] }
 0x339   : > { %2872 = vmatprep.subr.mxu0 %v2530_v32  ;;  %2943 = vmatprep.subr.mxu1 %v2532_v33  ;;  %v5520_v32 = vld [vmem:[%s10383_s5 + $0x8f0] sm:$0xff]  ;;  %v5515_v33 = vld [vmem:[%s10383_s5 + $0x8c8] sm:$0xff] }
 0x33a   : > { %2873 = vmatpush2.msra.mxu0 %v2529_v22  ;;  %2944 = vmatpush2.msra.mxu1 %v2531_v40  ;;  %v5517_v22 = vld [vmem:[%s10383_s5 + $0x8d8] sm:$0xff]  ;;  %v5514_v40 = vld [vmem:[%s10383_s5 + $0x8c0] sm:$0xff] }
 0x33b   : > { %2874 = vmatprep.subr.mxu0 %v2526_v34  ;;  %2945 = vmatprep.subr.mxu1 %v2528_v44  ;;  %v5516_v34 = vld [vmem:[%s10383_s5 + $0x8d0] sm:$0xff]  ;;  %v5511_v44 = vld [vmem:[%s10383_s5 + $0x8a8] sm:$0xff] }
 0x33c   : > { %2875 = vmatpush2.msra.mxu0 %v2525_v35  ;;  %2946 = vmatpush2.msra.mxu1 %v2527_v17  ;;  %v5513_v35 = vld [vmem:[%s10383_s5 + $0x8b8] sm:$0xff]  ;;  %v5510_v17 = vld [vmem:[%s10383_s5 + $0x8a0] sm:$0xff] }
 0x33d   : > { %2876 = vmatprep.subr.mxu0 %v2522_v38  ;;  %2947 = vmatprep.subr.mxu1 %v2524_v43  ;;  %v5512_v38 = vld [vmem:[%s10383_s5 + $0x8b0] sm:$0xff]  ;;  %v5507_v43 = vld [vmem:[%s10383_s5 + $0x888] sm:$0xff] }
 0x33e   : > { %2877 = vmatpush2.msra.mxu0 %v2521_v36  ;;  %2948 = vmatpush2.msra.mxu1 %v2523_v37  ;;  %v5509_v36 = vld [vmem:[%s10383_s5 + $0x898] sm:$0xff]  ;;  %v5506_v37 = vld [vmem:[%s10383_s5 + $0x880] sm:$0xff] }
 0x33f   : > { %2878 = vmatprep.subr.mxu0 %v2518_v41  ;;  %2949 = vmatprep.subr.mxu1 %v2520_v42  ;;  %v5508_v41 = vld [vmem:[%s10383_s5 + $0x890] sm:$0xff]  ;;  %v5503_v42 = vld [vmem:[%s10383_s5 + $0x868] sm:$0xff] }
 0x340   : > { %2879 = vmatpush2.msra.mxu0 %v2517_v45  ;;  %2950 = vmatpush2.msra.mxu1 %v2519_v46  ;;  %v5505_v45 = vld [vmem:[%s10383_s5 + $0x878] sm:$0xff]  ;;  %v5502_v46 = vld [vmem:[%s10383_s5 + $0x860] sm:$0xff] }
 0x341   : > { %2880 = vmatprep.subr.mxu0 %v2514_v19  ;;  %2951 = vmatprep.subr.mxu1 %v2516_v20  ;;  %v5504_v19 = vld [vmem:[%s10383_s5 + $0x870] sm:$0xff]  ;;  %v5499_v20 = vld [vmem:[%s10383_s5 + $0x848] sm:$0xff] }
 0x342   : > { %2881 = vmatpush2.msra.mxu0 %v2513_v47  ;;  %2952 = vmatpush2.msra.mxu1 %v2515_v48  ;;  %v5501_v47 = vld [vmem:[%s10383_s5 + $0x858] sm:$0xff]  ;;  %v5498_v48 = vld [vmem:[%s10383_s5 + $0x840] sm:$0xff] }
 0x343   : > { %2882 = vmatprep.subr.mxu0 %v2510_v49  ;;  %2953 = vmatprep.subr.mxu1 %v2512_v25  ;;  %v5500_v49 = vld [vmem:[%s10383_s5 + $0x850] sm:$0xff]  ;;  %v5495_v25 = vld [vmem:[%s10383_s5 + $0x828] sm:$0xff] }
 0x344   : > { %2883 = vmatpush2.msra.mxu0 %v2509_v62  ;;  %2954 = vmatpush2.msra.mxu1 %v2511_v63  ;;  %v5497_v62 = vld [vmem:[%s10383_s5 + $0x838] sm:$0xff]  ;;  %v5494_v63 = vld [vmem:[%s10383_s5 + $0x820] sm:$0xff] }
 0x345   : > { %2884 = vmatprep.subr.mxu0 %v2506_v52  ;;  %2955 = vmatprep.subr.mxu1 %v2508_v53  ;;  %v5496_v52 = vld [vmem:[%s10383_s5 + $0x830] sm:$0xff]  ;;  %v5491_v53 = vld [vmem:[%s10383_s5 + $0x808] sm:$0xff] }
 0x346   : > { %2885 = vmatpush2.msra.mxu0 %v2505_v0  ;;  %2956 = vmatpush2.msra.mxu1 %v2507_v1  ;;  %v5493_v0 = vld [vmem:[%s10383_s5 + $0x818] sm:$0xff]  ;;  %v5490_v1 = vld [vmem:[%s10383_s5 + $0x800] sm:$0xff] }
 0x347   : > { %2886 = vmatprep.subr.mxu0 %v2502_v39  ;;  %2957 = vmatprep.subr.mxu1 %v2504_v54  ;;  %v5492_v39 = vld [vmem:[%s10383_s5 + $0x810] sm:$0xff]  ;;  %v5487_v54 = vld [vmem:[%s10383_s5 + $0x7e8] sm:$0xff] }
 0x348   : > { %2887 = vmatpush2.msra.mxu0 %v2501_v55  ;;  %2958 = vmatpush2.msra.mxu1 %v2503_v2  ;;  %v5489_v55 = vld [vmem:[%s10383_s5 + $0x7f8] sm:$0xff]  ;;  %v5486_v2 = vld [vmem:[%s10383_s5 + $0x7e0] sm:$0xff] }
 0x349   : > { %2888 = vmatprep.subr.mxu0 %v2498_v3  ;;  %2959 = vmatprep.subr.mxu1 %v2500_v50  ;;  %v5488_v3 = vld [vmem:[%s10383_s5 + $0x7f0] sm:$0xff]  ;;  %v5483_v50 = vld [vmem:[%s10383_s5 + $0x7c8] sm:$0xff] }
 0x34a   : > { %2889 = vmatpush2.msra.mxu0 %v2497_v21  ;;  %2960 = vmatpush2.msra.mxu1 %v2499_v56  ;;  %v5485_v21 = vld [vmem:[%s10383_s5 + $0x7d8] sm:$0xff]  ;;  %v5482_v56 = vld [vmem:[%s10383_s5 + $0x7c0] sm:$0xff] }
 0x34b   : > { %2890 = vmatprep.subr.mxu0 %v2494_v57  ;;  %2961 = vmatprep.subr.mxu1 %v2496_v58  ;;  %v5484_v57 = vld [vmem:[%s10383_s5 + $0x7d0] sm:$0xff]  ;;  %v5479_v58 = vld [vmem:[%s10383_s5 + $0x7a8] sm:$0xff] }
 0x34c   : > { %2891 = vmatpush2.msra.mxu0 %v2493_v59  ;;  %2962 = vmatpush2.msra.mxu1 %v2495_v5  ;;  %v5481_v59 = vld [vmem:[%s10383_s5 + $0x7b8] sm:$0xff]  ;;  %v5478_v5 = vld [vmem:[%s10383_s5 + $0x7a0] sm:$0xff] }
 0x34d   : > { %2893 = vmatmul.mubr.f32.vlgmr.msra.gmra.mxu0 %v7808_v51  ;;  %2964 = vmatmul.mubr.f32.vlgmr.msra.gmra.mxu1 %v7808_v51 }
 0x34e   : > { %3100 = vmatprep.subr.mxu0 %v5535_v6  ;;  %3171 = vmatprep.subr.mxu1 %v5537_v11  ;;  %v5480_v6 = vld [vmem:[%s10383_s5 + $0x7b0] sm:$0xff]  ;;  %v5475_v11 = vld [vmem:[%s10383_s5 + $0x788] sm:$0xff] }
 0x34f   : > { %3101 = vmatpush1.msra.mxu0 %v5534_v60  ;;  %5594 = vmatprep.mubr.msk.f32.mxu0 %vm2681_vm7, %v7822_v4  ;;  %v5477_v60 = vld [vmem:[%s10383_s5 + $0x798] sm:$0xff] }
 0x350   : > { %3172 = vmatpush1.msra.mxu1 %v5536_v8  ;;  %5595 = vmatprep.mubr.msk.f32.mxu1 %vm2681_vm7, %v7822_v4  ;;  %v5523_v4 = vld [vmem:[%s10383_s5 + $0x908] sm:$0xff]  ;;  %v5474_v8 = vld [vmem:[%s10383_s5 + $0x780] sm:$0xff] }
 0x351   : > { %3102 = vmatprep.subr.mxu0 %v5531_v61  ;;  %3173 = vmatprep.subr.mxu1 %v5533_v9  ;;  %v5476_v61 = vld [vmem:[%s10383_s5 + $0x790] sm:$0xff]  ;;  %v5591_v9 = vld [vmem:[%s10383_s5 + $0xb28] sm:$0xff] }
 0x352   : > { %3103 = vmatpush1.msra.mxu0 %v5530_v13  ;;  %3174 = vmatpush1.msra.mxu1 %v5532_v14  ;;  %v5593_v13 = vld [vmem:[%s10383_s5 + $0xb38] sm:$0xff]  ;;  %v5590_v14 = vld [vmem:[%s10383_s5 + $0xb20] sm:$0xff] }
 0x353   : > { %3104 = vmatprep.subr.mxu0 %v5527_v15  ;;  %3175 = vmatprep.subr.mxu1 %v5529_v28  ;;  %v5592_v15 = vld [vmem:[%s10383_s5 + $0xb30] sm:$0xff]  ;;  %v5587_v28 = vld [vmem:[%s10383_s5 + $0xb08] sm:$0xff] }
 0x354   : > { %3105 = vmatpush1.msra.mxu0 %v5526_v29  ;;  %3176 = vmatpush1.msra.mxu1 %v5528_v30  ;;  %v5589_v29 = vld [vmem:[%s10383_s5 + $0xb18] sm:$0xff]  ;;  %v5586_v30 = vld [vmem:[%s10383_s5 + $0xb00] sm:$0xff] }
 0x355   : > { %3106 = vmatprep.subr.mxu0 %v5523_v4  ;;  %3177 = vmatprep.subr.mxu1 %v5525_v16  ;;  %v5588_v4 = vld [vmem:[%s10383_s5 + $0xb10] sm:$0xff]  ;;  %v5583_v16 = vld [vmem:[%s10383_s5 + $0xae8] sm:$0xff] }
 0x356   : > { %3107 = vmatpush1.msra.mxu0 %v5522_v18  ;;  %3178 = vmatpush1.msra.mxu1 %v5524_v23  ;;  %v5585_v18 = vld [vmem:[%s10383_s5 + $0xaf8] sm:$0xff]  ;;  %v5582_v23 = vld [vmem:[%s10383_s5 + $0xae0] sm:$0xff] }
 0x357   : > { %3108 = vmatprep.subr.mxu0 %v5519_v24  ;;  %3179 = vmatprep.subr.mxu1 %v5521_v26  ;;  %v5584_v24 = vld [vmem:[%s10383_s5 + $0xaf0] sm:$0xff]  ;;  %v5579_v26 = vld [vmem:[%s10383_s5 + $0xac8] sm:$0xff] }
 0x358   : > { %3109 = vmatpush1.msra.mxu0 %v5518_v31  ;;  %3180 = vmatpush1.msra.mxu1 %v5520_v32  ;;  %v5581_v31 = vld [vmem:[%s10383_s5 + $0xad8] sm:$0xff]  ;;  %v5578_v32 = vld [vmem:[%s10383_s5 + $0xac0] sm:$0xff] }
 0x359   : > { %3110 = vmatprep.subr.mxu0 %v5515_v33  ;;  %3181 = vmatprep.subr.mxu1 %v5517_v22  ;;  %v5580_v33 = vld [vmem:[%s10383_s5 + $0xad0] sm:$0xff]  ;;  %v5575_v22 = vld [vmem:[%s10383_s5 + $0xaa8] sm:$0xff] }
 0x35a   : > { %3111 = vmatpush1.msra.mxu0 %v5514_v40  ;;  %3182 = vmatpush1.msra.mxu1 %v5516_v34  ;;  %v5577_v40 = vld [vmem:[%s10383_s5 + $0xab8] sm:$0xff]  ;;  %v5574_v34 = vld [vmem:[%s10383_s5 + $0xaa0] sm:$0xff] }
 0x35b   : > { %3112 = vmatprep.subr.mxu0 %v5511_v44  ;;  %3183 = vmatprep.subr.mxu1 %v5513_v35  ;;  %v5576_v44 = vld [vmem:[%s10383_s5 + $0xab0] sm:$0xff]  ;;  %v5571_v35 = vld [vmem:[%s10383_s5 + $0xa88] sm:$0xff] }
 0x35c   : > { %3113 = vmatpush1.msra.mxu0 %v5510_v17  ;;  %3184 = vmatpush1.msra.mxu1 %v5512_v38  ;;  %v5573_v17 = vld [vmem:[%s10383_s5 + $0xa98] sm:$0xff]  ;;  %v5570_v38 = vld [vmem:[%s10383_s5 + $0xa80] sm:$0xff] }
 0x35d   : > { %3114 = vmatprep.subr.mxu0 %v5507_v43  ;;  %3185 = vmatprep.subr.mxu1 %v5509_v36  ;;  %v5572_v43 = vld [vmem:[%s10383_s5 + $0xa90] sm:$0xff]  ;;  %v5567_v36 = vld [vmem:[%s10383_s5 + $0xa68] sm:$0xff] }
 0x35e   : > { %3115 = vmatpush1.msra.mxu0 %v5506_v37  ;;  %3186 = vmatpush1.msra.mxu1 %v5508_v41  ;;  %v5569_v37 = vld [vmem:[%s10383_s5 + $0xa78] sm:$0xff]  ;;  %v5566_v41 = vld [vmem:[%s10383_s5 + $0xa60] sm:$0xff] }
 0x35f   : > { %3116 = vmatprep.subr.mxu0 %v5503_v42  ;;  %3187 = vmatprep.subr.mxu1 %v5505_v45  ;;  %v5568_v42 = vld [vmem:[%s10383_s5 + $0xa70] sm:$0xff]  ;;  %v5563_v45 = vld [vmem:[%s10383_s5 + $0xa48] sm:$0xff] }
 0x360   : > { %3117 = vmatpush1.msra.mxu0 %v5502_v46  ;;  %3188 = vmatpush1.msra.mxu1 %v5504_v19  ;;  %v5565_v46 = vld [vmem:[%s10383_s5 + $0xa58] sm:$0xff]  ;;  %v5562_v19 = vld [vmem:[%s10383_s5 + $0xa40] sm:$0xff] }
 0x361   : > { %3118 = vmatprep.subr.mxu0 %v5499_v20  ;;  %3189 = vmatprep.subr.mxu1 %v5501_v47  ;;  %v5564_v20 = vld [vmem:[%s10383_s5 + $0xa50] sm:$0xff]  ;;  %v5559_v47 = vld [vmem:[%s10383_s5 + $0xa28] sm:$0xff] }
 0x362   : > { %3119 = vmatpush1.msra.mxu0 %v5498_v48  ;;  %3190 = vmatpush1.msra.mxu1 %v5500_v49  ;;  %v5561_v48 = vld [vmem:[%s10383_s5 + $0xa38] sm:$0xff]  ;;  %v5558_v49 = vld [vmem:[%s10383_s5 + $0xa20] sm:$0xff] }
 0x363   : > { %3120 = vmatprep.subr.mxu0 %v5495_v25  ;;  %3191 = vmatprep.subr.mxu1 %v5497_v62  ;;  %v5560_v25 = vld [vmem:[%s10383_s5 + $0xa30] sm:$0xff]  ;;  %v5555_v62 = vld [vmem:[%s10383_s5 + $0xa08] sm:$0xff] }
 0x364   : > { %3121 = vmatpush1.msra.mxu0 %v5494_v63  ;;  %3192 = vmatpush1.msra.mxu1 %v5496_v52  ;;  %v5557_v63 = vld [vmem:[%s10383_s5 + $0xa18] sm:$0xff]  ;;  %v5554_v52 = vld [vmem:[%s10383_s5 + $0xa00] sm:$0xff] }
 0x365   : > { %3122 = vmatprep.subr.mxu0 %v5491_v53  ;;  %3193 = vmatprep.subr.mxu1 %v5493_v0  ;;  %v5556_v53 = vld [vmem:[%s10383_s5 + $0xa10] sm:$0xff]  ;;  %v5551_v0 = vld [vmem:[%s10383_s5 + $0x9e8] sm:$0xff] }
 0x366   : > { %3123 = vmatpush1.msra.mxu0 %v5490_v1  ;;  %3194 = vmatpush1.msra.mxu1 %v5492_v39  ;;  %v5553_v1 = vld [vmem:[%s10383_s5 + $0x9f8] sm:$0xff]  ;;  %v5550_v39 = vld [vmem:[%s10383_s5 + $0x9e0] sm:$0xff] }
 0x367   : > { %3124 = vmatprep.subr.mxu0 %v5487_v54  ;;  %3195 = vmatprep.subr.mxu1 %v5489_v55  ;;  %v5552_v54 = vld [vmem:[%s10383_s5 + $0x9f0] sm:$0xff]  ;;  %v5547_v55 = vld [vmem:[%s10383_s5 + $0x9c8] sm:$0xff] }
 0x368   : > { %3125 = vmatpush1.msra.mxu0 %v5486_v2  ;;  %3196 = vmatpush1.msra.mxu1 %v5488_v3  ;;  %v5549_v2 = vld [vmem:[%s10383_s5 + $0x9d8] sm:$0xff]  ;;  %v5546_v3 = vld [vmem:[%s10383_s5 + $0x9c0] sm:$0xff] }
 0x369   : > { %3126 = vmatprep.subr.mxu0 %v5483_v50  ;;  %3197 = vmatprep.subr.mxu1 %v5485_v21  ;;  %v5548_v50 = vld [vmem:[%s10383_s5 + $0x9d0] sm:$0xff]  ;;  %v5543_v21 = vld [vmem:[%s10383_s5 + $0x9a8] sm:$0xff] }
 0x36a   : > { %3127 = vmatpush1.msra.mxu0 %v5482_v56  ;;  %3198 = vmatpush1.msra.mxu1 %v5484_v57  ;;  %v5545_v56 = vld [vmem:[%s10383_s5 + $0x9b8] sm:$0xff]  ;;  %v5542_v57 = vld [vmem:[%s10383_s5 + $0x9a0] sm:$0xff] }
 0x36b   : > { %3128 = vmatprep.subr.mxu0 %v5479_v58  ;;  %3199 = vmatprep.subr.mxu1 %v5481_v59  ;;  %v5544_v58 = vld [vmem:[%s10383_s5 + $0x9b0] sm:$0xff]  ;;  %v5539_v59 = vld [vmem:[%s10383_s5 + $0x988] sm:$0xff] }
 0x36c   : > { %3129 = vmatpush1.msra.mxu0 %v5478_v5  ;;  %3200 = vmatpush1.msra.mxu1 %v5480_v6  ;;  %v5541_v5 = vld [vmem:[%s10383_s5 + $0x998] sm:$0xff]  ;;  %v3092_v6 = vrot.slane %v7810_v27, 2 }
 0x36d   : > { %3130 = vmatprep.subr.mxu0 %v5475_v11  ;;  %3201 = vmatprep.subr.mxu1 %v5477_v60  ;;  %v5538_v11 = vld [vmem:[%s10383_s5 + $0x980] sm:$0xff]  ;;  %v5540_v60 = vld [vmem:[%s10383_s5 + $0x990] sm:$0xff] }
 0x36e   : > { %3131 = vmatpush1.msra.mxu0 %v5474_v8  ;;  %3202 = vmatpush1.msra.mxu1 %v5476_v61  ;;  %v3091_v8 = vrot.slane %v7808_v51, 2  ;;  %v5657_v61 = vld [vmem:[%s10383_s5 + $0xd28] sm:$0xff] }
 0x36f   : > { %3136 = vmatprep.subr.mxu0 %v5591_v9  ;;  %3207 = vmatprep.subr.mxu1 %v5593_v13  ;;  %v5659_v9 = vld [vmem:[%s10383_s5 + $0xd38] sm:$0xff] }
 0x370   : > { %3137 = vmatpush2.msra.mxu0 %v5590_v14  ;;  %3208 = vmatpush2.msra.mxu1 %v5592_v15  ;;  %v3093_v13 = vsel %vm820_vm3, %v3091_v8, %v3092_v6  ;;  %v5656_v14 = vld [vmem:[%s10383_s5 + $0xd20] sm:$0xff]  ;;  %v5658_v15 = vld [vmem:[%s10383_s5 + $0xd30] sm:$0xff]  ;;  %vm4673_vm3 = vcmask 588800  }
 0x371   : > { %3138 = vmatprep.subr.mxu0 %v5587_v28  ;;  %3209 = vmatprep.subr.mxu1 %v5589_v29  ;;  %v5653_v28 = vld [vmem:[%s10383_s5 + $0xd08] sm:$0xff]  ;;  %v5655_v29 = vld [vmem:[%s10383_s5 + $0xd18] sm:$0xff]  ;;  %v5606_v6 = vld [vmem:[%s10383_s5 + $0xb90] sm:$0xff] }
 0x372   : > { %3139 = vmatpush2.msra.mxu0 %v5586_v30  ;;  %3210 = vmatpush2.msra.mxu1 %v5588_v4  ;;  %v5652_v30 = vld [vmem:[%s10383_s5 + $0xd00] sm:$0xff]  ;;  %v5654_v4 = vld [vmem:[%s10383_s5 + $0xd10] sm:$0xff] }
 0x373   : > { %3140 = vmatprep.subr.mxu0 %v5583_v16  ;;  %3211 = vmatprep.subr.mxu1 %v5585_v18  ;;  %v5649_v16 = vld [vmem:[%s10383_s5 + $0xce8] sm:$0xff]  ;;  %v5651_v18 = vld [vmem:[%s10383_s5 + $0xcf8] sm:$0xff]  ;;  %v5600_v8 = vld [vmem:[%s10383_s5 + $0xb60] sm:$0xff] }
 0x374   : > { %3141 = vmatpush2.msra.mxu0 %v5582_v23  ;;  %3212 = vmatpush2.msra.mxu1 %v5584_v24  ;;  %v5648_v23 = vld [vmem:[%s10383_s5 + $0xce0] sm:$0xff]  ;;  %v5650_v24 = vld [vmem:[%s10383_s5 + $0xcf0] sm:$0xff] }
 0x375   : > { %3142 = vmatprep.subr.mxu0 %v5579_v26  ;;  %3213 = vmatprep.subr.mxu1 %v5581_v31  ;;  %v5647_v26 = vld [vmem:[%s10383_s5 + $0xcd8] sm:$0xff]  ;;  %v5644_v31 = vld [vmem:[%s10383_s5 + $0xcc0] sm:$0xff] }
 0x376   : > { %3143 = vmatpush2.msra.mxu0 %v5578_v32  ;;  %3214 = vmatpush2.msra.mxu1 %v5580_v33  ;;  %v5646_v32 = vld [vmem:[%s10383_s5 + $0xcd0] sm:$0xff]  ;;  %v5641_v33 = vld [vmem:[%s10383_s5 + $0xca8] sm:$0xff] }
 0x377   : > { %3144 = vmatprep.subr.mxu0 %v5575_v22  ;;  %3215 = vmatprep.subr.mxu1 %v5577_v40  ;;  %v5643_v22 = vld [vmem:[%s10383_s5 + $0xcb8] sm:$0xff]  ;;  %v5640_v40 = vld [vmem:[%s10383_s5 + $0xca0] sm:$0xff] }
 0x378   : > { %3145 = vmatpush2.msra.mxu0 %v5574_v34  ;;  %3216 = vmatpush2.msra.mxu1 %v5576_v44  ;;  %v5642_v34 = vld [vmem:[%s10383_s5 + $0xcb0] sm:$0xff]  ;;  %v5637_v44 = vld [vmem:[%s10383_s5 + $0xc88] sm:$0xff] }
 0x379   : > { %3146 = vmatprep.subr.mxu0 %v5571_v35  ;;  %3217 = vmatprep.subr.mxu1 %v5573_v17  ;;  %v5639_v35 = vld [vmem:[%s10383_s5 + $0xc98] sm:$0xff]  ;;  %v5636_v17 = vld [vmem:[%s10383_s5 + $0xc80] sm:$0xff] }
 0x37a   : > { %3147 = vmatpush2.msra.mxu0 %v5570_v38  ;;  %3218 = vmatpush2.msra.mxu1 %v5572_v43  ;;  %v5638_v38 = vld [vmem:[%s10383_s5 + $0xc90] sm:$0xff]  ;;  %v5633_v43 = vld [vmem:[%s10383_s5 + $0xc68] sm:$0xff] }
 0x37b   : > { %3148 = vmatprep.subr.mxu0 %v5567_v36  ;;  %3219 = vmatprep.subr.mxu1 %v5569_v37  ;;  %v5635_v36 = vld [vmem:[%s10383_s5 + $0xc78] sm:$0xff]  ;;  %v5632_v37 = vld [vmem:[%s10383_s5 + $0xc60] sm:$0xff] }
 0x37c   : > { %3149 = vmatpush2.msra.mxu0 %v5566_v41  ;;  %3220 = vmatpush2.msra.mxu1 %v5568_v42  ;;  %v5634_v41 = vld [vmem:[%s10383_s5 + $0xc70] sm:$0xff]  ;;  %v5629_v42 = vld [vmem:[%s10383_s5 + $0xc48] sm:$0xff] }
 0x37d   : > { %3150 = vmatprep.subr.mxu0 %v5563_v45  ;;  %3221 = vmatprep.subr.mxu1 %v5565_v46  ;;  %v5631_v45 = vld [vmem:[%s10383_s5 + $0xc58] sm:$0xff]  ;;  %v5628_v46 = vld [vmem:[%s10383_s5 + $0xc40] sm:$0xff] }
 0x37e   : > { %3151 = vmatpush2.msra.mxu0 %v5562_v19  ;;  %3222 = vmatpush2.msra.mxu1 %v5564_v20  ;;  %v5630_v19 = vld [vmem:[%s10383_s5 + $0xc50] sm:$0xff]  ;;  %v5625_v20 = vld [vmem:[%s10383_s5 + $0xc28] sm:$0xff] }
 0x37f   : > { %3152 = vmatprep.subr.mxu0 %v5559_v47  ;;  %3223 = vmatprep.subr.mxu1 %v5561_v48  ;;  %v5627_v47 = vld [vmem:[%s10383_s5 + $0xc38] sm:$0xff]  ;;  %v5624_v48 = vld [vmem:[%s10383_s5 + $0xc20] sm:$0xff] }
 0x380   : > { %3153 = vmatpush2.msra.mxu0 %v5558_v49  ;;  %3224 = vmatpush2.msra.mxu1 %v5560_v25  ;;  %v5626_v49 = vld [vmem:[%s10383_s5 + $0xc30] sm:$0xff]  ;;  %v5621_v25 = vld [vmem:[%s10383_s5 + $0xc08] sm:$0xff] }
 0x381   : > { %3154 = vmatprep.subr.mxu0 %v5555_v62  ;;  %3225 = vmatprep.subr.mxu1 %v5557_v63  ;;  %v5623_v62 = vld [vmem:[%s10383_s5 + $0xc18] sm:$0xff]  ;;  %v5620_v63 = vld [vmem:[%s10383_s5 + $0xc00] sm:$0xff] }
 0x382   : > { %3155 = vmatpush2.msra.mxu0 %v5554_v52  ;;  %3226 = vmatpush2.msra.mxu1 %v5556_v53  ;;  %v5622_v52 = vld [vmem:[%s10383_s5 + $0xc10] sm:$0xff]  ;;  %v5617_v53 = vld [vmem:[%s10383_s5 + $0xbe8] sm:$0xff] }
 0x383   : > { %3156 = vmatprep.subr.mxu0 %v5551_v0  ;;  %3227 = vmatprep.subr.mxu1 %v5553_v1  ;;  %v5619_v0 = vld [vmem:[%s10383_s5 + $0xbf8] sm:$0xff]  ;;  %v5616_v1 = vld [vmem:[%s10383_s5 + $0xbe0] sm:$0xff] }
 0x384   : > { %3157 = vmatpush2.msra.mxu0 %v5550_v39  ;;  %3228 = vmatpush2.msra.mxu1 %v5552_v54  ;;  %v5618_v39 = vld [vmem:[%s10383_s5 + $0xbf0] sm:$0xff]  ;;  %v5613_v54 = vld [vmem:[%s10383_s5 + $0xbc8] sm:$0xff] }
 0x385   : > { %3158 = vmatprep.subr.mxu0 %v5547_v55  ;;  %3229 = vmatprep.subr.mxu1 %v5549_v2  ;;  %v5615_v55 = vld [vmem:[%s10383_s5 + $0xbd8] sm:$0xff]  ;;  %v5612_v2 = vld [vmem:[%s10383_s5 + $0xbc0] sm:$0xff] }
 0x386   : > { %3159 = vmatpush2.msra.mxu0 %v5546_v3  ;;  %3230 = vmatpush2.msra.mxu1 %v5548_v50  ;;  %v5614_v3 = vld [vmem:[%s10383_s5 + $0xbd0] sm:$0xff]  ;;  %v5609_v50 = vld [vmem:[%s10383_s5 + $0xba8] sm:$0xff] }
 0x387   : > { %3160 = vmatprep.subr.mxu0 %v5543_v21  ;;  %3231 = vmatprep.subr.mxu1 %v5545_v56  ;;  %v5611_v21 = vld [vmem:[%s10383_s5 + $0xbb8] sm:$0xff]  ;;  %v5608_v56 = vld [vmem:[%s10383_s5 + $0xba0] sm:$0xff] }
 0x388   : > { %3161 = vmatpush2.msra.mxu0 %v5542_v57  ;;  %3232 = vmatpush2.msra.mxu1 %v5544_v58  ;;  %v5610_v57 = vld [vmem:[%s10383_s5 + $0xbb0] sm:$0xff]  ;;  %v5605_v58 = vld [vmem:[%s10383_s5 + $0xb88] sm:$0xff] }
 0x389   : > { %3162 = vmatprep.subr.mxu0 %v5539_v59  ;;  %3233 = vmatprep.subr.mxu1 %v5541_v5  ;;  %v5607_v59 = vld [vmem:[%s10383_s5 + $0xb98] sm:$0xff]  ;;  %v5604_v5 = vld [vmem:[%s10383_s5 + $0xb80] sm:$0xff] }
 0x38a   : > { %3163 = vmatpush2.msra.mxu0 %v5538_v11  ;;  %3234 = vmatpush2.msra.mxu1 %v5540_v60  ;;  %v5601_v11 = vld [vmem:[%s10383_s5 + $0xb68] sm:$0xff]  ;;  %v5603_v60 = vld [vmem:[%s10383_s5 + $0xb78] sm:$0xff] }
 0x38b   : > { %3165 = vmatmul.mubr.f32.vlgmr.msra.gmra.mxu0 %v3093_v13  ;;  %3236 = vmatmul.mubr.f32.vlgmr.msra.gmra.mxu1 %v3093_v13  ;;  %v5599_v13 = vld [vmem:[%s10383_s5 + $0xb58] sm:$0xff] }
 0x38c   : > { %3376 = vmatprep.subr.mxu0 %v5657_v61  ;;  %3447 = vmatprep.subr.mxu1 %v5659_v9  ;;  %v5602_v61 = vld [vmem:[%s10383_s5 + $0xb70] sm:$0xff]  ;;  %v5597_v9 = vld [vmem:[%s10383_s5 + $0xb48] sm:$0xff] }
 0x38d   : > { %3377 = vmatpush1.msra.mxu0 %v5656_v14  ;;  %5716 = vmatprep.mubr.msk.f32.mxu0 %vm2681_vm7, %v7831_v7  ;;  %v5596_v14 = vld [vmem:[%s10383_s5 + $0xb40] sm:$0xff] }
 0x38e   : > { %3448 = vmatpush1.msra.mxu1 %v5658_v15  ;;  %5717 = vmatprep.mubr.msk.f32.mxu1 %vm2681_vm7, %v7831_v7  ;;  %v5645_v7 = vld [vmem:[%s10383_s5 + $0xcc8] sm:$0xff]  ;;  %v5598_v15 = vld [vmem:[%s10383_s5 + $0xb50] sm:$0xff] }
 0x38f   : > { %3378 = vmatprep.subr.mxu0 %v5653_v28  ;;  %3449 = vmatprep.subr.mxu1 %v5655_v29  ;;  %v5713_v28 = vld [vmem:[%s10383_s5 + $0xee8] sm:$0xff]  ;;  %v5715_v29 = vld [vmem:[%s10383_s5 + $0xef8] sm:$0xff] }
 0x390   : > { %3379 = vmatpush1.msra.mxu0 %v5652_v30  ;;  %3450 = vmatpush1.msra.mxu1 %v5654_v4  ;;  %v5712_v30 = vld [vmem:[%s10383_s5 + $0xee0] sm:$0xff]  ;;  %v5714_v4 = vld [vmem:[%s10383_s5 + $0xef0] sm:$0xff] }
 0x391   : > { %3380 = vmatprep.subr.mxu0 %v5649_v16  ;;  %3451 = vmatprep.subr.mxu1 %v5651_v18  ;;  %v5709_v16 = vld [vmem:[%s10383_s5 + $0xec8] sm:$0xff]  ;;  %v5711_v18 = vld [vmem:[%s10383_s5 + $0xed8] sm:$0xff] }
 0x392   : > { %3381 = vmatpush1.msra.mxu0 %v5648_v23  ;;  %3452 = vmatpush1.msra.mxu1 %v5650_v24  ;;  %v5708_v23 = vld [vmem:[%s10383_s5 + $0xec0] sm:$0xff]  ;;  %v5710_v24 = vld [vmem:[%s10383_s5 + $0xed0] sm:$0xff] }
 0x393   : > { %3382 = vmatprep.subr.mxu0 %v5645_v7  ;;  %3453 = vmatprep.subr.mxu1 %v5647_v26  ;;  %v5705_v7 = vld [vmem:[%s10383_s5 + $0xea8] sm:$0xff]  ;;  %v5707_v26 = vld [vmem:[%s10383_s5 + $0xeb8] sm:$0xff] }
 0x394   : > { %3383 = vmatpush1.msra.mxu0 %v5644_v31  ;;  %3454 = vmatpush1.msra.mxu1 %v5646_v32  ;;  %v5704_v31 = vld [vmem:[%s10383_s5 + $0xea0] sm:$0xff]  ;;  %v5706_v32 = vld [vmem:[%s10383_s5 + $0xeb0] sm:$0xff] }
 0x395   : > { %3384 = vmatprep.subr.mxu0 %v5641_v33  ;;  %3455 = vmatprep.subr.mxu1 %v5643_v22  ;;  %v5701_v33 = vld [vmem:[%s10383_s5 + $0xe88] sm:$0xff]  ;;  %v5703_v22 = vld [vmem:[%s10383_s5 + $0xe98] sm:$0xff] }
 0x396   : > { %3385 = vmatpush1.msra.mxu0 %v5640_v40  ;;  %3456 = vmatpush1.msra.mxu1 %v5642_v34  ;;  %v5700_v40 = vld [vmem:[%s10383_s5 + $0xe80] sm:$0xff]  ;;  %v5702_v34 = vld [vmem:[%s10383_s5 + $0xe90] sm:$0xff] }
 0x397   : > { %3386 = vmatprep.subr.mxu0 %v5637_v44  ;;  %3457 = vmatprep.subr.mxu1 %v5639_v35  ;;  %v5697_v44 = vld [vmem:[%s10383_s5 + $0xe68] sm:$0xff]  ;;  %v5699_v35 = vld [vmem:[%s10383_s5 + $0xe78] sm:$0xff] }
 0x398   : > { %3387 = vmatpush1.msra.mxu0 %v5636_v17  ;;  %3458 = vmatpush1.msra.mxu1 %v5638_v38  ;;  %v5696_v17 = vld [vmem:[%s10383_s5 + $0xe60] sm:$0xff]  ;;  %v5698_v38 = vld [vmem:[%s10383_s5 + $0xe70] sm:$0xff] }
 0x399   : > { %3388 = vmatprep.subr.mxu0 %v5633_v43  ;;  %3459 = vmatprep.subr.mxu1 %v5635_v36  ;;  %v5693_v43 = vld [vmem:[%s10383_s5 + $0xe48] sm:$0xff]  ;;  %v5695_v36 = vld [vmem:[%s10383_s5 + $0xe58] sm:$0xff] }
 0x39a   : > { %3389 = vmatpush1.msra.mxu0 %v5632_v37  ;;  %3460 = vmatpush1.msra.mxu1 %v5634_v41  ;;  %v5692_v37 = vld [vmem:[%s10383_s5 + $0xe40] sm:$0xff]  ;;  %v5694_v41 = vld [vmem:[%s10383_s5 + $0xe50] sm:$0xff] }
 0x39b   : > { %3390 = vmatprep.subr.mxu0 %v5629_v42  ;;  %3461 = vmatprep.subr.mxu1 %v5631_v45  ;;  %v5689_v42 = vld [vmem:[%s10383_s5 + $0xe28] sm:$0xff]  ;;  %v5691_v45 = vld [vmem:[%s10383_s5 + $0xe38] sm:$0xff] }
 0x39c   : > { %3391 = vmatpush1.msra.mxu0 %v5628_v46  ;;  %3462 = vmatpush1.msra.mxu1 %v5630_v19  ;;  %v5688_v46 = vld [vmem:[%s10383_s5 + $0xe20] sm:$0xff]  ;;  %v5690_v19 = vld [vmem:[%s10383_s5 + $0xe30] sm:$0xff] }
 0x39d   : > { %3392 = vmatprep.subr.mxu0 %v5625_v20  ;;  %3463 = vmatprep.subr.mxu1 %v5627_v47  ;;  %v5685_v20 = vld [vmem:[%s10383_s5 + $0xe08] sm:$0xff]  ;;  %v5687_v47 = vld [vmem:[%s10383_s5 + $0xe18] sm:$0xff] }
 0x39e   : > { %3393 = vmatpush1.msra.mxu0 %v5624_v48  ;;  %3464 = vmatpush1.msra.mxu1 %v5626_v49  ;;  %v5684_v48 = vld [vmem:[%s10383_s5 + $0xe00] sm:$0xff]  ;;  %v5686_v49 = vld [vmem:[%s10383_s5 + $0xe10] sm:$0xff] }
 0x39f   : > { %3394 = vmatprep.subr.mxu0 %v5621_v25  ;;  %3465 = vmatprep.subr.mxu1 %v5623_v62  ;;  %v5681_v25 = vld [vmem:[%s10383_s5 + $0xde8] sm:$0xff]  ;;  %v5683_v62 = vld [vmem:[%s10383_s5 + $0xdf8] sm:$0xff] }
 0x3a0   : > { %3395 = vmatpush1.msra.mxu0 %v5620_v63  ;;  %3466 = vmatpush1.msra.mxu1 %v5622_v52  ;;  %v5680_v63 = vld [vmem:[%s10383_s5 + $0xde0] sm:$0xff]  ;;  %v5682_v52 = vld [vmem:[%s10383_s5 + $0xdf0] sm:$0xff] }
 0x3a1   : > { %3396 = vmatprep.subr.mxu0 %v5617_v53  ;;  %3467 = vmatprep.subr.mxu1 %v5619_v0  ;;  %v5677_v53 = vld [vmem:[%s10383_s5 + $0xdc8] sm:$0xff]  ;;  %v5679_v0 = vld [vmem:[%s10383_s5 + $0xdd8] sm:$0xff] }
 0x3a2   : > { %3397 = vmatpush1.msra.mxu0 %v5616_v1  ;;  %3468 = vmatpush1.msra.mxu1 %v5618_v39  ;;  %v5676_v1 = vld [vmem:[%s10383_s5 + $0xdc0] sm:$0xff]  ;;  %v5678_v39 = vld [vmem:[%s10383_s5 + $0xdd0] sm:$0xff] }
 0x3a3   : > { %3398 = vmatprep.subr.mxu0 %v5613_v54  ;;  %3469 = vmatprep.subr.mxu1 %v5615_v55  ;;  %v5673_v54 = vld [vmem:[%s10383_s5 + $0xda8] sm:$0xff]  ;;  %v5675_v55 = vld [vmem:[%s10383_s5 + $0xdb8] sm:$0xff] }
 0x3a4   : > { %3399 = vmatpush1.msra.mxu0 %v5612_v2  ;;  %3470 = vmatpush1.msra.mxu1 %v5614_v3  ;;  %v5672_v2 = vld [vmem:[%s10383_s5 + $0xda0] sm:$0xff]  ;;  %v5674_v3 = vld [vmem:[%s10383_s5 + $0xdb0] sm:$0xff] }
 0x3a5   : > { %3400 = vmatprep.subr.mxu0 %v5609_v50  ;;  %3471 = vmatprep.subr.mxu1 %v5611_v21  ;;  %v5669_v50 = vld [vmem:[%s10383_s5 + $0xd88] sm:$0xff]  ;;  %v5671_v21 = vld [vmem:[%s10383_s5 + $0xd98] sm:$0xff] }
 0x3a6   : > { %3401 = vmatpush1.msra.mxu0 %v5608_v56  ;;  %3472 = vmatpush1.msra.mxu1 %v5610_v57  ;;  %v5668_v56 = vld [vmem:[%s10383_s5 + $0xd80] sm:$0xff]  ;;  %v5670_v57 = vld [vmem:[%s10383_s5 + $0xd90] sm:$0xff] }
 0x3a7   : > { %3402 = vmatprep.subr.mxu0 %v5605_v58  ;;  %3473 = vmatprep.subr.mxu1 %v5607_v59  ;;  %v5665_v58 = vld [vmem:[%s10383_s5 + $0xd68] sm:$0xff]  ;;  %v5667_v59 = vld [vmem:[%s10383_s5 + $0xd78] sm:$0xff] }
 0x3a8   : > { %3403 = vmatpush1.msra.mxu0 %v5604_v5  ;;  %3474 = vmatpush1.msra.mxu1 %v5606_v6  ;;  %v5664_v5 = vld [vmem:[%s10383_s5 + $0xd60] sm:$0xff]  ;;  %v5666_v6 = vld [vmem:[%s10383_s5 + $0xd70] sm:$0xff] }
 0x3a9   : > { %3404 = vmatprep.subr.mxu0 %v5601_v11  ;;  %3475 = vmatprep.subr.mxu1 %v5603_v60  ;;  %v5661_v11 = vld [vmem:[%s10383_s5 + $0xd48] sm:$0xff]  ;;  %v5663_v60 = vld [vmem:[%s10383_s5 + $0xd58] sm:$0xff] }
 0x3aa   : > { %3405 = vmatpush1.msra.mxu0 %v5600_v8  ;;  %3476 = vmatpush1.msra.mxu1 %v5602_v61  ;;  %v3368_v8 = vrot.slane %v7810_v27, 3  ;;  %v5660_v61 = vld [vmem:[%s10383_s5 + $0xd40] sm:$0xff] }
 0x3ab   : > { %3406 = vmatprep.subr.mxu0 %v5597_v9  ;;  %3477 = vmatprep.subr.mxu1 %v5599_v13  ;;  %v5662_v9 = vld [vmem:[%s10383_s5 + $0xd50] sm:$0xff]  ;;  %v3367_v13 = vrot.slane %v7808_v51, 3 }
 0x3ac   : > { %3407 = vmatpush1.msra.mxu0 %v5596_v14  ;;  %3478 = vmatpush1.msra.mxu1 %v5598_v15  ;;  %v5779_v14 = vld [vmem:[%s10383_s5 + $0x10e8] sm:$0xff]  ;;  %v5781_v15 = vld [vmem:[%s10383_s5 + $0x10f8] sm:$0xff] }
 0x3ad   : > { %3412 = vmatprep.subr.mxu0 %v5713_v28  ;;  %3483 = vmatprep.subr.mxu1 %v5715_v29  ;;  %v3369_v28 = vsel %vm1041_vm4, %v3367_v13, %v3368_v8  ;;  %v5778_v29 = vld [vmem:[%s10383_s5 + $0x10e0] sm:$0xff]  ;;  %v5723_v8 = vld [vmem:[%s10383_s5 + $0xf28] sm:$0xff]  ;;  %v5724_v13 = vld [vmem:[%s10383_s5 + $0xf30] sm:$0xff] }
 0x3ae   : > { %3413 = vmatpush2.msra.mxu0 %v5712_v30  ;;  %3484 = vmatpush2.msra.mxu1 %v5714_v4  ;;  %v5780_v30 = vld [vmem:[%s10383_s5 + $0x10f0] sm:$0xff]  ;;  %v5775_v4 = vld [vmem:[%s10383_s5 + $0x10c8] sm:$0xff] }
 0x3af   : > { %3414 = vmatprep.subr.mxu0 %v5709_v16  ;;  %3485 = vmatprep.subr.mxu1 %v5711_v18  ;;  %v5777_v16 = vld [vmem:[%s10383_s5 + $0x10d8] sm:$0xff]  ;;  %v5774_v18 = vld [vmem:[%s10383_s5 + $0x10c0] sm:$0xff] }
 0x3b0   : > { %3415 = vmatpush2.msra.mxu0 %v5708_v23  ;;  %3486 = vmatpush2.msra.mxu1 %v5710_v24  ;;  %v5776_v23 = vld [vmem:[%s10383_s5 + $0x10d0] sm:$0xff]  ;;  %v5771_v24 = vld [vmem:[%s10383_s5 + $0x10a8] sm:$0xff] }
 0x3b1   : > { %3416 = vmatprep.subr.mxu0 %v5705_v7  ;;  %3487 = vmatprep.subr.mxu1 %v5707_v26  ;;  %v5773_v7 = vld [vmem:[%s10383_s5 + $0x10b8] sm:$0xff]  ;;  %v5770_v26 = vld [vmem:[%s10383_s5 + $0x10a0] sm:$0xff] }
 0x3b2   : > { %3417 = vmatpush2.msra.mxu0 %v5704_v31  ;;  %3488 = vmatpush2.msra.mxu1 %v5706_v32  ;;  %v5772_v31 = vld [vmem:[%s10383_s5 + $0x10b0] sm:$0xff]  ;;  %v5769_v32 = vld [vmem:[%s10383_s5 + $0x1098] sm:$0xff] }
 0x3b3   : > { %3418 = vmatprep.subr.mxu0 %v5701_v33  ;;  %3489 = vmatprep.subr.mxu1 %v5703_v22  ;;  %v5766_v33 = vld [vmem:[%s10383_s5 + $0x1080] sm:$0xff]  ;;  %v5768_v22 = vld [vmem:[%s10383_s5 + $0x1090] sm:$0xff] }
 0x3b4   : > { %3419 = vmatpush2.msra.mxu0 %v5700_v40  ;;  %3490 = vmatpush2.msra.mxu1 %v5702_v34  ;;  %v5763_v40 = vld [vmem:[%s10383_s5 + $0x1068] sm:$0xff]  ;;  %v5765_v34 = vld [vmem:[%s10383_s5 + $0x1078] sm:$0xff] }
 0x3b5   : > { %3420 = vmatprep.subr.mxu0 %v5697_v44  ;;  %3491 = vmatprep.subr.mxu1 %v5699_v35  ;;  %v5762_v44 = vld [vmem:[%s10383_s5 + $0x1060] sm:$0xff]  ;;  %v5764_v35 = vld [vmem:[%s10383_s5 + $0x1070] sm:$0xff] }
 0x3b6   : > { %3421 = vmatpush2.msra.mxu0 %v5696_v17  ;;  %3492 = vmatpush2.msra.mxu1 %v5698_v38  ;;  %v5759_v17 = vld [vmem:[%s10383_s5 + $0x1048] sm:$0xff]  ;;  %v5761_v38 = vld [vmem:[%s10383_s5 + $0x1058] sm:$0xff] }
 0x3b7   : > { %3422 = vmatprep.subr.mxu0 %v5693_v43  ;;  %3493 = vmatprep.subr.mxu1 %v5695_v36  ;;  %v5758_v43 = vld [vmem:[%s10383_s5 + $0x1040] sm:$0xff]  ;;  %v5760_v36 = vld [vmem:[%s10383_s5 + $0x1050] sm:$0xff] }
 0x3b8   : > { %3423 = vmatpush2.msra.mxu0 %v5692_v37  ;;  %3494 = vmatpush2.msra.mxu1 %v5694_v41  ;;  %v5755_v37 = vld [vmem:[%s10383_s5 + $0x1028] sm:$0xff]  ;;  %v5757_v41 = vld [vmem:[%s10383_s5 + $0x1038] sm:$0xff] }
 0x3b9   : > { %3424 = vmatprep.subr.mxu0 %v5689_v42  ;;  %3495 = vmatprep.subr.mxu1 %v5691_v45  ;;  %v5754_v42 = vld [vmem:[%s10383_s5 + $0x1020] sm:$0xff]  ;;  %v5756_v45 = vld [vmem:[%s10383_s5 + $0x1030] sm:$0xff] }
 0x3ba   : > { %3425 = vmatpush2.msra.mxu0 %v5688_v46  ;;  %3496 = vmatpush2.msra.mxu1 %v5690_v19  ;;  %v5751_v46 = vld [vmem:[%s10383_s5 + $0x1008] sm:$0xff]  ;;  %v5753_v19 = vld [vmem:[%s10383_s5 + $0x1018] sm:$0xff] }
 0x3bb   : > { %3426 = vmatprep.subr.mxu0 %v5685_v20  ;;  %3497 = vmatprep.subr.mxu1 %v5687_v47  ;;  %v5750_v20 = vld [vmem:[%s10383_s5 + $0x1000] sm:$0xff]  ;;  %v5752_v47 = vld [vmem:[%s10383_s5 + $0x1010] sm:$0xff] }
 0x3bc   : > { %3427 = vmatpush2.msra.mxu0 %v5684_v48  ;;  %3498 = vmatpush2.msra.mxu1 %v5686_v49  ;;  %v5747_v48 = vld [vmem:[%s10383_s5 + $0xfe8] sm:$0xff]  ;;  %v5749_v49 = vld [vmem:[%s10383_s5 + $0xff8] sm:$0xff] }
 0x3bd   : > { %3428 = vmatprep.subr.mxu0 %v5681_v25  ;;  %3499 = vmatprep.subr.mxu1 %v5683_v62  ;;  %v5746_v25 = vld [vmem:[%s10383_s5 + $0xfe0] sm:$0xff]  ;;  %v5748_v62 = vld [vmem:[%s10383_s5 + $0xff0] sm:$0xff] }
 0x3be   : > { %3429 = vmatpush2.msra.mxu0 %v5680_v63  ;;  %3500 = vmatpush2.msra.mxu1 %v5682_v52  ;;  %v5743_v63 = vld [vmem:[%s10383_s5 + $0xfc8] sm:$0xff]  ;;  %v5745_v52 = vld [vmem:[%s10383_s5 + $0xfd8] sm:$0xff] }
 0x3bf   : > { %3430 = vmatprep.subr.mxu0 %v5677_v53  ;;  %3501 = vmatprep.subr.mxu1 %v5679_v0  ;;  %v5742_v53 = vld [vmem:[%s10383_s5 + $0xfc0] sm:$0xff]  ;;  %v5744_v0 = vld [vmem:[%s10383_s5 + $0xfd0] sm:$0xff] }
 0x3c0   : > { %3431 = vmatpush2.msra.mxu0 %v5676_v1  ;;  %3502 = vmatpush2.msra.mxu1 %v5678_v39  ;;  %v5739_v1 = vld [vmem:[%s10383_s5 + $0xfa8] sm:$0xff]  ;;  %v5741_v39 = vld [vmem:[%s10383_s5 + $0xfb8] sm:$0xff] }
 0x3c1   : > { %3432 = vmatprep.subr.mxu0 %v5673_v54  ;;  %3503 = vmatprep.subr.mxu1 %v5675_v55  ;;  %v5738_v54 = vld [vmem:[%s10383_s5 + $0xfa0] sm:$0xff]  ;;  %v5740_v55 = vld [vmem:[%s10383_s5 + $0xfb0] sm:$0xff] }
 0x3c2   : > { %3433 = vmatpush2.msra.mxu0 %v5672_v2  ;;  %3504 = vmatpush2.msra.mxu1 %v5674_v3  ;;  %v5735_v2 = vld [vmem:[%s10383_s5 + $0xf88] sm:$0xff]  ;;  %v5737_v3 = vld [vmem:[%s10383_s5 + $0xf98] sm:$0xff] }
 0x3c3   : > { %3434 = vmatprep.subr.mxu0 %v5669_v50  ;;  %3505 = vmatprep.subr.mxu1 %v5671_v21  ;;  %v5734_v50 = vld [vmem:[%s10383_s5 + $0xf80] sm:$0xff]  ;;  %v5736_v21 = vld [vmem:[%s10383_s5 + $0xf90] sm:$0xff] }
 0x3c4   : > { %3435 = vmatpush2.msra.mxu0 %v5668_v56  ;;  %3506 = vmatpush2.msra.mxu1 %v5670_v57  ;;  %v5731_v56 = vld [vmem:[%s10383_s5 + $0xf68] sm:$0xff]  ;;  %v5733_v57 = vld [vmem:[%s10383_s5 + $0xf78] sm:$0xff] }
 0x3c5   : > { %3436 = vmatprep.subr.mxu0 %v5665_v58  ;;  %3507 = vmatprep.subr.mxu1 %v5667_v59  ;;  %v5730_v58 = vld [vmem:[%s10383_s5 + $0xf60] sm:$0xff]  ;;  %v5732_v59 = vld [vmem:[%s10383_s5 + $0xf70] sm:$0xff] }
 0x3c6   : > { %3437 = vmatpush2.msra.mxu0 %v5664_v5  ;;  %3508 = vmatpush2.msra.mxu1 %v5666_v6  ;;  %v5727_v5 = vld [vmem:[%s10383_s5 + $0xf48] sm:$0xff]  ;;  %v5729_v6 = vld [vmem:[%s10383_s5 + $0xf58] sm:$0xff] }
 0x3c7   : > { %3438 = vmatprep.subr.mxu0 %v5661_v11  ;;  %3509 = vmatprep.subr.mxu1 %v5663_v60  ;;  %v5726_v11 = vld [vmem:[%s10383_s5 + $0xf40] sm:$0xff]  ;;  %v5728_v60 = vld [vmem:[%s10383_s5 + $0xf50] sm:$0xff] }
 0x3c8   : > { %3439 = vmatpush2.msra.mxu0 %v5660_v61  ;;  %3510 = vmatpush2.msra.mxu1 %v5662_v9  ;;  %v5725_v61 = vld [vmem:[%s10383_s5 + $0xf38] sm:$0xff]  ;;  %v5722_v9 = vld [vmem:[%s10383_s5 + $0xf20] sm:$0xff] }
 0x3c9   : > { %3441 = vmatmul.mubr.f32.vlgmr.msra.gmra.mxu0 %v3369_v28  ;;  %3512 = vmatmul.mubr.f32.vlgmr.msra.gmra.mxu1 %v3369_v28  ;;  %v5718_v28 = vld [vmem:[%s10383_s5 + $0xf00] sm:$0xff] }
 0x3ca   : > { %3652 = vmatprep.subr.mxu0 %v5779_v14  ;;  %3723 = vmatprep.subr.mxu1 %v5781_v15  ;;  %v5719_v14 = vld [vmem:[%s10383_s5 + $0xf08] sm:$0xff]  ;;  %v5721_v15 = vld [vmem:[%s10383_s5 + $0xf18] sm:$0xff] }
 0x3cb   : > { %3653 = vmatpush1.msra.mxu0 %v5778_v29  ;;  %5838 = vmatprep.mubr.msk.f32.mxu0 %vm2681_vm7, %v7834_v10  ;;  %v5720_v29 = vld [vmem:[%s10383_s5 + $0xf10] sm:$0xff] }
 0x3cc   : > { %3724 = vmatpush1.msra.mxu1 %v5780_v30  ;;  %5839 = vmatprep.mubr.msk.f32.mxu1 %vm2681_vm7, %v7834_v10  ;;  %v5767_v10 = vld [vmem:[%s10383_s5 + $0x1088] sm:$0xff] }
 0x3cd   : > { %3654 = vmatprep.subr.mxu0 %v5775_v4  ;;  %3725 = vmatprep.subr.mxu1 %v5777_v16  ;;  %v5835_v30 = vld [vmem:[%s10383_s5 + $0x12a8] sm:$0xff]  ;;  %v5837_v4 = vld [vmem:[%s10383_s5 + $0x12b8] sm:$0xff]  ;;  %v5834_v16 = vld [vmem:[%s10383_s5 + $0x12a0] sm:$0xff] }
 0x3ce   : > { %3655 = vmatpush1.msra.mxu0 %v5774_v18  ;;  %3726 = vmatpush1.msra.mxu1 %v5776_v23  ;;  %v5836_v18 = vld [vmem:[%s10383_s5 + $0x12b0] sm:$0xff]  ;;  %v5831_v23 = vld [vmem:[%s10383_s5 + $0x1288] sm:$0xff] }
 0x3cf   : > { %3656 = vmatprep.subr.mxu0 %v5771_v24  ;;  %3727 = vmatprep.subr.mxu1 %v5773_v7  ;;  %v5833_v24 = vld [vmem:[%s10383_s5 + $0x1298] sm:$0xff]  ;;  %v5830_v7 = vld [vmem:[%s10383_s5 + $0x1280] sm:$0xff] }
 0x3d0   : > { %3657 = vmatpush1.msra.mxu0 %v5770_v26  ;;  %3728 = vmatpush1.msra.mxu1 %v5772_v31  ;;  %v5832_v26 = vld [vmem:[%s10383_s5 + $0x1290] sm:$0xff]  ;;  %v5827_v31 = vld [vmem:[%s10383_s5 + $0x1268] sm:$0xff] }
 0x3d1   : > { %3658 = vmatprep.subr.mxu0 %v5767_v10  ;;  %3729 = vmatprep.subr.mxu1 %v5769_v32  ;;  %v5829_v10 = vld [vmem:[%s10383_s5 + $0x1278] sm:$0xff]  ;;  %v5826_v32 = vld [vmem:[%s10383_s5 + $0x1260] sm:$0xff] }
 0x3d2   : > { %3659 = vmatpush1.msra.mxu0 %v5766_v33  ;;  %3730 = vmatpush1.msra.mxu1 %v5768_v22  ;;  %v5828_v33 = vld [vmem:[%s10383_s5 + $0x1270] sm:$0xff]  ;;  %v5823_v22 = vld [vmem:[%s10383_s5 + $0x1248] sm:$0xff] }
 0x3d3   : > { %3660 = vmatprep.subr.mxu0 %v5763_v40  ;;  %3731 = vmatprep.subr.mxu1 %v5765_v34  ;;  %v5825_v40 = vld [vmem:[%s10383_s5 + $0x1258] sm:$0xff]  ;;  %v5822_v34 = vld [vmem:[%s10383_s5 + $0x1240] sm:$0xff] }
 0x3d4   : > { %3661 = vmatpush1.msra.mxu0 %v5762_v44  ;;  %3732 = vmatpush1.msra.mxu1 %v5764_v35  ;;  %v5824_v44 = vld [vmem:[%s10383_s5 + $0x1250] sm:$0xff]  ;;  %v5819_v35 = vld [vmem:[%s10383_s5 + $0x1228] sm:$0xff] }
 0x3d5   : > { %3662 = vmatprep.subr.mxu0 %v5759_v17  ;;  %3733 = vmatprep.subr.mxu1 %v5761_v38  ;;  %v5821_v17 = vld [vmem:[%s10383_s5 + $0x1238] sm:$0xff]  ;;  %v5818_v38 = vld [vmem:[%s10383_s5 + $0x1220] sm:$0xff] }
 0x3d6   : > { %3663 = vmatpush1.msra.mxu0 %v5758_v43  ;;  %3734 = vmatpush1.msra.mxu1 %v5760_v36  ;;  %v5820_v43 = vld [vmem:[%s10383_s5 + $0x1230] sm:$0xff]  ;;  %v5815_v36 = vld [vmem:[%s10383_s5 + $0x1208] sm:$0xff] }
 0x3d7   : > { %3664 = vmatprep.subr.mxu0 %v5755_v37  ;;  %3735 = vmatprep.subr.mxu1 %v5757_v41  ;;  %v5817_v37 = vld [vmem:[%s10383_s5 + $0x1218] sm:$0xff]  ;;  %v5814_v41 = vld [vmem:[%s10383_s5 + $0x1200] sm:$0xff] }
 0x3d8   : > { %3665 = vmatpush1.msra.mxu0 %v5754_v42  ;;  %3736 = vmatpush1.msra.mxu1 %v5756_v45  ;;  %v5816_v42 = vld [vmem:[%s10383_s5 + $0x1210] sm:$0xff]  ;;  %v5811_v45 = vld [vmem:[%s10383_s5 + $0x11e8] sm:$0xff] }
 0x3d9   : > { %3666 = vmatprep.subr.mxu0 %v5751_v46  ;;  %3737 = vmatprep.subr.mxu1 %v5753_v19  ;;  %v5813_v46 = vld [vmem:[%s10383_s5 + $0x11f8] sm:$0xff]  ;;  %v5810_v19 = vld [vmem:[%s10383_s5 + $0x11e0] sm:$0xff] }
 0x3da   : > { %3667 = vmatpush1.msra.mxu0 %v5750_v20  ;;  %3738 = vmatpush1.msra.mxu1 %v5752_v47  ;;  %v5812_v20 = vld [vmem:[%s10383_s5 + $0x11f0] sm:$0xff]  ;;  %v5807_v47 = vld [vmem:[%s10383_s5 + $0x11c8] sm:$0xff] }
 0x3db   : > { %3668 = vmatprep.subr.mxu0 %v5747_v48  ;;  %3739 = vmatprep.subr.mxu1 %v5749_v49  ;;  %v5809_v48 = vld [vmem:[%s10383_s5 + $0x11d8] sm:$0xff]  ;;  %v5806_v49 = vld [vmem:[%s10383_s5 + $0x11c0] sm:$0xff] }
 0x3dc   : > { %3669 = vmatpush1.msra.mxu0 %v5746_v25  ;;  %3740 = vmatpush1.msra.mxu1 %v5748_v62  ;;  %v5808_v25 = vld [vmem:[%s10383_s5 + $0x11d0] sm:$0xff]  ;;  %v5803_v62 = vld [vmem:[%s10383_s5 + $0x11a8] sm:$0xff] }
 0x3dd   : > { %3670 = vmatprep.subr.mxu0 %v5743_v63  ;;  %3741 = vmatprep.subr.mxu1 %v5745_v52  ;;  %v5805_v63 = vld [vmem:[%s10383_s5 + $0x11b8] sm:$0xff]  ;;  %v5802_v52 = vld [vmem:[%s10383_s5 + $0x11a0] sm:$0xff] }
 0x3de   : > { %3671 = vmatpush1.msra.mxu0 %v5742_v53  ;;  %3742 = vmatpush1.msra.mxu1 %v5744_v0  ;;  %v5804_v53 = vld [vmem:[%s10383_s5 + $0x11b0] sm:$0xff]  ;;  %v5799_v0 = vld [vmem:[%s10383_s5 + $0x1188] sm:$0xff] }
 0x3df   : > { %3672 = vmatprep.subr.mxu0 %v5739_v1  ;;  %3743 = vmatprep.subr.mxu1 %v5741_v39  ;;  %v5801_v1 = vld [vmem:[%s10383_s5 + $0x1198] sm:$0xff]  ;;  %v5798_v39 = vld [vmem:[%s10383_s5 + $0x1180] sm:$0xff] }
 0x3e0   : > { %3673 = vmatpush1.msra.mxu0 %v5738_v54  ;;  %3744 = vmatpush1.msra.mxu1 %v5740_v55  ;;  %v5800_v54 = vld [vmem:[%s10383_s5 + $0x1190] sm:$0xff]  ;;  %v5795_v55 = vld [vmem:[%s10383_s5 + $0x1168] sm:$0xff] }
 0x3e1   : > { %3674 = vmatprep.subr.mxu0 %v5735_v2  ;;  %3745 = vmatprep.subr.mxu1 %v5737_v3  ;;  %v5797_v2 = vld [vmem:[%s10383_s5 + $0x1178] sm:$0xff]  ;;  %v5794_v3 = vld [vmem:[%s10383_s5 + $0x1160] sm:$0xff] }
 0x3e2   : > { %3675 = vmatpush1.msra.mxu0 %v5734_v50  ;;  %3746 = vmatpush1.msra.mxu1 %v5736_v21  ;;  %v5796_v50 = vld [vmem:[%s10383_s5 + $0x1170] sm:$0xff]  ;;  %v5791_v21 = vld [vmem:[%s10383_s5 + $0x1148] sm:$0xff] }
 0x3e3   : > { %3676 = vmatprep.subr.mxu0 %v5731_v56  ;;  %3747 = vmatprep.subr.mxu1 %v5733_v57  ;;  %v5793_v56 = vld [vmem:[%s10383_s5 + $0x1158] sm:$0xff]  ;;  %v5790_v57 = vld [vmem:[%s10383_s5 + $0x1140] sm:$0xff] }
 0x3e4   : > { %3677 = vmatpush1.msra.mxu0 %v5730_v58  ;;  %3748 = vmatpush1.msra.mxu1 %v5732_v59  ;;  %v5792_v58 = vld [vmem:[%s10383_s5 + $0x1150] sm:$0xff]  ;;  %v5787_v59 = vld [vmem:[%s10383_s5 + $0x1128] sm:$0xff] }
 0x3e5   : > { %3678 = vmatprep.subr.mxu0 %v5727_v5  ;;  %3749 = vmatprep.subr.mxu1 %v5729_v6  ;;  %v5789_v5 = vld [vmem:[%s10383_s5 + $0x1138] sm:$0xff]  ;;  %v5786_v6 = vld [vmem:[%s10383_s5 + $0x1120] sm:$0xff] }
 0x3e6   : > { %3679 = vmatpush1.msra.mxu0 %v5726_v11  ;;  %3750 = vmatpush1.msra.mxu1 %v5728_v60  ;;  %v5788_v11 = vld [vmem:[%s10383_s5 + $0x1130] sm:$0xff]  ;;  %v5783_v60 = vld [vmem:[%s10383_s5 + $0x1108] sm:$0xff] }
 0x3e7   : > { %3680 = vmatprep.subr.mxu0 %v5723_v8  ;;  %3751 = vmatprep.subr.mxu1 %v5725_v61  ;;  %v5785_v8 = vld [vmem:[%s10383_s5 + $0x1118] sm:$0xff]  ;;  %v3644_v61 = vrot.slane %v7810_v27, 4 }
 0x3e8   : > { %3681 = vmatpush1.msra.mxu0 %v5722_v9  ;;  %3752 = vmatpush1.msra.mxu1 %v5724_v13  ;;  %v5782_v9 = vld [vmem:[%s10383_s5 + $0x1100] sm:$0xff]  ;;  %v5784_v13 = vld [vmem:[%s10383_s5 + $0x1110] sm:$0xff] }
 0x3e9   : > { %3682 = vmatprep.subr.mxu0 %v5719_v14  ;;  %3753 = vmatprep.subr.mxu1 %v5721_v15  ;;  %v3643_v14 = vrot.slane %v7808_v51, 4  ;;  %v2750_v15 = vpop.f32.mrf.mxu0 }
 0x3ea   : > { %3683 = vmatpush1.msra.mxu0 %v5718_v28  ;;  %3754 = vmatpush1.msra.mxu1 %v5720_v29  ;;  %v2821_v28 = vpop.f32.mrf.mxu1 }
 0x3eb   : > { %3688 = vmatprep.subr.mxu0 %v5835_v30  ;;  %3759 = vmatprep.subr.mxu1 %v5837_v4  ;;  %v3645_v27 = vsel %vm440_vm0, %v3643_v14, %v3644_v61  ;;  %v2752_v29 = vpop.f32.mrf.mxu0  ;;  %vm3829_vm0 = vcmask 64512   ;;  %v4156_v61 = vld [vmem:[%s10386_s8 + $0xf0] sm:$0xff]  ;;  %v4219_v14 = vld [vmem:[%s10386_s8 + $0x2e8] sm:$0xff] }
 0x3ec   : > { %3689 = vmatpush2.msra.mxu0 %v5834_v16  ;;  %3760 = vmatpush2.msra.mxu1 %v5836_v18  ;;  %v2823_v30 = vpop.f32.mrf.mxu1 }
 0x3ed   : > { %3690 = vmatprep.subr.mxu0 %v5831_v23  ;;  %3761 = vmatprep.subr.mxu1 %v5833_v24 }
 0x3ee   : > { %3691 = vmatpush2.msra.mxu0 %v5830_v7  ;;  %3762 = vmatpush2.msra.mxu1 %v5832_v26 }
 0x3ef   : > { %3692 = vmatprep.subr.mxu0 %v5827_v31  ;;  %3763 = vmatprep.subr.mxu1 %v5829_v10 }
 0x3f0   : > { %3693 = vmatpush2.msra.mxu0 %v5826_v32  ;;  %3764 = vmatpush2.msra.mxu1 %v5828_v33 }
 0x3f1   : > { %3694 = vmatprep.subr.mxu0 %v5823_v22  ;;  %3765 = vmatprep.subr.mxu1 %v5825_v40 }
 0x3f2   : > { %3695 = vmatpush2.msra.mxu0 %v5822_v34  ;;  %3766 = vmatpush2.msra.mxu1 %v5824_v44 }
 0x3f3   : > { %3696 = vmatprep.subr.mxu0 %v5819_v35  ;;  %3767 = vmatprep.subr.mxu1 %v5821_v17  ;;  %v3798_v35 = vld [vmem:[%s10384_s6] sm:$0xf] }
 0x3f4   : > { %3697 = vmatpush2.msra.mxu0 %v5818_v38  ;;  %3768 = vmatpush2.msra.mxu1 %v5820_v43 }
 0x3f5   : > { %3698 = vmatprep.subr.mxu0 %v5815_v36  ;;  %3769 = vmatprep.subr.mxu1 %v5817_v37 }
 0x3f6   : > { %3699 = vmatpush2.msra.mxu0 %v5814_v41  ;;  %3770 = vmatpush2.msra.mxu1 %v5816_v42 }
 0x3f7   : > { %3700 = vmatprep.subr.mxu0 %v5811_v45  ;;  %3771 = vmatprep.subr.mxu1 %v5813_v46  ;;  %v10411_v45 = vld [vmem:[#allocation7_spill] sm:$0xff] }
 0x3f8   : > { %3701 = vmatpush2.msra.mxu0 %v5810_v19  ;;  %3772 = vmatpush2.msra.mxu1 %v5812_v20  ;;  %v10412_v46 = vsub.s32 0, %v10411_v45 }
 0x3f9   : > { %3702 = vmatprep.subr.mxu0 %v5807_v47  ;;  %3773 = vmatprep.subr.mxu1 %v5809_v48  ;;  %v10413_v47 = vsub.s32 2, %v10411_v45 }
 0x3fa   : > { %3703 = vmatpush2.msra.mxu0 %v5806_v49  ;;  %3774 = vmatpush2.msra.mxu1 %v5808_v25  ;;  %v3803_v19 = vrot.slane %v3798_v35, %v10412_v46  ;;  %v10414_v49 = vsub.s32 1, %v10411_v45  ;;  %v4139_v46 = vld [vmem:[%s10386_s8 + $0x68] sm:$0xff] }
 0x3fb   : > { %3704 = vmatprep.subr.mxu0 %v5803_v62  ;;  %3775 = vmatprep.subr.mxu1 %v5805_v63  ;;  %v3811_v48 = vrot.slane %v3798_v35, %v10413_v47  ;;  %v10415_v62 = vsub.s32 3, %v10411_v45  ;;  %v4204_v45 = vld [vmem:[%s10386_s8 + $0x270] sm:$0xff]  ;;  %v4202_v47 = vld [vmem:[%s10386_s8 + $0x260] sm:$0xff] }
 0x3fc   : > { %3705 = vmatpush2.msra.mxu0 %v5802_v52  ;;  %3776 = vmatpush2.msra.mxu1 %v5804_v53  ;;  %v3807_v25 = vrot.slane %v3798_v35, %v10414_v49  ;;  %v4201_v49 = vld [vmem:[%s10386_s8 + $0x258] sm:$0xff] }
 0x3fd   : > { %3706 = vmatprep.subr.mxu0 %v5799_v0  ;;  %3777 = vmatprep.subr.mxu1 %v5801_v1  ;;  %v3815_v63 = vrot.slane %v3798_v35, %v10415_v62  ;;  %v4208_v35 = vld [vmem:[%s10386_s8 + $0x290] sm:$0xff] }
 0x3fe   : > { %3707 = vmatpush2.msra.mxu0 %v5798_v39  ;;  %3778 = vmatpush2.msra.mxu1 %v5800_v54  ;;  %v4200_v62 = vld [vmem:[%s10386_s8 + $0x250] sm:$0xff] }
 0x3ff   : > { %3708 = vmatprep.subr.mxu0 %v5795_v55  ;;  %3779 = vmatprep.subr.mxu1 %v5797_v2 }
 0x400   : > { %3709 = vmatpush2.msra.mxu0 %v5794_v3  ;;  %3780 = vmatpush2.msra.mxu1 %v5796_v50 }
 0x401   : > { %3710 = vmatprep.subr.mxu0 %v5791_v21  ;;  %3781 = vmatprep.subr.mxu1 %v5793_v56 }
 0x402   : > { %3711 = vmatpush2.msra.mxu0 %v5790_v57  ;;  %3782 = vmatpush2.msra.mxu1 %v5792_v58 }
 0x403   : > { %3712 = vmatprep.subr.mxu0 %v5787_v59  ;;  %3783 = vmatprep.subr.mxu1 %v5789_v5 }
 0x404   : > { %3713 = vmatpush2.msra.mxu0 %v5786_v6  ;;  %3784 = vmatpush2.msra.mxu1 %v5788_v11  ;;  %v3828_v6 = vld [vmem:[%s10385_s7] sm:$0xf]  ;;  %v5842_v11 = vld [vmem:[%s10385_s7 + $0x4] sm:$0xf] }
 0x405   : > { %3714 = vmatprep.subr.mxu0 %v5783_v60  ;;  %3785 = vmatprep.subr.mxu1 %v5785_v8  ;;  %v4157_v60 = vld [vmem:[%s10386_s8 + $0xf8] sm:$0xff] }
 0x406   : > { %3715 = vmatpush2.msra.mxu0 %v5782_v9  ;;  %3786 = vmatpush2.msra.mxu1 %v5784_v13  ;;  %v4221_v8 = vld [vmem:[%s10386_s8 + $0x2f8] sm:$0xff]  ;;  %v4220_v9 = vld [vmem:[%s10386_s8 + $0x2f0] sm:$0xff]  ;;  %v4155_v13 = vld [vmem:[%s10386_s8 + $0xe8] sm:$0xff] }
 0x407   : > { %3717 = vmatmul.mubr.f32.vlgmr.msra.gmra.mxu0 %v3645_v27  ;;  %3788 = vmatmul.mubr.f32.vlgmr.msra.gmra.mxu1 %v3645_v27  ;;  %v4154_v27 = vld [vmem:[%s10386_s8 + $0xe0] sm:$0xff] }
 0x408   : > { %3897 = vmatprep.mubr.f32.mxu0 %v10410_v12  ;;  %3968 = vmatprep.mubr.f32.mxu1 %v10410_v12 }
 0x40d   : > { %v2894_v4 = vpop.f32.mrf.mxu0  ;;  %v2965_v16 = vpop.f32.mrf.mxu1 }
 0x40e   : > { %v2895_v32 = vadd.f32 %v2894_v4, %v2750_v15  ;;  %v2966_v33 = vadd.f32 %v2965_v16, %v2821_v28  ;;  %v4218_v15 = vld [vmem:[%s10386_s8 + $0x2e0] sm:$0xff]  ;;  %v4153_v28 = vld [vmem:[%s10386_s8 + $0xd8] sm:$0xff]  ;;  %v4216_v4 = vld [vmem:[%s10386_s8 + $0x2d0] sm:$0xff] }
 0x40f   : > { %v2896_v18 = vpop.f32.mrf.mxu0  ;;  %v2967_v51 = vpop.f32.mrf.mxu1  ;;  %v4151_v16 = vld [vmem:[%s10386_s8 + $0xc8] sm:$0xff] }
 0x410   : > { %v2897_v22 = vadd.f32 %v2896_v18, %v2752_v29  ;;  %v2968_v40 = vadd.f32 %v2967_v51, %v2823_v30  ;;  %v4217_v29 = vld [vmem:[%s10386_s8 + $0x2d8] sm:$0xff]  ;;  %v4152_v30 = vld [vmem:[%s10386_s8 + $0xd0] sm:$0xff]  ;;  %v4215_v18 = vld [vmem:[%s10386_s8 + $0x2c8] sm:$0xff] }
 0x411   : > { %v4150_v51 = vld [vmem:[%s10386_s8 + $0xc0] sm:$0xff] }
 0x44b   : > { %v3166_v23 = vpop.f32.mrf.mxu0  ;;  %v3237_v24 = vpop.f32.mrf.mxu1 }
 0x44c   : > { %v3242_v34 = vadd.f32 %v3166_v23, %v2895_v32  ;;  %v3244_v44 = vadd.f32 %v3237_v24, %v2966_v33  ;;  %v4214_v23 = vld [vmem:[%s10386_s8 + $0x2c0] sm:$0xff]  ;;  %v4149_v24 = vld [vmem:[%s10386_s8 + $0xb8] sm:$0xff]  ;;  %v4211_v32 = vld [vmem:[%s10386_s8 + $0x2a8] sm:$0xff] }
 0x44d   : > { %v3168_v7 = vpop.f32.mrf.mxu0  ;;  %v3239_v26 = vpop.f32.mrf.mxu1  ;;  %v4146_v33 = vld [vmem:[%s10386_s8 + $0xa0] sm:$0xff] }
 0x44e   : > { %v3243_v43 = vadd.f32 %v3168_v7, %v2897_v22  ;;  %v3245_v36 = vadd.f32 %v3239_v26, %v2968_v40  ;;  %v4213_v7 = vld [vmem:[%s10386_s8 + $0x2b8] sm:$0xff]  ;;  %v4148_v26 = vld [vmem:[%s10386_s8 + $0xb0] sm:$0xff]  ;;  %v4210_v22 = vld [vmem:[%s10386_s8 + $0x2a0] sm:$0xff] }
 0x44f   : > { %v4145_v40 = vld [vmem:[%s10386_s8 + $0x98] sm:$0xff] }
 0x489   : > { %v3442_v31 = vpop.f32.mrf.mxu0  ;;  %v3513_v10 = vpop.f32.mrf.mxu1 }
 0x48a   : > { %v3518_v37 = vadd.f32 %v3442_v31, %v3242_v34  ;;  %v3520_v41 = vadd.f32 %v3513_v10, %v3244_v44  ;;  %v4212_v31 = vld [vmem:[%s10386_s8 + $0x2b0] sm:$0xff]  ;;  %v4147_v10 = vld [vmem:[%s10386_s8 + $0xa8] sm:$0xff]  ;;  %v4209_v34 = vld [vmem:[%s10386_s8 + $0x298] sm:$0xff] }
 0x48b   : > { %v3444_v17 = vpop.f32.mrf.mxu0  ;;  %v3515_v38 = vpop.f32.mrf.mxu1  ;;  %v4144_v44 = vld [vmem:[%s10386_s8 + $0x90] sm:$0xff] }
 0x48c   : > { %v3519_v52 = vadd.f32 %v3444_v17, %v3243_v43  ;;  %v3521_v53 = vadd.f32 %v3515_v38, %v3245_v36  ;;  %v4143_v17 = vld [vmem:[%s10386_s8 + $0x88] sm:$0xff]  ;;  %v4142_v43 = vld [vmem:[%s10386_s8 + $0x80] sm:$0xff] }
 0x48d   : > { %v4207_v38 = vld [vmem:[%s10386_s8 + $0x288] sm:$0xff]  ;;  %v4206_v36 = vld [vmem:[%s10386_s8 + $0x280] sm:$0xff] }
 0x4c7   : > { %v3718_v42 = vpop.f32.mrf.mxu0  ;;  %v3789_v20 = vpop.f32.mrf.mxu1 }
 0x4c8   : > { %v3794_v0 = vadd.f32 %v3718_v42, %v3518_v37  ;;  %v3796_v1 = vadd.f32 %v3789_v20, %v3520_v41  ;;  %v4141_v37 = vld [vmem:[%s10386_s8 + $0x78] sm:$0xff]  ;;  %v4140_v42 = vld [vmem:[%s10386_s8 + $0x70] sm:$0xff]  ;;  %v4138_v20 = vld [vmem:[%s10386_s8 + $0x60] sm:$0xff] }
 0x4c9   : > { %v3720_v39 = vpop.f32.mrf.mxu0  ;;  %v3791_v54 = vpop.f32.mrf.mxu1  ;;  %v4205_v41 = vld [vmem:[%s10386_s8 + $0x278] sm:$0xff] }
 0x4ca   : > { %v3795_v55 = vadd.f32 %v3720_v39, %v3519_v52  ;;  %v3797_v2 = vadd.f32 %v3791_v54, %v3521_v53  ;;  %v3820_v3 = vadd.f32 %v3803_v19, %v3794_v0  ;;  %v3822_v50 = vadd.f32 %v3811_v48, %v3796_v1  ;;  %v4203_v19 = vld [vmem:[%s10386_s8 + $0x268] sm:$0xff]  ;;  %v4137_v48 = vld [vmem:[%s10386_s8 + $0x58] sm:$0xff]  ;;  %v4134_v53 = vld [vmem:[%s10386_s8 + $0x40] sm:$0xff] }
 0x4cb   : > { %v4199_v52 = vld [vmem:[%s10386_s8 + $0x248] sm:$0xff]  ;;  %v4198_v0 = vld [vmem:[%s10386_s8 + $0x240] sm:$0xff]  ;;  %v4133_v1 = vld [vmem:[%s10386_s8 + $0x38] sm:$0xff] }
 0x4cc   : > { %v3821_v21 = vadd.f32 %v3807_v25, %v3795_v55  ;;  %v3823_v56 = vadd.f32 %v3815_v63, %v3797_v2  ;;  %v3824_v59 = vmax.f32 %v3820_v3, 0.0  ;;  %v3826_v5 = vmax.f32 %v3822_v50, 0.0  ;;  %v4136_v25 = vld [vmem:[%s10386_s8 + $0x50] sm:$0xff]  ;;  %v4135_v63 = vld [vmem:[%s10386_s8 + $0x48] sm:$0xff]  ;;  %v4197_v39 = vld [vmem:[%s10386_s8 + $0x238] sm:$0xff] }
 0x4cd   : > { %v4132_v54 = vld [vmem:[%s10386_s8 + $0x30] sm:$0xff]  ;;  %v4131_v2 = vld [vmem:[%s10386_s8 + $0x28] sm:$0xff]  ;;  %v4130_v50 = vld [vmem:[%s10386_s8 + $0x20] sm:$0xff] }
 0x4ce   : > { %v3825_v57 = vmax.f32 %v3821_v21, 0.0  ;;  %v3827_v58 = vmax.f32 %v3823_v56, 0.0  ;;  %v4196_v55 = vld [vmem:[%s10386_s8 + $0x230] sm:$0xff]  ;;  %v4195_v3 = vld [vmem:[%s10386_s8 + $0x228] sm:$0xff]  ;;  %v4129_v21 = vld [vmem:[%s10386_s8 + $0x18] sm:$0xff] }
 0x4cf   : > { %v4128_v56 = vld [vmem:[%s10386_s8 + $0x10] sm:$0xff] }
 0x4d0   : > { %3863 = vmatprep.subr.mxu0 %v3825_v57  ;;  %3934 = vmatprep.subr.mxu1 %v3827_v58 }
 0x4d1   : > { %3864 = vmatpush1.msra.mxu0 %v3824_v59  ;;  %3935 = vmatpush1.msra.mxu1 %v3826_v5 }
 0x4d2   : > { %5840 = vmatmul.mubr.msk.f32.vlgmr.msra.gmra.mxu0 %vm3829_vm0, %v3828_v6  ;;  %5841 = vmatmul.mubr.msk.f32.vlgmr.msra.gmra.mxu1 %vm3829_vm0, %v3828_v6  ;;  %v4187_v6 = vld [vmem:[%s10386_s8 + $0x1e8] sm:$0xff] }
 0x4d3   : > { %4010 = vmatprep.subr.mxu0 %v3825_v57  ;;  %4081 = vmatprep.subr.mxu1 %v3827_v58  ;;  %v4127_v57 = vld [vmem:[%s10386_s8 + $0x8] sm:$0xff]  ;;  %v4126_v58 = vld [vmem:[%s10386_s8] sm:$0xff] }
 0x4d4   : > { %4011 = vmatpush1.msra.mxu0 %v3824_v59  ;;  %4082 = vmatpush1.msra.mxu1 %v3826_v5  ;;  %v4189_v59 = vld [vmem:[%s10386_s8 + $0x1f8] sm:$0xff]  ;;  %v4188_v5 = vld [vmem:[%s10386_s8 + $0x1f0] sm:$0xff] }
 0x4d5   : > { %4044 = vmatprep.mubr.f32.mxu0 %v10410_v12  ;;  %4115 = vmatprep.mubr.f32.mxu1 %v10410_v12 }
 0x4d6   : > { %5843 = vmatmul.mubr.msk.f32.vlgmr.msra.gmra.mxu0 %vm3829_vm0, %v5842_v11  ;;  %5844 = vmatmul.mubr.msk.f32.vlgmr.msra.gmra.mxu1 %vm3829_vm0, %v5842_v11  ;;  %v4186_v11 = vld [vmem:[%s10386_s8 + $0x1e0] sm:$0xff] }
 0x4d7   : > { %4230 = vmatprep.subr.mxu0 %v4157_v60  ;;  %4301 = vmatprep.subr.mxu1 %v4221_v8  ;;  %v4185_v60 = vld [vmem:[%s10386_s8 + $0x1d8] sm:$0xff]  ;;  %v4184_v8 = vld [vmem:[%s10386_s8 + $0x1d0] sm:$0xff] }
 0x4d8   : > { %4231 = vmatpush1.msra.mxu0 %v4156_v61  ;;  %4302 = vmatpush1.msra.mxu1 %v4220_v9  ;;  %v4183_v61 = vld [vmem:[%s10386_s8 + $0x1c8] sm:$0xff]  ;;  %v4182_v9 = vld [vmem:[%s10386_s8 + $0x1c0] sm:$0xff] }
 0x4d9   : > { %4232 = vmatprep.subr.mxu0 %v4155_v13  ;;  %4303 = vmatprep.subr.mxu1 %v4219_v14  ;;  %v4181_v13 = vld [vmem:[%s10386_s8 + $0x1b8] sm:$0xff]  ;;  %v4180_v14 = vld [vmem:[%s10386_s8 + $0x1b0] sm:$0xff] }
 0x4da   : > { %4233 = vmatpush1.msra.mxu0 %v4154_v27  ;;  %4304 = vmatpush1.msra.mxu1 %v4218_v15  ;;  %v4179_v27 = vld [vmem:[%s10386_s8 + $0x1a8] sm:$0xff]  ;;  %v4178_v15 = vld [vmem:[%s10386_s8 + $0x1a0] sm:$0xff] }
 0x4db   : > { %4234 = vmatprep.subr.mxu0 %v4153_v28  ;;  %4305 = vmatprep.subr.mxu1 %v4217_v29  ;;  %v4177_v28 = vld [vmem:[%s10386_s8 + $0x198] sm:$0xff]  ;;  %v4176_v29 = vld [vmem:[%s10386_s8 + $0x190] sm:$0xff] }
 0x4dc   : > { %4235 = vmatpush1.msra.mxu0 %v4152_v30  ;;  %4306 = vmatpush1.msra.mxu1 %v4216_v4  ;;  %v4175_v30 = vld [vmem:[%s10386_s8 + $0x188] sm:$0xff]  ;;  %v4174_v4 = vld [vmem:[%s10386_s8 + $0x180] sm:$0xff] }
 0x4dd   : > { %4236 = vmatprep.subr.mxu0 %v4151_v16  ;;  %4307 = vmatprep.subr.mxu1 %v4215_v18  ;;  %v4173_v16 = vld [vmem:[%s10386_s8 + $0x178] sm:$0xff]  ;;  %v4172_v18 = vld [vmem:[%s10386_s8 + $0x170] sm:$0xff] }
 0x4de   : > { %4237 = vmatpush1.msra.mxu0 %v4150_v51  ;;  %4308 = vmatpush1.msra.mxu1 %v4214_v23  ;;  %v4171_v51 = vld [vmem:[%s10386_s8 + $0x168] sm:$0xff]  ;;  %v4170_v23 = vld [vmem:[%s10386_s8 + $0x160] sm:$0xff] }
 0x4df   : > { %4238 = vmatprep.subr.mxu0 %v4149_v24  ;;  %4309 = vmatprep.subr.mxu1 %v4213_v7  ;;  %v4169_v24 = vld [vmem:[%s10386_s8 + $0x158] sm:$0xff]  ;;  %v4168_v7 = vld [vmem:[%s10386_s8 + $0x150] sm:$0xff] }
 0x4e0   : > { %4239 = vmatpush1.msra.mxu0 %v4148_v26  ;;  %4310 = vmatpush1.msra.mxu1 %v4212_v31  ;;  %v4167_v26 = vld [vmem:[%s10386_s8 + $0x148] sm:$0xff]  ;;  %v4166_v31 = vld [vmem:[%s10386_s8 + $0x140] sm:$0xff] }
 0x4e1   : > { %4240 = vmatprep.subr.mxu0 %v4147_v10  ;;  %4311 = vmatprep.subr.mxu1 %v4211_v32  ;;  %v4194_v10 = vld [vmem:[%s10386_s8 + $0x220] sm:$0xff]  ;;  %v4165_v32 = vld [vmem:[%s10386_s8 + $0x138] sm:$0xff] }
 0x4e2   : > { %4241 = vmatpush1.msra.mxu0 %v4146_v33  ;;  %4312 = vmatpush1.msra.mxu1 %v4210_v22  ;;  %v4193_v33 = vld [vmem:[%s10386_s8 + $0x218] sm:$0xff]  ;;  %v4164_v22 = vld [vmem:[%s10386_s8 + $0x130] sm:$0xff] }
 0x4e3   : > { %4242 = vmatprep.subr.mxu0 %v4145_v40  ;;  %4313 = vmatprep.subr.mxu1 %v4209_v34  ;;  %v4192_v40 = vld [vmem:[%s10386_s8 + $0x210] sm:$0xff]  ;;  %v4163_v34 = vld [vmem:[%s10386_s8 + $0x128] sm:$0xff] }
 0x4e4   : > { %4243 = vmatpush1.msra.mxu0 %v4144_v44  ;;  %4314 = vmatpush1.msra.mxu1 %v4208_v35  ;;  %v4191_v44 = vld [vmem:[%s10386_s8 + $0x208] sm:$0xff]  ;;  %v4162_v35 = vld [vmem:[%s10386_s8 + $0x120] sm:$0xff] }
 0x4e5   : > { %4244 = vmatprep.subr.mxu0 %v4143_v17  ;;  %4315 = vmatprep.subr.mxu1 %v4207_v38  ;;  %v4190_v17 = vld [vmem:[%s10386_s8 + $0x200] sm:$0xff]  ;;  %v4161_v38 = vld [vmem:[%s10386_s8 + $0x118] sm:$0xff] }
 0x4e6   : > { %4245 = vmatpush1.msra.mxu0 %v4142_v43  ;;  %4316 = vmatpush1.msra.mxu1 %v4206_v36  ;;  %v4225_v43 = vld [vmem:[%s10386_s8 + $0x318] sm:$0xff]  ;;  %v4160_v36 = vld [vmem:[%s10386_s8 + $0x110] sm:$0xff] }
 0x4e7   : > { %4246 = vmatprep.subr.mxu0 %v4141_v37  ;;  %4317 = vmatprep.subr.mxu1 %v4205_v41  ;;  %v4224_v37 = vld [vmem:[%s10386_s8 + $0x310] sm:$0xff]  ;;  %v4159_v41 = vld [vmem:[%s10386_s8 + $0x108] sm:$0xff] }
 0x4e8   : > { %4247 = vmatpush1.msra.mxu0 %v4140_v42  ;;  %4318 = vmatpush1.msra.mxu1 %v4204_v45  ;;  %v4223_v42 = vld [vmem:[%s10386_s8 + $0x308] sm:$0xff]  ;;  %v4158_v45 = vld [vmem:[%s10386_s8 + $0x100] sm:$0xff] }
 0x4e9   : > { %4248 = vmatprep.subr.mxu0 %v4139_v46  ;;  %4319 = vmatprep.subr.mxu1 %v4203_v19  ;;  %v4222_v46 = vld [vmem:[%s10386_s8 + $0x300] sm:$0xff]  ;;  %v5877_v19 = vld [vmem:[%s10386_s8 + $0x418] sm:$0xff] }
 0x4ea   : > { %4249 = vmatpush1.msra.mxu0 %v4138_v20  ;;  %4320 = vmatpush1.msra.mxu1 %v4202_v47  ;;  %v5941_v20 = vld [vmem:[%s10386_s8 + $0x618] sm:$0xff] }
 0x4eb   : > { %4250 = vmatprep.subr.mxu0 %v4137_v48  ;;  %4321 = vmatprep.subr.mxu1 %v4201_v49 }
 0x4ec   : > { %4251 = vmatpush1.msra.mxu0 %v4136_v25  ;;  %4322 = vmatpush1.msra.mxu1 %v4200_v62 }
 0x4ed   : > { %4252 = vmatprep.subr.mxu0 %v4135_v63  ;;  %4323 = vmatprep.subr.mxu1 %v4199_v52 }
 0x4ee   : > { %4253 = vmatpush1.msra.mxu0 %v4134_v53  ;;  %4324 = vmatpush1.msra.mxu1 %v4198_v0 }
 0x4ef   : > { %4254 = vmatprep.subr.mxu0 %v4133_v1  ;;  %4325 = vmatprep.subr.mxu1 %v4197_v39 }
 0x4f0   : > { %4255 = vmatpush1.msra.mxu0 %v4132_v54  ;;  %4326 = vmatpush1.msra.mxu1 %v4196_v55  ;;  %v5876_v55 = vld [vmem:[%s10386_s8 + $0x410] sm:$0xff] }
 0x4f1   : > { %4256 = vmatprep.subr.mxu0 %v4131_v2  ;;  %4327 = vmatprep.subr.mxu1 %v4195_v3  ;;  %v5940_v2 = vld [vmem:[%s10386_s8 + $0x610] sm:$0xff]  ;;  %v5875_v3 = vld [vmem:[%s10386_s8 + $0x408] sm:$0xff] }
 0x4f2   : > { %4257 = vmatpush1.msra.mxu0 %v4130_v50  ;;  %4328 = vmatpush1.msra.mxu1 %v4194_v10  ;;  %v5939_v50 = vld [vmem:[%s10386_s8 + $0x608] sm:$0xff]  ;;  %v5860_v10 = vld [vmem:[%s10386_s8 + $0x390] sm:$0xff] }
 0x4f3   : > { %4258 = vmatprep.subr.mxu0 %v4129_v21  ;;  %4329 = vmatprep.subr.mxu1 %v4193_v33  ;;  %v5874_v21 = vld [vmem:[%s10386_s8 + $0x400] sm:$0xff]  ;;  %v5859_v33 = vld [vmem:[%s10386_s8 + $0x388] sm:$0xff] }
 0x4f4   : > { %4259 = vmatpush1.msra.mxu0 %v4128_v56  ;;  %4330 = vmatpush1.msra.mxu1 %v4192_v40  ;;  %v5938_v56 = vld [vmem:[%s10386_s8 + $0x600] sm:$0xff] }
 0x4f5   : > { %4260 = vmatprep.subr.mxu0 %v4127_v57  ;;  %4331 = vmatprep.subr.mxu1 %v4191_v44  ;;  %v5873_v57 = vld [vmem:[%s10386_s8 + $0x3f8] sm:$0xff]  ;;  %v5858_v40 = vld [vmem:[%s10386_s8 + $0x380] sm:$0xff] }
 0x4f6   : > { %4261 = vmatpush1.msra.mxu0 %v4126_v58  ;;  %4332 = vmatpush1.msra.mxu1 %v4190_v17  ;;  %v5937_v58 = vld [vmem:[%s10386_s8 + $0x5f8] sm:$0xff]  ;;  %v5856_v17 = vld [vmem:[%s10386_s8 + $0x370] sm:$0xff] }
 0x4f7   : > { %4262 = vmatprep.subr.mxu0 %v4189_v59  ;;  %4361 = vmatprep.subr.mxu1 %v4225_v43  ;;  %v5872_v59 = vld [vmem:[%s10386_s8 + $0x3f0] sm:$0xff]  ;;  %v5857_v44 = vld [vmem:[%s10386_s8 + $0x378] sm:$0xff]  ;;  %v5855_v43 = vld [vmem:[%s10386_s8 + $0x368] sm:$0xff] }
 0x4f8   : > { %4263 = vmatpush2.msra.mxu0 %v4188_v5  ;;  %4362 = vmatpush2.msra.mxu1 %v4224_v37  ;;  %v5936_v5 = vld [vmem:[%s10386_s8 + $0x5f0] sm:$0xff]  ;;  %v5854_v37 = vld [vmem:[%s10386_s8 + $0x360] sm:$0xff] }
 0x4f9   : > { %4264 = vmatprep.subr.mxu0 %v4187_v6  ;;  %4363 = vmatprep.subr.mxu1 %v4223_v42  ;;  %v5871_v6 = vld [vmem:[%s10386_s8 + $0x3e8] sm:$0xff]  ;;  %v5853_v42 = vld [vmem:[%s10386_s8 + $0x358] sm:$0xff] }
 0x4fa   : > { %4265 = vmatpush2.msra.mxu0 %v4186_v11  ;;  %4364 = vmatpush2.msra.mxu1 %v4222_v46  ;;  %v5935_v11 = vld [vmem:[%s10386_s8 + $0x5e8] sm:$0xff]  ;;  %v5852_v46 = vld [vmem:[%s10386_s8 + $0x350] sm:$0xff] }
 0x4fb   : > { %4266 = vmatprep.subr.mxu0 %v4185_v60  ;;  %4473 = vmatprep.subr.mxu1 %v5877_v19  ;;  %v5870_v60 = vld [vmem:[%s10386_s8 + $0x3e0] sm:$0xff]  ;;  %v5916_v19 = vld [vmem:[%s10386_s8 + $0x550] sm:$0xff] }
 0x4fc   : > { %4267 = vmatpush2.msra.mxu0 %v4184_v8  ;;  %v5934_v8 = vld [vmem:[%s10386_s8 + $0x5e0] sm:$0xff] }
 0x4fd   : > { %4268 = vmatprep.subr.mxu0 %v4183_v61  ;;  %v5869_v61 = vld [vmem:[%s10386_s8 + $0x3d8] sm:$0xff] }
 0x4fe   : > { %4269 = vmatpush2.msra.mxu0 %v4182_v9  ;;  %v5933_v9 = vld [vmem:[%s10386_s8 + $0x5d8] sm:$0xff] }
 0x4ff   : > { %4270 = vmatprep.subr.mxu0 %v4181_v13  ;;  %v5868_v13 = vld [vmem:[%s10386_s8 + $0x3d0] sm:$0xff] }
 0x500   : > { %4271 = vmatpush2.msra.mxu0 %v4180_v14  ;;  %v5932_v14 = vld [vmem:[%s10386_s8 + $0x5d0] sm:$0xff] }
 0x501   : > { %4272 = vmatprep.subr.mxu0 %v4179_v27  ;;  %v5867_v27 = vld [vmem:[%s10386_s8 + $0x3c8] sm:$0xff] }
 0x502   : > { %4273 = vmatpush2.msra.mxu0 %v4178_v15  ;;  %v5931_v15 = vld [vmem:[%s10386_s8 + $0x5c8] sm:$0xff] }
 0x503   : > { %4274 = vmatprep.subr.mxu0 %v4177_v28  ;;  %v5866_v28 = vld [vmem:[%s10386_s8 + $0x3c0] sm:$0xff] }
 0x504   : > { %4275 = vmatpush2.msra.mxu0 %v4176_v29  ;;  %v5930_v29 = vld [vmem:[%s10386_s8 + $0x5c0] sm:$0xff] }
 0x505   : > { %4276 = vmatprep.subr.mxu0 %v4175_v30  ;;  %v5865_v30 = vld [vmem:[%s10386_s8 + $0x3b8] sm:$0xff] }
 0x506   : > { %4277 = vmatpush2.msra.mxu0 %v4174_v4  ;;  %v5929_v4 = vld [vmem:[%s10386_s8 + $0x5b8] sm:$0xff] }
 0x507   : > { %4278 = vmatprep.subr.mxu0 %v4173_v16  ;;  %v5864_v16 = vld [vmem:[%s10386_s8 + $0x3b0] sm:$0xff] }
 0x508   : > { %4279 = vmatpush2.msra.mxu0 %v4172_v18  ;;  %v5928_v18 = vld [vmem:[%s10386_s8 + $0x5b0] sm:$0xff] }
 0x509   : > { %4280 = vmatprep.subr.mxu0 %v4171_v51  ;;  %v5863_v51 = vld [vmem:[%s10386_s8 + $0x3a8] sm:$0xff] }
 0x50a   : > { %4281 = vmatpush2.msra.mxu0 %v4170_v23  ;;  %v5927_v23 = vld [vmem:[%s10386_s8 + $0x5a8] sm:$0xff] }
 0x50b   : > { %4282 = vmatprep.subr.mxu0 %v4169_v24  ;;  %v5862_v24 = vld [vmem:[%s10386_s8 + $0x3a0] sm:$0xff] }
 0x50c   : > { %4283 = vmatpush2.msra.mxu0 %v4168_v7  ;;  %v5926_v7 = vld [vmem:[%s10386_s8 + $0x5a0] sm:$0xff] }
 0x50d   : > { %4284 = vmatprep.subr.mxu0 %v4167_v26  ;;  %v5861_v26 = vld [vmem:[%s10386_s8 + $0x398] sm:$0xff] }
 0x50e   : > { %4285 = vmatpush2.msra.mxu0 %v4166_v31  ;;  %v5925_v31 = vld [vmem:[%s10386_s8 + $0x598] sm:$0xff] }
 0x50f   : > { %4286 = vmatprep.subr.mxu0 %v4165_v32  ;;  %v5924_v32 = vld [vmem:[%s10386_s8 + $0x590] sm:$0xff] }
 0x510   : > { %4287 = vmatpush2.msra.mxu0 %v4164_v22  ;;  %v5923_v22 = vld [vmem:[%s10386_s8 + $0x588] sm:$0xff] }
 0x511   : > { %4288 = vmatprep.subr.mxu0 %v4163_v34  ;;  %v5922_v34 = vld [vmem:[%s10386_s8 + $0x580] sm:$0xff] }
 0x512   : > { %4289 = vmatpush2.msra.mxu0 %v4162_v35  ;;  %v5921_v35 = vld [vmem:[%s10386_s8 + $0x578] sm:$0xff] }
 0x513   : > { %4290 = vmatprep.subr.mxu0 %v4161_v38  ;;  %v5920_v38 = vld [vmem:[%s10386_s8 + $0x570] sm:$0xff] }
 0x514   : > { %4291 = vmatpush2.msra.mxu0 %v4160_v36  ;;  %v5919_v36 = vld [vmem:[%s10386_s8 + $0x568] sm:$0xff] }
 0x515   : > { %4292 = vmatprep.subr.mxu0 %v4159_v41  ;;  %v5918_v41 = vld [vmem:[%s10386_s8 + $0x560] sm:$0xff] }
 0x516   : > { %4293 = vmatpush2.msra.mxu0 %v4158_v45  ;;  %v5917_v45 = vld [vmem:[%s10386_s8 + $0x558] sm:$0xff] }
 0x517   : > { %4544 = vmatprep.subr.mxu0 %v5941_v20  ;;  %v5851_v20 = vld [vmem:[%s10386_s8 + $0x348] sm:$0xff] }
 0x592   : > { %v3899_v47 = vpop.f32.mrf.mxu0  ;;  %v3970_v48 = vpop.f32.mrf.mxu1 }
 0x594   : > { %v3901_v49 = vpop.f32.mrf.mxu0  ;;  %v3972_v25 = vpop.f32.mrf.mxu1 }
 0x596   : > { %v4046_v62 = vpop.f32.mrf.mxu0  ;;  %v4117_v63 = vpop.f32.mrf.mxu1 }
 0x597   : > { %v9617_v52 = vmax.f32 %v3899_v47, %v4046_v62  ;;  %v9621_v54 = vmax.f32 %v3970_v48, %v4117_v63  ;;  %v5915_v47 = vld [vmem:[%s10386_s8 + $0x548] sm:$0xff]  ;;  %v5850_v48 = vld [vmem:[%s10386_s8 + $0x340] sm:$0xff]  ;;  %v5913_v62 = vld [vmem:[%s10386_s8 + $0x538] sm:$0xff] }
 0x598   : > { %v4048_v53 = vpop.f32.mrf.mxu0  ;;  %v4119_v0 = vpop.f32.mrf.mxu1  ;;  %v5848_v63 = vld [vmem:[%s10386_s8 + $0x330] sm:$0xff] }
 0x599   : > { %v9619_v1 = vmax.f32 %v3901_v49, %v4048_v53  ;;  %v4125_v39 = vmax.f32 %v3972_v25, %v4119_v0  ;;  %v5914_v49 = vld [vmem:[%s10386_s8 + $0x540] sm:$0xff]  ;;  %v5849_v25 = vld [vmem:[%s10386_s8 + $0x338] sm:$0xff]  ;;  %v5912_v53 = vld [vmem:[%s10386_s8 + $0x530] sm:$0xff] }
 0x59a   : > { %v5847_v0 = vld [vmem:[%s10386_s8 + $0x328] sm:$0xff] }
 0x59b   : > { %4294 = vmatprep.mubr.f32.mxu0 %v9619_v1  ;;  %5845 = vmatprep.mubr.msk.f32.mxu1 %vm4226_vm1, %v4125_v39 }
 0x59c   : > { %4295 = vmatmul.mubr.f32.vlgmr.msra.gmra.mxu0 %v9617_v52  ;;  %4366 = vmatmul.mubr.f32.vlgmr.msra.gmra.mxu1 %v9621_v54 }
 0x59d   : > { %4474 = vmatpush1.msra.mxu1 %v5876_v55  ;;  %4545 = vmatpush1.msra.mxu0 %v5940_v2  ;;  %v5846_v55 = vld [vmem:[%s10386_s8 + $0x320] sm:$0xff] }
 0x59e   : > { %4475 = vmatprep.subr.mxu1 %v5875_v3  ;;  %4546 = vmatprep.subr.mxu0 %v5939_v50  ;;  %v5910_v2 = vld [vmem:[%s10386_s8 + $0x520] sm:$0xff]  ;;  %v5909_v3 = vld [vmem:[%s10386_s8 + $0x518] sm:$0xff] }
 0x59f   : > { %5946 = vmatprep.mubr.msk.f32.mxu0 %vm4226_vm1, %v4125_v39  ;;  %4476 = vmatpush1.msra.mxu1 %v5874_v21  ;;  %v5911_v39 = vld [vmem:[%s10386_s8 + $0x528] sm:$0xff]  ;;  %v5945_v50 = vld [vmem:[%s10386_s8 + $0x638] sm:$0xff]  ;;  %v5908_v21 = vld [vmem:[%s10386_s8 + $0x510] sm:$0xff] }
 0x5a0   : > { %4547 = vmatpush1.msra.mxu0 %v5938_v56  ;;  %4477 = vmatprep.subr.mxu1 %v5873_v57  ;;  %v5944_v56 = vld [vmem:[%s10386_s8 + $0x630] sm:$0xff]  ;;  %v5943_v57 = vld [vmem:[%s10386_s8 + $0x628] sm:$0xff] }
 0x5a1   : > { %4548 = vmatprep.subr.mxu0 %v5937_v58  ;;  %4478 = vmatpush1.msra.mxu1 %v5872_v59  ;;  %v5906_v58 = vld [vmem:[%s10386_s8 + $0x500] sm:$0xff] }
 0x5a2   : > { %4549 = vmatpush1.msra.mxu0 %v5936_v5  ;;  %4479 = vmatprep.subr.mxu1 %v5871_v6  ;;  %v5942_v59 = vld [vmem:[%s10386_s8 + $0x620] sm:$0xff]  ;;  %v5905_v5 = vld [vmem:[%s10386_s8 + $0x4f8] sm:$0xff]  ;;  %v5904_v6 = vld [vmem:[%s10386_s8 + $0x4f0] sm:$0xff] }
 0x5a3   : > { %4550 = vmatprep.subr.mxu0 %v5935_v11  ;;  %4480 = vmatpush1.msra.mxu1 %v5870_v60  ;;  %v5903_v11 = vld [vmem:[%s10386_s8 + $0x4e8] sm:$0xff]  ;;  %v5902_v60 = vld [vmem:[%s10386_s8 + $0x4e0] sm:$0xff] }
 0x5a4   : > { %4551 = vmatpush1.msra.mxu0 %v5934_v8  ;;  %4481 = vmatprep.subr.mxu1 %v5869_v61  ;;  %v5901_v8 = vld [vmem:[%s10386_s8 + $0x4d8] sm:$0xff]  ;;  %v5900_v61 = vld [vmem:[%s10386_s8 + $0x4d0] sm:$0xff] }
 0x5a5   : > { %4552 = vmatprep.subr.mxu0 %v5933_v9  ;;  %4482 = vmatpush1.msra.mxu1 %v5868_v13  ;;  %v5898_v9 = vld [vmem:[%s10386_s8 + $0x4c0] sm:$0xff]  ;;  %v5897_v13 = vld [vmem:[%s10386_s8 + $0x4b8] sm:$0xff] }
 0x5a6   : > { %4553 = vmatpush1.msra.mxu0 %v5932_v14  ;;  %4483 = vmatprep.subr.mxu1 %v5867_v27  ;;  %v5896_v14 = vld [vmem:[%s10386_s8 + $0x4b0] sm:$0xff]  ;;  %v5895_v27 = vld [vmem:[%s10386_s8 + $0x4a8] sm:$0xff] }
 0x5a7   : > { %4554 = vmatprep.subr.mxu0 %v5931_v15  ;;  %4484 = vmatpush1.msra.mxu1 %v5866_v28  ;;  %v5894_v15 = vld [vmem:[%s10386_s8 + $0x4a0] sm:$0xff]  ;;  %v5893_v28 = vld [vmem:[%s10386_s8 + $0x498] sm:$0xff] }
 0x5a8   : > { %4555 = vmatpush1.msra.mxu0 %v5930_v29  ;;  %4485 = vmatprep.subr.mxu1 %v5865_v30  ;;  %v5892_v29 = vld [vmem:[%s10386_s8 + $0x490] sm:$0xff]  ;;  %v5891_v30 = vld [vmem:[%s10386_s8 + $0x488] sm:$0xff] }
 0x5a9   : > { %4556 = vmatprep.subr.mxu0 %v5929_v4  ;;  %4486 = vmatpush1.msra.mxu1 %v5864_v16  ;;  %v5890_v4 = vld [vmem:[%s10386_s8 + $0x480] sm:$0xff]  ;;  %v5889_v16 = vld [vmem:[%s10386_s8 + $0x478] sm:$0xff] }
 0x5aa   : > { %4557 = vmatpush1.msra.mxu0 %v5928_v18  ;;  %4487 = vmatprep.subr.mxu1 %v5863_v51  ;;  %v5888_v18 = vld [vmem:[%s10386_s8 + $0x470] sm:$0xff]  ;;  %v5887_v51 = vld [vmem:[%s10386_s8 + $0x468] sm:$0xff] }
 0x5ab   : > { %4558 = vmatprep.subr.mxu0 %v5927_v23  ;;  %4488 = vmatpush1.msra.mxu1 %v5862_v24  ;;  %v5886_v23 = vld [vmem:[%s10386_s8 + $0x460] sm:$0xff]  ;;  %v5885_v24 = vld [vmem:[%s10386_s8 + $0x458] sm:$0xff] }
 0x5ac   : > { %4559 = vmatpush1.msra.mxu0 %v5926_v7  ;;  %4489 = vmatprep.subr.mxu1 %v5861_v26  ;;  %v5884_v7 = vld [vmem:[%s10386_s8 + $0x450] sm:$0xff]  ;;  %v5883_v26 = vld [vmem:[%s10386_s8 + $0x448] sm:$0xff] }
 0x5ad   : > { %4560 = vmatprep.subr.mxu0 %v5925_v31  ;;  %4490 = vmatpush1.msra.mxu1 %v5860_v10  ;;  %v5882_v31 = vld [vmem:[%s10386_s8 + $0x440] sm:$0xff]  ;;  %v5881_v10 = vld [vmem:[%s10386_s8 + $0x438] sm:$0xff] }
 0x5ae   : > { %4561 = vmatpush1.msra.mxu0 %v5924_v32  ;;  %4491 = vmatprep.subr.mxu1 %v5859_v33  ;;  %v5880_v32 = vld [vmem:[%s10386_s8 + $0x430] sm:$0xff]  ;;  %v5879_v33 = vld [vmem:[%s10386_s8 + $0x428] sm:$0xff] }
 0x5af   : > { %4562 = vmatprep.subr.mxu0 %v5923_v22  ;;  %4492 = vmatpush1.msra.mxu1 %v5858_v40  ;;  %v5878_v22 = vld [vmem:[%s10386_s8 + $0x420] sm:$0xff]  ;;  %v4632_v40 = vld [vmem:[%s10387_s9 + $0x78] sm:$0xff] }
 0x5b0   : > { %4563 = vmatpush1.msra.mxu0 %v5922_v34  ;;  %4493 = vmatprep.subr.mxu1 %v5857_v44  ;;  %v5962_v34 = vld [vmem:[%s10387_s9 + $0x140] sm:$0xff]  ;;  %v4631_v44 = vld [vmem:[%s10387_s9 + $0x70] sm:$0xff] }
 0x5b1   : > { %4564 = vmatprep.subr.mxu0 %v5921_v35  ;;  %4494 = vmatpush1.msra.mxu1 %v5856_v17  ;;  %v4630_v35 = vld [vmem:[%s10387_s9 + $0x68] sm:$0xff]  ;;  %v5960_v17 = vld [vmem:[%s10387_s9 + $0x130] sm:$0xff] }
 0x5b2   : > { %4565 = vmatpush1.msra.mxu0 %v5920_v38  ;;  %4495 = vmatprep.subr.mxu1 %v5855_v43  ;;  %v4629_v38 = vld [vmem:[%s10387_s9 + $0x60] sm:$0xff]  ;;  %v5959_v43 = vld [vmem:[%s10387_s9 + $0x128] sm:$0xff] }
 0x5b3   : > { %4566 = vmatprep.subr.mxu0 %v5919_v36  ;;  %4496 = vmatpush1.msra.mxu1 %v5854_v37  ;;  %v4628_v36 = vld [vmem:[%s10387_s9 + $0x58] sm:$0xff]  ;;  %v5958_v37 = vld [vmem:[%s10387_s9 + $0x120] sm:$0xff] }
 0x5b4   : > { %4567 = vmatpush1.msra.mxu0 %v5918_v41  ;;  %4497 = vmatprep.subr.mxu1 %v5853_v42  ;;  %v4627_v41 = vld [vmem:[%s10387_s9 + $0x50] sm:$0xff]  ;;  %v5957_v42 = vld [vmem:[%s10387_s9 + $0x118] sm:$0xff] }
 0x5b5   : > { %4568 = vmatprep.subr.mxu0 %v5917_v45  ;;  %4498 = vmatpush1.msra.mxu1 %v5852_v46  ;;  %v4626_v45 = vld [vmem:[%s10387_s9 + $0x48] sm:$0xff]  ;;  %v5956_v46 = vld [vmem:[%s10387_s9 + $0x110] sm:$0xff] }
 0x5b6   : > { %4569 = vmatpush1.msra.mxu0 %v5916_v19  ;;  %4499 = vmatprep.subr.mxu1 %v5851_v20  ;;  %v4625_v19 = vld [vmem:[%s10387_s9 + $0x40] sm:$0xff]  ;;  %v5955_v20 = vld [vmem:[%s10387_s9 + $0x108] sm:$0xff] }
 0x5b7   : > { %4570 = vmatprep.subr.mxu0 %v5915_v47  ;;  %4500 = vmatpush1.msra.mxu1 %v5850_v48  ;;  %v4624_v47 = vld [vmem:[%s10387_s9 + $0x38] sm:$0xff]  ;;  %v5954_v48 = vld [vmem:[%s10387_s9 + $0x100] sm:$0xff] }
 0x5b8   : > { %4571 = vmatpush1.msra.mxu0 %v5914_v49  ;;  %4501 = vmatprep.subr.mxu1 %v5849_v25  ;;  %v4623_v49 = vld [vmem:[%s10387_s9 + $0x30] sm:$0xff]  ;;  %v5953_v25 = vld [vmem:[%s10387_s9 + $0xf8] sm:$0xff] }
 0x5b9   : > { %4572 = vmatprep.subr.mxu0 %v5913_v62  ;;  %4502 = vmatpush1.msra.mxu1 %v5848_v63  ;;  %v4622_v62 = vld [vmem:[%s10387_s9 + $0x28] sm:$0xff]  ;;  %v5952_v63 = vld [vmem:[%s10387_s9 + $0xf0] sm:$0xff] }
 0x5ba   : > { %4537 = vmatprep.mubr.f32.mxu1 %v9619_v1  ;;  %4573 = vmatpush1.msra.mxu0 %v5912_v53  ;;  %v5907_v1 = vld [vmem:[%s10386_s8 + $0x508] sm:$0xff]  ;;  %v4621_v53 = vld [vmem:[%s10387_s9 + $0x20] sm:$0xff] }
 0x5bb   : > { %4503 = vmatprep.subr.mxu1 %v5847_v0  ;;  %4574 = vmatprep.subr.mxu0 %v5911_v39  ;;  %v5951_v0 = vld [vmem:[%s10387_s9 + $0xe8] sm:$0xff]  ;;  %v4620_v39 = vld [vmem:[%s10387_s9 + $0x18] sm:$0xff] }
 0x5bc   : > { %4504 = vmatpush1.msra.mxu1 %v5846_v55  ;;  %4575 = vmatpush1.msra.mxu0 %v5910_v2  ;;  %v5950_v55 = vld [vmem:[%s10387_s9 + $0xe0] sm:$0xff]  ;;  %v4619_v2 = vld [vmem:[%s10387_s9 + $0x10] sm:$0xff] }
 0x5bd   : > { %4505 = vmatprep.subr.mxu1 %v5909_v3  ;;  %4604 = vmatprep.subr.mxu0 %v5945_v50  ;;  %v5949_v3 = vld [vmem:[%s10387_s9 + $0xd8] sm:$0xff]  ;;  %v4618_v50 = vld [vmem:[%s10387_s9 + $0x8] sm:$0xff] }
 0x5be   : > { %4506 = vmatpush2.msra.mxu1 %v5908_v21  ;;  %4605 = vmatpush2.msra.mxu0 %v5944_v56  ;;  %v5948_v21 = vld [vmem:[%s10387_s9 + $0xd0] sm:$0xff]  ;;  %v4617_v56 = vld [vmem:[%s10387_s9] sm:$0xff] }
 0x5bf   : > { %4507 = vmatprep.subr.mxu1 %v5907_v1  ;;  %4606 = vmatprep.subr.mxu0 %v5943_v57  ;;  %v5947_v1 = vld [vmem:[%s10387_s9 + $0xc8] sm:$0xff]  ;;  %v4641_v57 = vld [vmem:[%s10387_s9 + $0xc0] sm:$0xff] }
 0x5c0   : > { %4508 = vmatpush2.msra.mxu1 %v5906_v58  ;;  %4607 = vmatpush2.msra.mxu0 %v5942_v59  ;;  %v5971_v58 = vld [vmem:[%s10387_s9 + $0x188] sm:$0xff]  ;;  %v4640_v59 = vld [vmem:[%s10387_s9 + $0xb8] sm:$0xff] }
 0x5c1   : > { %4509 = vmatprep.subr.mxu1 %v5905_v5  ;;  %4609 = vmatmul.mubr.f32.vlgmr.msra.gmra.mxu0 %v9621_v54  ;;  %v5899_v54 = vld [vmem:[%s10386_s8 + $0x4c8] sm:$0xff]  ;;  %v5970_v5 = vld [vmem:[%s10387_s9 + $0x180] sm:$0xff] }
 0x5c2   : > { %4510 = vmatpush2.msra.mxu1 %v5904_v6  ;;  %4676 = vmatprep.subr.mxu0 %v10410_v12  ;;  %v4639_v6 = vld [vmem:[%s10387_s9 + $0xb0] sm:$0xff] }
 0x5c3   : > { %4511 = vmatprep.subr.mxu1 %v5903_v11  ;;  %4677 = vmatpush1.msra.mxu0 %v5962_v34  ;;  %v5969_v11 = vld [vmem:[%s10387_s9 + $0x178] sm:$0xff]  ;;  %v6015_v34 = vld [vmem:[%s10387_s9 + $0x2d0] sm:$0xff] }
 0x5c4   : > { %4512 = vmatpush2.msra.mxu1 %v5902_v60  ;;  %4678 = vmatprep.subr.mxu0 %v10410_v12  ;;  %v4638_v60 = vld [vmem:[%s10387_s9 + $0xa8] sm:$0xff] }
 0x5c5   : > { %4513 = vmatprep.subr.mxu1 %v5901_v8  ;;  %v5968_v8 = vld [vmem:[%s10387_s9 + $0x170] sm:$0xff] }
 0x5c6   : > { %4514 = vmatpush2.msra.mxu1 %v5900_v61  ;;  %v4637_v61 = vld [vmem:[%s10387_s9 + $0xa0] sm:$0xff] }
 0x5c7   : > { %4515 = vmatprep.subr.mxu1 %v5899_v54  ;;  %v5967_v54 = vld [vmem:[%s10387_s9 + $0x168] sm:$0xff] }
 0x5c8   : > { %4516 = vmatpush2.msra.mxu1 %v5898_v9  ;;  %v4636_v9 = vld [vmem:[%s10387_s9 + $0x98] sm:$0xff] }
 0x5c9   : > { %4517 = vmatprep.subr.mxu1 %v5897_v13  ;;  %v5966_v13 = vld [vmem:[%s10387_s9 + $0x160] sm:$0xff] }
 0x5ca   : > { %4518 = vmatpush2.msra.mxu1 %v5896_v14  ;;  %v4635_v14 = vld [vmem:[%s10387_s9 + $0x90] sm:$0xff] }
 0x5cb   : > { %4519 = vmatprep.subr.mxu1 %v5895_v27  ;;  %v5965_v27 = vld [vmem:[%s10387_s9 + $0x158] sm:$0xff] }
 0x5cc   : > { %4520 = vmatpush2.msra.mxu1 %v5894_v15  ;;  %v4634_v15 = vld [vmem:[%s10387_s9 + $0x88] sm:$0xff] }
 0x5cd   : > { %4521 = vmatprep.subr.mxu1 %v5893_v28  ;;  %v5964_v28 = vld [vmem:[%s10387_s9 + $0x150] sm:$0xff] }
 0x5ce   : > { %4522 = vmatpush2.msra.mxu1 %v5892_v29  ;;  %v4633_v29 = vld [vmem:[%s10387_s9 + $0x80] sm:$0xff] }
 0x5cf   : > { %4523 = vmatprep.subr.mxu1 %v5891_v30  ;;  %v5963_v30 = vld [vmem:[%s10387_s9 + $0x148] sm:$0xff] }
 0x5d0   : > { %4524 = vmatpush2.msra.mxu1 %v5890_v4 }
 0x5d1   : > { %4525 = vmatprep.subr.mxu1 %v5889_v16 }
 0x5d2   : > { %4526 = vmatpush2.msra.mxu1 %v5888_v18 }
 0x5d3   : > { %4527 = vmatprep.subr.mxu1 %v5887_v51 }
 0x5d4   : > { %4528 = vmatpush2.msra.mxu1 %v5886_v23 }
 0x5d5   : > { %4529 = vmatprep.subr.mxu1 %v5885_v24 }
 0x5d6   : > { %4530 = vmatpush2.msra.mxu1 %v5884_v7 }
 0x5d7   : > { %4531 = vmatprep.subr.mxu1 %v5883_v26 }
 0x5d8   : > { %4532 = vmatpush2.msra.mxu1 %v5882_v31 }
 0x5d9   : > { %4533 = vmatprep.subr.mxu1 %v5881_v10 }
 0x5da   : > { %4534 = vmatpush2.msra.mxu1 %v5880_v32 }
 0x5db   : > { %4535 = vmatprep.subr.mxu1 %v5879_v33 }
 0x5dc   : > { %4536 = vmatpush2.msra.mxu1 %v5878_v22 }
 0x5dd   : > { %4538 = vmatmul.mubr.f32.vlgmr.msra.gmra.mxu1 %v9617_v52  ;;  %4748 = vmatprep.subr.mxu1 %v10410_v12  ;;  %v5961_v52 = vld [vmem:[%s10387_s9 + $0x138] sm:$0xff] }
 0x5de   : > { %4749 = vmatpush1.msra.mxu1 %v4632_v40  ;;  %4679 = vmatpush1.msra.mxu0 %v5961_v52 }
 0x5df   : > { %4750 = vmatprep.subr.mxu1 %v10410_v12  ;;  %4680 = vmatprep.subr.mxu0 %v10410_v12 }
 0x5e0   : > { %4751 = vmatpush1.msra.mxu1 %v4631_v44  ;;  %4681 = vmatpush1.msra.mxu0 %v5960_v17 }
 0x5e1   : > { %4752 = vmatprep.subr.mxu1 %v10410_v12  ;;  %4682 = vmatprep.subr.mxu0 %v10410_v12 }
 0x5e2   : > { %4753 = vmatpush1.msra.mxu1 %v4630_v35  ;;  %4683 = vmatpush1.msra.mxu0 %v5959_v43  ;;  %v6014_v35 = vld [vmem:[%s10387_s9 + $0x2c8] sm:$0xff] }
 0x5e3   : > { %4754 = vmatprep.subr.mxu1 %v10410_v12  ;;  %4684 = vmatprep.subr.mxu0 %v10410_v12 }
 0x5e4   : > { %4755 = vmatpush1.msra.mxu1 %v4629_v38  ;;  %4685 = vmatpush1.msra.mxu0 %v5958_v37  ;;  %v5989_v38 = vld [vmem:[%s10387_s9 + $0x208] sm:$0xff]  ;;  %v6013_v37 = vld [vmem:[%s10387_s9 + $0x2c0] sm:$0xff] }
 0x5e5   : > { %4756 = vmatprep.subr.mxu1 %v10410_v12  ;;  %4686 = vmatprep.subr.mxu0 %v10410_v12 }
 0x5e6   : > { %4757 = vmatpush1.msra.mxu1 %v4628_v36  ;;  %4687 = vmatpush1.msra.mxu0 %v5957_v42  ;;  %v5988_v36 = vld [vmem:[%s10387_s9 + $0x200] sm:$0xff]  ;;  %v6012_v42 = vld [vmem:[%s10387_s9 + $0x2b8] sm:$0xff] }
 0x5e7   : > { %4758 = vmatprep.subr.mxu1 %v10410_v12  ;;  %4688 = vmatprep.subr.mxu0 %v10410_v12 }
 0x5e8   : > { %4759 = vmatpush1.msra.mxu1 %v4627_v41  ;;  %4689 = vmatpush1.msra.mxu0 %v5956_v46  ;;  %v5987_v41 = vld [vmem:[%s10387_s9 + $0x1f8] sm:$0xff]  ;;  %v6011_v46 = vld [vmem:[%s10387_s9 + $0x2b0] sm:$0xff] }
 0x5e9   : > { %4760 = vmatprep.subr.mxu1 %v10410_v12  ;;  %4690 = vmatprep.subr.mxu0 %v10410_v12 }
 0x5ea   : > { %4761 = vmatpush1.msra.mxu1 %v4626_v45  ;;  %4691 = vmatpush1.msra.mxu0 %v5955_v20  ;;  %v5986_v45 = vld [vmem:[%s10387_s9 + $0x1f0] sm:$0xff]  ;;  %v6010_v20 = vld [vmem:[%s10387_s9 + $0x2a8] sm:$0xff] }
 0x5eb   : > { %4762 = vmatprep.subr.mxu1 %v10410_v12  ;;  %4692 = vmatprep.subr.mxu0 %v10410_v12 }
 0x5ec   : > { %4763 = vmatpush1.msra.mxu1 %v4625_v19  ;;  %4693 = vmatpush1.msra.mxu0 %v5954_v48  ;;  %v5985_v19 = vld [vmem:[%s10387_s9 + $0x1e8] sm:$0xff]  ;;  %v6009_v48 = vld [vmem:[%s10387_s9 + $0x2a0] sm:$0xff] }
 0x5ed   : > { %4764 = vmatprep.subr.mxu1 %v10410_v12  ;;  %4694 = vmatprep.subr.mxu0 %v10410_v12 }
 0x5ee   : > { %4765 = vmatpush1.msra.mxu1 %v4624_v47  ;;  %4695 = vmatpush1.msra.mxu0 %v5953_v25  ;;  %v5984_v47 = vld [vmem:[%s10387_s9 + $0x1e0] sm:$0xff]  ;;  %v6008_v25 = vld [vmem:[%s10387_s9 + $0x298] sm:$0xff] }
 0x5ef   : > { %4766 = vmatprep.subr.mxu1 %v10410_v12  ;;  %4696 = vmatprep.subr.mxu0 %v10410_v12 }
 0x5f0   : > { %4767 = vmatpush1.msra.mxu1 %v4623_v49  ;;  %4697 = vmatpush1.msra.mxu0 %v5952_v63  ;;  %v5983_v49 = vld [vmem:[%s10387_s9 + $0x1d8] sm:$0xff]  ;;  %v6007_v63 = vld [vmem:[%s10387_s9 + $0x290] sm:$0xff] }
 0x5f1   : > { %4768 = vmatprep.subr.mxu1 %v10410_v12  ;;  %4698 = vmatprep.subr.mxu0 %v10410_v12 }
 0x5f2   : > { %4769 = vmatpush1.msra.mxu1 %v4622_v62  ;;  %4699 = vmatpush1.msra.mxu0 %v5951_v0  ;;  %v5982_v62 = vld [vmem:[%s10387_s9 + $0x1d0] sm:$0xff]  ;;  %v6006_v0 = vld [vmem:[%s10387_s9 + $0x288] sm:$0xff] }
 0x5f3   : > { %4770 = vmatprep.subr.mxu1 %v10410_v12  ;;  %4700 = vmatprep.subr.mxu0 %v10410_v12 }
 0x5f4   : > { %4771 = vmatpush1.msra.mxu1 %v4621_v53  ;;  %4701 = vmatpush1.msra.mxu0 %v5950_v55  ;;  %v5981_v53 = vld [vmem:[%s10387_s9 + $0x1c8] sm:$0xff]  ;;  %v6005_v55 = vld [vmem:[%s10387_s9 + $0x280] sm:$0xff] }
 0x5f5   : > { %4772 = vmatprep.subr.mxu1 %v10410_v12  ;;  %4702 = vmatprep.subr.mxu0 %v10410_v12 }
 0x5f6   : > { %4773 = vmatpush1.msra.mxu1 %v4620_v39  ;;  %4703 = vmatpush1.msra.mxu0 %v5949_v3  ;;  %v5980_v39 = vld [vmem:[%s10387_s9 + $0x1c0] sm:$0xff]  ;;  %v6004_v3 = vld [vmem:[%s10387_s9 + $0x278] sm:$0xff] }
 0x5f7   : > { %4774 = vmatprep.subr.mxu1 %v10410_v12  ;;  %4704 = vmatprep.subr.mxu0 %v10410_v12 }
 0x5f8   : > { %4775 = vmatpush1.msra.mxu1 %v4619_v2  ;;  %4705 = vmatpush1.msra.mxu0 %v5948_v21  ;;  %v5979_v2 = vld [vmem:[%s10387_s9 + $0x1b8] sm:$0xff]  ;;  %v6003_v21 = vld [vmem:[%s10387_s9 + $0x270] sm:$0xff] }
 0x5f9   : > { %4776 = vmatprep.subr.mxu1 %v10410_v12  ;;  %4706 = vmatprep.subr.mxu0 %v10410_v12 }
 0x5fa   : > { %4777 = vmatpush1.msra.mxu1 %v4618_v50  ;;  %4707 = vmatpush1.msra.mxu0 %v5947_v1  ;;  %v5978_v50 = vld [vmem:[%s10387_s9 + $0x1b0] sm:$0xff]  ;;  %v6002_v1 = vld [vmem:[%s10387_s9 + $0x268] sm:$0xff] }
 0x5fb   : > { %4778 = vmatprep.subr.mxu1 %v10410_v12  ;;  %4722 = vmatprep.subr.mxu0 %v10410_v12 }
 0x5fc   : > { %4779 = vmatpush1.msra.mxu1 %v4617_v56  ;;  %4723 = vmatpush2.msra.mxu0 %v5971_v58  ;;  %v5977_v56 = vld [vmem:[%s10387_s9 + $0x1a8] sm:$0xff]  ;;  %v6001_v58 = vld [vmem:[%s10387_s9 + $0x260] sm:$0xff] }
 0x5fd   : > { %4794 = vmatprep.subr.mxu1 %v10410_v12  ;;  %4724 = vmatprep.subr.mxu0 %v10410_v12 }
 0x5fe   : > { %4795 = vmatpush2.msra.mxu1 %v4641_v57  ;;  %4725 = vmatpush2.msra.mxu0 %v5970_v5  ;;  %v5976_v57 = vld [vmem:[%s10387_s9 + $0x1a0] sm:$0xff]  ;;  %v6000_v5 = vld [vmem:[%s10387_s9 + $0x258] sm:$0xff] }
 0x5ff   : > { %4796 = vmatprep.subr.mxu1 %v10410_v12  ;;  %4726 = vmatprep.subr.mxu0 %v10410_v12 }
 0x600   : > { %4797 = vmatpush2.msra.mxu1 %v4640_v59  ;;  %4727 = vmatpush2.msra.mxu0 %v5969_v11  ;;  %v5975_v59 = vld [vmem:[%s10387_s9 + $0x198] sm:$0xff] }
 0x601   : > { %4798 = vmatprep.subr.mxu1 %v10410_v12  ;;  %4728 = vmatprep.subr.mxu0 %v10410_v12  ;;  %v6024_v11 = vld [vmem:[%s10387_s9 + $0x318] sm:$0xff] }
 0x602   : > { %4799 = vmatpush2.msra.mxu1 %v4639_v6  ;;  %4729 = vmatpush2.msra.mxu0 %v5968_v8  ;;  %v5974_v6 = vld [vmem:[%s10387_s9 + $0x190] sm:$0xff] }
 0x603   : > { %4800 = vmatprep.subr.mxu1 %v10410_v12  ;;  %4730 = vmatprep.subr.mxu0 %v10410_v12  ;;  %v6023_v8 = vld [vmem:[%s10387_s9 + $0x310] sm:$0xff] }
 0x604   : > { %4801 = vmatpush2.msra.mxu1 %v4638_v60  ;;  %4731 = vmatpush2.msra.mxu0 %v5967_v54  ;;  %v5998_v60 = vld [vmem:[%s10387_s9 + $0x250] sm:$0xff]  ;;  %v6022_v54 = vld [vmem:[%s10387_s9 + $0x308] sm:$0xff] }
 0x605   : > { %4802 = vmatprep.subr.mxu1 %v10410_v12  ;;  %4732 = vmatprep.subr.mxu0 %v10410_v12 }
 0x606   : > { %4803 = vmatpush2.msra.mxu1 %v4637_v61  ;;  %4733 = vmatpush2.msra.mxu0 %v5966_v13  ;;  %v5997_v61 = vld [vmem:[%s10387_s9 + $0x248] sm:$0xff]  ;;  %v6021_v13 = vld [vmem:[%s10387_s9 + $0x300] sm:$0xff] }
 0x607   : > { %4804 = vmatprep.subr.mxu1 %v10410_v12  ;;  %4734 = vmatprep.subr.mxu0 %v10410_v12 }
 0x608   : > { %4805 = vmatpush2.msra.mxu1 %v4636_v9  ;;  %4735 = vmatpush2.msra.mxu0 %v5965_v27  ;;  %v5996_v9 = vld [vmem:[%s10387_s9 + $0x240] sm:$0xff]  ;;  %v6020_v27 = vld [vmem:[%s10387_s9 + $0x2f8] sm:$0xff] }
 0x609   : > { %4806 = vmatprep.subr.mxu1 %v10410_v12  ;;  %4736 = vmatprep.subr.mxu0 %v10410_v12 }
 0x60a   : > { %4807 = vmatpush2.msra.mxu1 %v4635_v14  ;;  %4737 = vmatpush2.msra.mxu0 %v5964_v28  ;;  %v5995_v14 = vld [vmem:[%s10387_s9 + $0x238] sm:$0xff]  ;;  %v6019_v28 = vld [vmem:[%s10387_s9 + $0x2f0] sm:$0xff] }
 0x60b   : > { %4808 = vmatprep.subr.mxu1 %v10410_v12  ;;  %4738 = vmatprep.subr.mxu0 %v10410_v12 }
 0x60c   : > { %4809 = vmatpush2.msra.mxu1 %v4634_v15  ;;  %4739 = vmatpush2.msra.mxu0 %v5963_v30  ;;  %v5994_v15 = vld [vmem:[%s10387_s9 + $0x230] sm:$0xff]  ;;  %v6018_v30 = vld [vmem:[%s10387_s9 + $0x2e8] sm:$0xff] }
 0x60d   : > { %4810 = vmatprep.subr.mxu1 %v10410_v12  ;;  %4849 = vmatprep.subr.mxu0 %v10410_v12 }
 0x60e   : > { %4811 = vmatpush2.msra.mxu1 %v4633_v29  ;;  %v5993_v29 = vld [vmem:[%s10387_s9 + $0x228] sm:$0xff] }
 0x60f   : > { %4951 = vmatprep.subr.mxu1 %v10410_v12 }
 0x65c   : > { %v4296_v4 = vpop.f32.mrf.mxu0  ;;  %v4367_v16 = vpop.f32.mrf.mxu1 }
 0x65d   : > { %v4368_v10 = vadd.f32 %v4367_v16, %v4296_v4  ;;  %v5992_v4 = vld [vmem:[%s10387_s9 + $0x220] sm:$0xff] }
 0x65e   : > { %v4298_v18 = vpop.f32.mrf.mxu0  ;;  %v4369_v51 = vpop.f32.mrf.mxu1  ;;  %v6017_v16 = vld [vmem:[%s10387_s9 + $0x2e0] sm:$0xff] }
 0x65f   : > { %v4370_v32 = vadd.f32 %v4369_v51, %v4298_v18  ;;  %v5991_v18 = vld [vmem:[%s10387_s9 + $0x218] sm:$0xff] }
 0x660   : > { %v6016_v51 = vld [vmem:[%s10387_s9 + $0x2d8] sm:$0xff] }
 0x681   : > { %v4610_v23 = vpop.f32.mrf.mxu0 }
 0x683   : > { %v4612_v26 = vpop.f32.mrf.mxu0 }
 0x69d   : > { %v4539_v24 = vpop.f32.mrf.mxu1 }
 0x69e   : > { %v4611_v7 = vadd.f32 %v4610_v23, %v4539_v24  ;;  %v5990_v24 = vld [vmem:[%s10387_s9 + $0x210] sm:$0xff] }
 0x69f   : > { %v4541_v31 = vpop.f32.mrf.mxu1 }
 0x6a0   : > { %v4613_v33 = vadd.f32 %v4612_v26, %v4541_v31  ;;  %v10127_v22 = vmax.f32 %v4368_v10, %v4611_v7 }
 0x6a2   : > { %v4616_v40 = vmax.f32 %v4370_v32, %v4613_v33  ;;  %v4670_v17 = vrot.slane %v10127_v22, 1  ;;  %v4946_v23 = vrot.slane %v10127_v22, 3  ;;  %v4844_v7 = vrot.slane %v10127_v22, 2 }
 0x6a4   : > { %5973 = vmatprep.mubr.msk.f32.mxu1 %vm4673_vm3, %v4616_v40  ;;  %v4671_v44 = vrot.slane %v4616_v40, 1  ;;  %v4947_v52 = vrot.slane %v4616_v40, 3  ;;  %v4845_v43 = vrot.slane %v4616_v40, 2 }
 0x6a5   : > { %4813 = vmatmul.mubr.f32.vlgmr.msra.gmra.mxu1 %v10127_v22 }
 0x6a6   : > { %4952 = vmatpush1.msra.mxu1 %v6015_v34  ;;  %5972 = vmatprep.mubr.msk.f32.mxu0 %vm4673_vm3, %v4671_v44 }
 0x6a7   : > { %4953 = vmatprep.subr.mxu1 %v10410_v12  ;;  %6025 = vmatprep.mubr.msk.f32.mxu1 %vm4673_vm3, %v4947_v52 }
 0x6a8   : > { %4741 = vmatmul.mubr.f32.vlgmr.msra.gmra.mxu0 %v4670_v17  ;;  %4954 = vmatpush1.msra.mxu1 %v6014_v35 }
 0x6a9   : > { %4850 = vmatpush1.msra.mxu0 %v5989_v38  ;;  %5999 = vmatprep.mubr.msk.f32.mxu0 %vm4673_vm3, %v4845_v43 }
 0x6aa   : > { %4851 = vmatprep.subr.mxu0 %v10410_v12  ;;  %4955 = vmatprep.subr.mxu1 %v10410_v12 }
 0x6ab   : > { %4852 = vmatpush1.msra.mxu0 %v5988_v36  ;;  %4956 = vmatpush1.msra.mxu1 %v6013_v37 }
 0x6ac   : > { %4853 = vmatprep.subr.mxu0 %v10410_v12  ;;  %4957 = vmatprep.subr.mxu1 %v10410_v12 }
 0x6ad   : > { %4854 = vmatpush1.msra.mxu0 %v5987_v41  ;;  %4958 = vmatpush1.msra.mxu1 %v6012_v42 }
 0x6ae   : > { %4855 = vmatprep.subr.mxu0 %v10410_v12  ;;  %4959 = vmatprep.subr.mxu1 %v10410_v12 }
 0x6af   : > { %4856 = vmatpush1.msra.mxu0 %v5986_v45  ;;  %4960 = vmatpush1.msra.mxu1 %v6011_v46 }
 0x6b0   : > { %4857 = vmatprep.subr.mxu0 %v10410_v12  ;;  %4961 = vmatprep.subr.mxu1 %v10410_v12 }
 0x6b1   : > { %4858 = vmatpush1.msra.mxu0 %v5985_v19  ;;  %4962 = vmatpush1.msra.mxu1 %v6010_v20 }
 0x6b2   : > { %4859 = vmatprep.subr.mxu0 %v10410_v12  ;;  %4963 = vmatprep.subr.mxu1 %v10410_v12 }
 0x6b3   : > { %4860 = vmatpush1.msra.mxu0 %v5984_v47  ;;  %4964 = vmatpush1.msra.mxu1 %v6009_v48 }
 0x6b4   : > { %4861 = vmatprep.subr.mxu0 %v10410_v12  ;;  %4965 = vmatprep.subr.mxu1 %v10410_v12 }
 0x6b5   : > { %4862 = vmatpush1.msra.mxu0 %v5983_v49  ;;  %4966 = vmatpush1.msra.mxu1 %v6008_v25 }
 0x6b6   : > { %4863 = vmatprep.subr.mxu0 %v10410_v12  ;;  %4967 = vmatprep.subr.mxu1 %v10410_v12 }
 0x6b7   : > { %4864 = vmatpush1.msra.mxu0 %v5982_v62  ;;  %4968 = vmatpush1.msra.mxu1 %v6007_v63 }
 0x6b8   : > { %4865 = vmatprep.subr.mxu0 %v10410_v12  ;;  %4969 = vmatprep.subr.mxu1 %v10410_v12 }
 0x6b9   : > { %4866 = vmatpush1.msra.mxu0 %v5981_v53  ;;  %4970 = vmatpush1.msra.mxu1 %v6006_v0 }
 0x6ba   : > { %4867 = vmatprep.subr.mxu0 %v10410_v12  ;;  %4971 = vmatprep.subr.mxu1 %v10410_v12 }
 0x6bb   : > { %4868 = vmatpush1.msra.mxu0 %v5980_v39  ;;  %4972 = vmatpush1.msra.mxu1 %v6005_v55 }
 0x6bc   : > { %4869 = vmatprep.subr.mxu0 %v10410_v12  ;;  %4973 = vmatprep.subr.mxu1 %v10410_v12 }
 0x6bd   : > { %4870 = vmatpush1.msra.mxu0 %v5979_v2  ;;  %4974 = vmatpush1.msra.mxu1 %v6004_v3 }
 0x6be   : > { %4871 = vmatprep.subr.mxu0 %v10410_v12  ;;  %4975 = vmatprep.subr.mxu1 %v10410_v12 }
 0x6bf   : > { %4872 = vmatpush1.msra.mxu0 %v5978_v50  ;;  %4976 = vmatpush1.msra.mxu1 %v6003_v21 }
 0x6c0   : > { %4873 = vmatprep.subr.mxu0 %v10410_v12  ;;  %4977 = vmatprep.subr.mxu1 %v10410_v12 }
 0x6c1   : > { %4874 = vmatpush1.msra.mxu0 %v5977_v56  ;;  %4978 = vmatpush1.msra.mxu1 %v6002_v1 }
 0x6c2   : > { %4875 = vmatprep.subr.mxu0 %v10410_v12  ;;  %4979 = vmatprep.subr.mxu1 %v10410_v12 }
 0x6c3   : > { %4876 = vmatpush1.msra.mxu0 %v5976_v57  ;;  %4980 = vmatpush1.msra.mxu1 %v6001_v58 }
 0x6c4   : > { %4877 = vmatprep.subr.mxu0 %v10410_v12  ;;  %4981 = vmatprep.subr.mxu1 %v10410_v12 }
 0x6c5   : > { %4878 = vmatpush1.msra.mxu0 %v5975_v59  ;;  %4982 = vmatpush1.msra.mxu1 %v6000_v5 }
 0x6c6   : > { %4879 = vmatprep.subr.mxu0 %v10410_v12  ;;  %4997 = vmatprep.subr.mxu1 %v10410_v12 }
 0x6c7   : > { %4880 = vmatpush1.msra.mxu0 %v5974_v6  ;;  %4998 = vmatpush2.msra.mxu1 %v6024_v11 }
 0x6c8   : > { %4895 = vmatprep.subr.mxu0 %v10410_v12  ;;  %4999 = vmatprep.subr.mxu1 %v10410_v12 }
 0x6c9   : > { %4896 = vmatpush2.msra.mxu0 %v5998_v60  ;;  %5000 = vmatpush2.msra.mxu1 %v6023_v8 }
 0x6ca   : > { %4897 = vmatprep.subr.mxu0 %v10410_v12  ;;  %5001 = vmatprep.subr.mxu1 %v10410_v12 }
 0x6cb   : > { %4898 = vmatpush2.msra.mxu0 %v5997_v61  ;;  %5002 = vmatpush2.msra.mxu1 %v6022_v54 }
 0x6cc   : > { %4899 = vmatprep.subr.mxu0 %v10410_v12  ;;  %5003 = vmatprep.subr.mxu1 %v10410_v12 }
 0x6cd   : > { %4900 = vmatpush2.msra.mxu0 %v5996_v9  ;;  %5004 = vmatpush2.msra.mxu1 %v6021_v13 }
 0x6ce   : > { %4901 = vmatprep.subr.mxu0 %v10410_v12  ;;  %5005 = vmatprep.subr.mxu1 %v10410_v12 }
 0x6cf   : > { %4902 = vmatpush2.msra.mxu0 %v5995_v14  ;;  %5006 = vmatpush2.msra.mxu1 %v6020_v27 }
 0x6d0   : > { %4903 = vmatprep.subr.mxu0 %v10410_v12  ;;  %5007 = vmatprep.subr.mxu1 %v10410_v12 }
 0x6d1   : > { %4904 = vmatpush2.msra.mxu0 %v5994_v15  ;;  %5008 = vmatpush2.msra.mxu1 %v6019_v28 }
 0x6d2   : > { %4905 = vmatprep.subr.mxu0 %v10410_v12  ;;  %5009 = vmatprep.subr.mxu1 %v10410_v12 }
 0x6d3   : > { %4906 = vmatpush2.msra.mxu0 %v5993_v29  ;;  %5010 = vmatpush2.msra.mxu1 %v6018_v30 }
 0x6d4   : > { %4907 = vmatprep.subr.mxu0 %v10410_v12  ;;  %5011 = vmatprep.subr.mxu1 %v10410_v12 }
 0x6d5   : > { %4908 = vmatpush2.msra.mxu0 %v5992_v4  ;;  %5012 = vmatpush2.msra.mxu1 %v6017_v16 }
 0x6d6   : > { %4909 = vmatprep.subr.mxu0 %v10410_v12  ;;  %5013 = vmatprep.subr.mxu1 %v10410_v12 }
 0x6d7   : > { %4910 = vmatpush2.msra.mxu0 %v5991_v18  ;;  %5014 = vmatpush2.msra.mxu1 %v6016_v51 }
 0x6d8   : > { %4911 = vmatprep.subr.mxu0 %v10410_v12  ;;  %5016 = vmatmul.mubr.f32.vlgmr.msra.gmra.mxu1 %v4946_v23  ;;  %v5022_v12 = vld [vmem:[%s10388_s10] sm:$0x1] }
 0x6d9   : > { %4912 = vmatpush2.msra.mxu0 %v5990_v24 }
 0x6da   : > { %4914 = vmatmul.mubr.f32.vlgmr.msra.gmra.mxu0 %v4844_v7 }
 0x765   : > { %v4814_v26 = vpop.f32.mrf.mxu1 }
 0x767   : > { %v4816_v31 = vpop.f32.mrf.mxu1 }
 0x768   : > { %v4742_v10 = vpop.f32.mrf.mxu0 }
 0x769   : > { %v4815_v40 = vadd.f32 %v4814_v26, %v4742_v10 }
 0x76a   : > { %v4744_v32 = vpop.f32.mrf.mxu0 }
 0x798   : > { %v5017_v33 = vpop.f32.mrf.mxu1 }
 0x79a   : > { %v4915_v34 = vpop.f32.mrf.mxu0  ;;  %v5019_v44 = vpop.f32.mrf.mxu1 }
 0x79b   : > { %v4919_v52 = vadd.f32 %v4915_v34, %v4815_v40 }
 0x79c   : > { %v4917_v35 = vpop.f32.mrf.mxu0 }
 0x79d   : > { %v5021_v22 = vadd.f32 %v5017_v33, %v4919_v52 }
 0x79f   : > { %v5023_v17 = vadd.f32 %v5022_v12, %v5021_v22 }
 0x7a1   : > { %vm5024_vm4 = vcmp.ge.f32.partialorder %v5023_v17, 0.0  ;;  %v5025_v38 = vmul.f32 0.01, %v5023_v17 }
 0x7a3   : > { %v5026_v43 = vsel %vm5024_vm4, %v5023_v17, %v5025_v38 }
 0x7a4   : > { %5027 = vst [vmem:[%s378_s19] sm:$0x1] %v5026_v43 }
 0x7a5   : > { %6083 = shalt.err (!%p6080_p3)
}
 0x7a6   : > { %s6084_s22 = scalar_lea.hbm %s10343_s30, 16  ;;  %s6088_s19 = scalar_lea.hbm %s10389_s11, 32 }
 0x7a7   : > { %p6085_p4 = scmp.ne.s32.totalorder %s10343_s30, %s6084_s22  ;;  %p6089_p9 = scmp.lt.s32.totalorder %s10343_s30, %s10389_s11 }
 0x7a8   : > { %p6090_p10 = scmp.lt.s32.totalorder %s6088_s19, %s6084_s22 }
 0x7a9   : > { %p6086_p7 = pnand %p6085_p4, %p6232_p5 }
 0x7aa   : > { %p6091_p11 = por %p6090_p10, %p6089_p9 }
 0x7ab   : > { %p6087_p8 = pneg %p6086_p7 }
 0x7ad   : > { %p6092_p12 = pnand %p6091_p11, %p6087_p8 }
 0x7af   : > { %6095 = shalt.err (!%p6092_p12)
}
 0x7b0   : > { %6030 = dma.vmem_to_hbm [thread:$0]  (%p6232_p5), %s5042_s26, 16, %s10343_s30, %s5029_s12  }
 0x7b1 PF: > { %p6036_p13 = scmp.ge.s32.totalorder %s6130_s20, 2  ;;  %s5053_s13 = sand.u32 1, %s6118_s17  }
 0x7b2   : > { %s5054_s14 = scalar_lea.sflag [#allocation3], %s5053_s13 }
 0x7b3   : > { %p6033_p0 = pnand %p6036_p13, %p6236_p6 }
 0x7b5   : > { %p6034_p1 = pneg %p6033_p0 }
 0x7b7   : > { %6113 = dma.done.wait (%p6034_p1), %s5054_s14, 16  }
 0x7b8   : > { %6115 = vsyncadd (%p6034_p1), %s5054_s14, 4294967280  ;;  %s10416_s21 = sld [smem:[#allocation5_spill]]  ;;  %p21_p2 = scmp.ge.s32.totalorder %s6219_s23, 4  }
 0x7b9   : > { %s10417_s19 = sld [smem:[#allocation6_spill]]  ;;  %s10418_s17 = smov %s6122_s18 }
 0x7ba   : > { %s10420_s20 = smov %s6219_s23  ;;  %23 = sbr.rel (!%p21_p2) target bundleno = 3 (0x3), region = 114 }
 0x7be   : > { %s10419_s18 = smov %s10416_s21 }
 0x7bf   :  { %5058 = vsyncpa [#allocation3], 1 }
 0x7c0   :  { %5060 = vsyncpa [#allocation3 + $0x1], 1 }

</bundles_post_ra>
